<compile_context>
chip_gen: v5e
topology: v5e:2x2
jax: 0.10.0
libtpu: 0.0.40
codegen_flags: <defaults>
</compile_context>

<pallas_src>
import functools

import jax
import jax.numpy as jnp
from jax import lax
from jax.experimental import pallas as pl
from jax.experimental.pallas import tpu as pltpu

# dot_general dimension-number shorthands (both forms are MXU-native).
_NT = (((1,), (1,)), ((), ()))   # A @ B.T   (contract last dims)
_TN = (((0,), (0,)), ((), ()))   # A.T @ B   (contract first dims)


def _softplus(x):
    # matches torch.nn.functional.softplus (beta=1, threshold=20)
    return jnp.where(x > 20.0, x, jnp.log1p(jnp.exp(jnp.minimum(x, 20.0))))


def _concat(parts, axis):
    return parts[0] if len(parts) == 1 else jnp.concatenate(parts, axis=axis)


# ----------------------------------------------------------------------------
# fused forward kernel: grid = (layer, edge_tile)
# ----------------------------------------------------------------------------
def _gatgnn_kernel(xT_ref, ea_ref, ssrc_ref, stgt_ref, deg_ref, p_ref, cnt_ref,
                   wpre_ref, bpre_ref,
                   wx_ref, we_ref, ai_ref, aj_ref, bias_ref, gamma_ref, beta_ref,
                   nmask_ref, wpost_ref, bpost_ref, wout_ref, bout_ref,
                   out_ref,
                   hT, hwT_bf, m_row, l_row, accT,
                   *, heads, out_f, n_real):
    lyr = pl.program_id(0)
    et = pl.program_id(1)
    n_layers = pl.num_programs(0)
    n_et = pl.num_programs(1)
    H, O = heads, out_f
    # node state is transposed: features on sublanes, nodes on lanes.

    # ---- pre_fc: h = relu(x @ W_pre + b_pre), stored transposed [F, N] ----
    @pl.when(jnp.logical_and(lyr == 0, et == 0))
    def _():
        h0 = lax.dot_general(wpre_ref[...], xT_ref[...], _TN,
                             preferred_element_type=jnp.float32)          # [F, N]
        hT[...] = jnp.maximum(h0 + bpre_ref[...], 0.0)

    # ---- per-layer init (first edge tile): project h once, reset online state ----
    @pl.when(et == 0)
    def _():
        # hw = h @ Wx computed ONCE per layer (project-before-gather), transposed,
        # stored in bf16 so the gather matmuls run as native bf16 MXU passes.
        hw = lax.dot_general(wx_ref[0], hT[...], _TN,
                             preferred_element_type=jnp.float32)          # [H*O, N]
        hwT_bf[...] = hw.astype(jnp.bfloat16)
        m_row[...] = jnp.zeros_like(m_row)   # alpha = softplus(.) > 0, so 0 is a
        l_row[...] = jnp.zeros_like(l_row)   # valid lower bound for the running max
        accT[...] = jnp.zeros_like(accT)

    # ---- edge-tile body: gather, attention, online segment softmax, scatter ----
    st = stgt_ref[...]                               # [TE, N] one-hot(target) bf16
    ss = ssrc_ref[...]                               # [TE, N] one-hot(source) bf16
    ea = ea_ref[...]                                 # [TE, D] (leaky_relu pre-applied)

    lin_e = jnp.dot(ea, we_ref[0], preferred_element_type=jnp.float32)    # [TE, H*O]
    xi_p = lax.dot_general(st, hwT_bf[...], _NT,
                           preferred_element_type=jnp.float32)            # [TE, H*O]
    xj_p = lax.dot_general(ss, hwT_bf[...], _NT,
                           preferred_element_type=jnp.float32)            # [TE, H*O]
    # softplus(cat([x, edge_attr]) @ W) == softplus(x @ Wx + edge_attr @ We)
    hi = _softplus(xi_p + lin_e)
    hj = _softplus(xj_p + lin_e)

    # attention logits per head as matmuls (block-diagonal Ai/Aj built host-side)
    logit = (jnp.dot(hi, ai_ref[0], preferred_element_type=jnp.float32)
             + jnp.dot(hj, aj_ref[0], preferred_element_type=jnp.float32))  # [TE, H]
    alpha = _softplus(logit)                                               # > 0

    # per-head masked max over this tile's edges: alpha > 0 so st * alpha works
    stf = st.astype(jnp.float32)                     # single [TE, N] f32 cast
    if H == 1:
        tile_max = jnp.max(stf * alpha, axis=0, keepdims=True)            # [1, N]
    else:
        tile_max = _concat(
            [jnp.max(stf * alpha[:, h:h + 1], axis=0, keepdims=True) for h in range(H)],
            axis=0)                                                        # [H, N]

    m_old = m_row[...]
    m_new = jnp.maximum(m_old, tile_max)
    resc = jnp.exp(m_old - m_new)                                         # [H, N]
    l_row[...] = l_row[...] * resc
    if H == 1:
        accT[...] = accT[...] * resc
    else:
        accT[...] = accT[...] * _concat(
            [jnp.broadcast_to(resc[h:h + 1, :], (O, resc.shape[1])) for h in range(H)],
            axis=0)
    m_row[...] = m_new

    # gather running max back to the edges (kept f32 so rescaling stays exact)
    edge_m = lax.dot_general(stf, m_new, _NT,
                             preferred_element_type=jnp.float32)          # [TE, H]
    ex = jnp.exp(alpha - edge_m)                                          # [TE, H]
    l_row[...] = l_row[...] + lax.dot_general(ex.astype(jnp.bfloat16), st, _TN,
                                              preferred_element_type=jnp.float32)

    if H == 1:
        scaled = hj * ex
    else:
        scaled = _concat([hj[:, h * O:(h + 1) * O] * ex[:, h:h + 1] for h in range(H)],
                         axis=1)                                          # [TE, H*O]
    accT[...] = accT[...] + lax.dot_general(scaled.astype(jnp.bfloat16), st, _TN,
                                            preferred_element_type=jnp.float32)

    # ---- per-layer finalize: softmax normalize, scatter-mean, bias, BatchNorm ----
    @pl.when(et == n_et - 1)
    def _():
        inv_l = 1.0 / (l_row[...] + 1e-16)                                # [H, N]
        inv_deg = 1.0 / (jnp.maximum(deg_ref[...], 1.0) * float(H))       # [1, N]
        acc = accT[...]                                                   # [H*O, N]
        if H == 1:
            node_t = acc * inv_l
        else:
            node_t = sum(acc[h * O:(h + 1) * O, :] * inv_l[h:h + 1, :] for h in range(H))
        node_t = node_t * inv_deg + bias_ref[0]                           # [O, N]

        # BatchNorm1d, training-mode batch stats over the REAL nodes (biased var)
        nm = nmask_ref[...]                                               # [1, N]
        mu = jnp.sum(node_t * nm, axis=1, keepdims=True) * (1.0 / n_real)
        diff = (node_t - mu) * nm
        var = jnp.sum(diff * diff, axis=1, keepdims=True) * (1.0 / n_real)
        hT[...] = ((node_t - mu) * lax.rsqrt(var + 1e-5) * gamma_ref[0] + beta_ref[0])
        # dropout p=0.0 -> identity

    # ---- after the last layer: global_mean_pool + post_fc (relu) + lin_out ----
    @pl.when(jnp.logical_and(lyr == n_layers - 1, et == n_et - 1))
    def _():
        pooled = lax.dot_general(p_ref[...], hT[...], _NT,
                                 preferred_element_type=jnp.float32)      # [B, F]
        pooled = pooled / cnt_ref[...]
        z = jnp.maximum(
            jnp.dot(pooled, wpost_ref[...], preferred_element_type=jnp.float32)
            + bpost_ref[...], 0.0)
        out_ref[...] = (jnp.dot(z, wout_ref[...], preferred_element_type=jnp.float32)
                        + bout_ref[...])


# ----------------------------------------------------------------------------
# wrapper
# ----------------------------------------------------------------------------
def gatgnn_forward(params, xT, edge_attr, s_src, s_tgt, deg, P, cnt, node_mask,
                   *, heads, gc_dim, n_real, edge_tile):
    f_in, n_pad = xT.shape
    e_pad, d = edge_attr.shape
    b = P.shape[0]
    n_layers = params["wx"].shape[0]
    ho = heads * gc_dim
    out_dim = params["w_out"].shape[1]
    assert e_pad % edge_tile == 0
    assert n_pad % 128 == 0, "pad the node axis to a multiple of 128 (lane width)"
    assert params["wx"].shape[1:] == (gc_dim, ho)
    n_et = e_pad // edge_tile

    full = lambda a: pl.BlockSpec(a.shape, lambda l, e: (0, 0))
    per_layer = lambda a: pl.BlockSpec((1,) + a.shape[1:], lambda l, e: (l, 0, 0))
    per_edge = lambda a: pl.BlockSpec((edge_tile, a.shape[1]), lambda l, e: (e, 0))

    in_specs = [
        full(xT),
        per_edge(edge_attr), per_edge(s_src), per_edge(s_tgt),
        full(deg), full(P), full(cnt),
        full(params["w_pre"]), full(params["b_pre"]),
        per_layer(params["wx"]), per_layer(params["we"]),
        per_layer(params["att_i"]), per_layer(params["att_j"]),
        per_layer(params["bias"]), per_layer(params["gamma"]), per_layer(params["beta"]),
        full(node_mask),
        full(params["w_post"]), full(params["b_post"]),
        full(params["w_out"]), full(params["b_out"]),
    ]

    scratch = [
        pltpu.VMEM((gc_dim, n_pad), jnp.float32),   # hT   (node features, transposed)
        pltpu.VMEM((ho, n_pad), jnp.bfloat16),      # hwT  (projected features, bf16)
        pltpu.VMEM((heads, n_pad), jnp.float32),    # running max
        pltpu.VMEM((heads, n_pad), jnp.float32),    # running softmax denominator
        pltpu.VMEM((ho, n_pad), jnp.float32),       # weighted-message accumulator
    ]

    # ---- VMEM budget: derive from actual block/scratch sizes, clamp per chip ----
    blk_bytes = 2 * (edge_tile * d * 4 + 2 * edge_tile * n_pad * 2)   # double-buffered
    resident = 2 * 4 * (xT.size + P.size + cnt.size + deg.size + node_mask.size)
    param_bytes = sum(2 * 4 * int(p.size) for p in params.values())
    scratch_bytes = n_pad * (gc_dim * 4 + ho * 2 + 2 * heads * 4 + ho * 4)
    temp_bytes = 4 * edge_tile * n_pad * 4 + 8 * edge_tile * ho * 4
    est = int(1.5 * (blk_bytes + resident + param_bytes + scratch_bytes + temp_bytes))
    try:
        phys = int(pltpu.get_tpu_info().vmem_capacity_bytes)          # 64 MiB on v7x,
    except Exception:                                                 # 128 MiB v5e/v6e
        phys = 64 * 1024 * 1024
    vmem_limit = min(max(est, 32 * 1024 * 1024), int(phys * 0.85))

    out = pl.pallas_call(
        functools.partial(_gatgnn_kernel, heads=heads, out_f=gc_dim, n_real=n_real),
        out_shape=jax.ShapeDtypeStruct((b, out_dim), jnp.float32),
        grid_spec=pltpu.PrefetchScalarGridSpec(
            num_scalar_prefetch=0,
            grid=(n_layers, n_et),
            in_specs=in_specs,
            out_specs=pl.BlockSpec((b, out_dim), lambda l, e: (0, 0)),
            scratch_shapes=scratch),
        compiler_params=pltpu.CompilerParams(
            dimension_semantics=("arbitrary", "arbitrary"),
            vmem_limit_bytes=vmem_limit),
    )(xT, edge_attr, s_src, s_tgt, deg, P, cnt,
      params["w_pre"], params["b_pre"],
      params["wx"], params["we"], params["att_i"], params["att_j"],
      params["bias"], params["gamma"], params["beta"],
      node_mask, params["w_post"], params["b_post"],
      params["w_out"], params["b_out"])
    return out.reshape(-1) if out_dim == 1 else out


# ----------------------------------------------------------------------------
# main
# ----------------------------------------------------------------------------
if __name__ == "__main__":
    key = jax.random.PRNGKey(0)
    keys = iter(jax.random.split(key, 64))

    # small synthetic graph batch
    num_features = 16          # data.num_features
    num_edge_features = 8      # data.num_edge_features
    dim1 = dim2 = 64
    heads = 1                  # dim3
    output_dim = 1             # data[0].y scalar
    gc_count = 3
    N, E, B = 12, 30, 2        # nodes, edges, graphs
    EDGE_TILE = 128            # edges per grid step (multiple of 16; shrink on v7x
                               # only if the derived VMEM budget demands it)

    N_pad = ((N + 127) // 128) * 128          # lane-dense node axis
    E_pad = ((E + EDGE_TILE - 1) // EDGE_TILE) * EDGE_TILE

    x = jax.random.normal(next(keys), (N, num_features), jnp.float32)
    edge_attr = jax.random.normal(next(keys), (E, num_edge_features), jnp.float32)
    src = jax.random.randint(next(keys), (E,), 0, N)
    tgt = jax.random.randint(next(keys), (E,), 0, N)
    batch = jnp.concatenate([jnp.zeros((N // 2,), jnp.int32),
                             jnp.ones((N - N // 2,), jnp.int32)])

    # node-side glue (padded to N_pad; phantom nodes have no edges / zero pool weight
    # and are masked out of the BatchNorm statistics)
    xT = jnp.zeros((num_features, N_pad), jnp.float32).at[:, :N].set(x.T)
    node_mask = jnp.zeros((1, N_pad), jnp.float32).at[:, :N].set(1.0)
    P = jnp.zeros((B, N_pad), jnp.float32).at[:, :N].set(
        jax.nn.one_hot(batch, B, dtype=jnp.float32).T)
    cnt = jnp.maximum(jnp.sum(P, axis=1, keepdims=True), 1.0)

    # edge-side glue: one-hot gather/scatter operators in bf16 (0/1 exact),
    # padded with all-zero rows to a multiple of EDGE_TILE; padded edges therefore
    # contribute nothing through the scatter matmuls (no edge_valid mask needed).
    S_src = jnp.zeros((E_pad, N_pad), jnp.bfloat16).at[:E].set(
        jax.nn.one_hot(src, N_pad, dtype=jnp.bfloat16))
    S_tgt = jnp.zeros((E_pad, N_pad), jnp.bfloat16).at[:E].set(
        jax.nn.one_hot(tgt, N_pad, dtype=jnp.bfloat16))
    # the model applies leaky_relu(edge_attr, 0.2) exactly once before the conv loop
    ea_lr = jnp.where(edge_attr >= 0.0, edge_attr, 0.2 * edge_attr)
    EA = jnp.zeros((E_pad, num_edge_features), jnp.float32).at[:E].set(ea_lr)
    # in-degree is layer-invariant: precompute once
    deg = jnp.sum(S_tgt.astype(jnp.float32), axis=0, keepdims=True)      # [1, N_pad]

    # deterministic synthetic parameters (shapes per the module __init__)
    def uni(k, shape, bound):
        return jax.random.uniform(k, shape, jnp.float32, -bound, bound)

    def glorot(k, shape):
        fan_in, fan_out = shape[-2], shape[-1]
        return uni(k, shape, (6.0 / (fan_in + fan_out)) ** 0.5)

    HO = heads * dim1
    wx_l, we_l, ai_l, aj_l, b_l, g_l, be_l = [], [], [], [], [], [], []
    for _ in range(gc_count):
        w = glorot(next(keys), (dim1 + num_edge_features, HO))
        att = glorot(next(keys), (heads, 2 * dim1))
        wx_l.append(w[:dim1, :])                       # node-feature part of W
        we_l.append(w[dim1:, :])                       # edge-feature part of W
        # block-diagonal attention matrices: logits become MXU matmuls in-kernel
        Ai = jnp.zeros((HO, heads), jnp.float32)
        Aj = jnp.zeros((HO, heads), jnp.float32)
        for h in range(heads):
            Ai = Ai.at[h * dim1:(h + 1) * dim1, h].set(att[h, :dim1])
            Aj = Aj.at[h * dim1:(h + 1) * dim1, h].set(att[h, dim1:])
        ai_l.append(Ai)
        aj_l.append(Aj)
        b_l.append(jnp.zeros((dim1, 1), jnp.float32))
        g_l.append(jnp.ones((dim1, 1), jnp.float32))   # BatchNorm1d weight
        be_l.append(jnp.zeros((dim1, 1), jnp.float32)) # BatchNorm1d bias

    params = dict(
        w_pre=uni(next(keys), (num_features, dim1), num_features ** -0.5),
        b_pre=uni(next(keys), (dim1, 1), num_features ** -0.5),
        wx=jnp.stack(wx_l), we=jnp.stack(we_l),
        att_i=jnp.stack(ai_l), att_j=jnp.stack(aj_l),
        bias=jnp.stack(b_l), gamma=jnp.stack(g_l), beta=jnp.stack(be_l),
        w_post=uni(next(keys), (dim1, dim2), dim1 ** -0.5),
        b_post=uni(next(keys), (1, dim2), dim1 ** -0.5),
        w_out=uni(next(keys), (dim2, output_dim), dim2 ** -0.5),
        b_out=uni(next(keys), (1, output_dim), dim2 ** -0.5),
    )

    out = gatgnn_forward(params, xT, EA, S_src, S_tgt, deg, P, cnt, node_mask,
                         heads=heads, gc_dim=dim1, n_real=N, edge_tile=EDGE_TILE)
    out = jax.block_until_ready(out)
    assert out.shape == (B,)
    assert bool(jnp.all(jnp.isfinite(out)))
    print("KERNEL_OK")
</pallas_src>

<mosaic_0001>
module attributes {stable_mosaic.version = 11 : i64} {
  func.func @_gatgnn_kernel(%arg0: i32, %arg1: i32, %arg2: memref<16x128xf32, #tpu.memory_space<vmem>>, %arg3: memref<128x8xf32, #tpu.memory_space<vmem>>, %arg4: memref<128x128xbf16, #tpu.memory_space<vmem>>, %arg5: memref<128x128xbf16, #tpu.memory_space<vmem>>, %arg6: memref<1x128xf32, #tpu.memory_space<vmem>>, %arg7: memref<2x128xf32, #tpu.memory_space<vmem>>, %arg8: memref<2x1xf32, #tpu.memory_space<vmem>>, %arg9: memref<16x64xf32, #tpu.memory_space<vmem>>, %arg10: memref<64x1xf32, #tpu.memory_space<vmem>>, %arg11: memref<1x64x64xf32, #tpu.memory_space<vmem>>, %arg12: memref<1x8x64xf32, #tpu.memory_space<vmem>>, %arg13: memref<1x64x1xf32, #tpu.memory_space<vmem>>, %arg14: memref<1x64x1xf32, #tpu.memory_space<vmem>>, %arg15: memref<1x64x1xf32, #tpu.memory_space<vmem>>, %arg16: memref<1x64x1xf32, #tpu.memory_space<vmem>>, %arg17: memref<1x64x1xf32, #tpu.memory_space<vmem>>, %arg18: memref<1x128xf32, #tpu.memory_space<vmem>>, %arg19: memref<64x64xf32, #tpu.memory_space<vmem>>, %arg20: memref<1x64xf32, #tpu.memory_space<vmem>>, %arg21: memref<64x1xf32, #tpu.memory_space<vmem>>, %arg22: memref<1x1xf32, #tpu.memory_space<vmem>>, %arg23: memref<2x1xf32, #tpu.memory_space<vmem>>, %arg24: memref<64x128xf32, #tpu.memory_space<vmem>>, %arg25: memref<64x128xbf16, #tpu.memory_space<vmem>>, %arg26: memref<1x128xf32, #tpu.memory_space<vmem>>, %arg27: memref<1x128xf32, #tpu.memory_space<vmem>>, %arg28: memref<64x128xf32, #tpu.memory_space<vmem>>) attributes {dimension_semantics = [#tpu.dimension_semantics<arbitrary>, #tpu.dimension_semantics<arbitrary>], iteration_bounds = array<i64: 3, 1>, scalar_prefetch = 0 : i64, scratch_operands = 5 : i64, tpu.core_type = #tpu.core_type<tc>, window_params = [{pipeline_mode = #tpu.pipeline_mode<synchronous>, transform_indices = @transform_0, window_bounds = array<i64: 16, 128>}, {transform_indices = @transform_1, window_bounds = array<i64: 128, 8>}, {transform_indices = @transform_2, window_bounds = array<i64: 128, 128>}, {transform_indices = @transform_3, window_bounds = array<i64: 128, 128>}, {pipeline_mode = #tpu.pipeline_mode<synchronous>, transform_indices = @transform_4, window_bounds = array<i64: 1, 128>}, {pipeline_mode = #tpu.pipeline_mode<synchronous>, transform_indices = @transform_5, window_bounds = array<i64: 2, 128>}, {pipeline_mode = #tpu.pipeline_mode<synchronous>, transform_indices = @transform_6, window_bounds = array<i64: 2, 1>}, {pipeline_mode = #tpu.pipeline_mode<synchronous>, transform_indices = @transform_7, window_bounds = array<i64: 16, 64>}, {pipeline_mode = #tpu.pipeline_mode<synchronous>, transform_indices = @transform_8, window_bounds = array<i64: 64, 1>}, {transform_indices = @transform_9, window_bounds = array<i64: 1, 64, 64>}, {transform_indices = @transform_10, window_bounds = array<i64: 1, 8, 64>}, {transform_indices = @transform_11, window_bounds = array<i64: 1, 64, 1>}, {transform_indices = @transform_12, window_bounds = array<i64: 1, 64, 1>}, {transform_indices = @transform_13, window_bounds = array<i64: 1, 64, 1>}, {transform_indices = @transform_14, window_bounds = array<i64: 1, 64, 1>}, {transform_indices = @transform_15, window_bounds = array<i64: 1, 64, 1>}, {pipeline_mode = #tpu.pipeline_mode<synchronous>, transform_indices = @transform_16, window_bounds = array<i64: 1, 128>}, {pipeline_mode = #tpu.pipeline_mode<synchronous>, transform_indices = @transform_17, window_bounds = array<i64: 64, 64>}, {pipeline_mode = #tpu.pipeline_mode<synchronous>, transform_indices = @transform_18, window_bounds = array<i64: 1, 64>}, {pipeline_mode = #tpu.pipeline_mode<synchronous>, transform_indices = @transform_19, window_bounds = array<i64: 64, 1>}, {pipeline_mode = #tpu.pipeline_mode<synchronous>, transform_indices = @transform_20, window_bounds = array<i64: 1, 1>}, {pipeline_mode = #tpu.pipeline_mode<synchronous>, transform_indices = @transform_21, window_bounds = array<i64: 2, 1>}]} {
    %c0_i32 = arith.constant 0 : i32
    %0 = arith.cmpi eq, %arg0, %c0_i32 : i32
    %c0_i32_0 = arith.constant 0 : i32
    %1 = arith.cmpi eq, %arg1, %c0_i32_0 : i32
    %2 = arith.andi %0, %1 : i1
    %3 = arith.extui %2 : i1 to i32
    %c0_i32_1 = arith.constant 0 : i32
    %4 = arith.cmpi ne, %3, %c0_i32_1 : i32
    scf.if %4 {
      %c0_60 = arith.constant 0 : index
      %c0_61 = arith.constant 0 : index
      %88 = vector.load %arg9[%c0_60, %c0_61] : memref<16x64xf32, #tpu.memory_space<vmem>>, vector<16x64xf32>
      %c0_62 = arith.constant 0 : index
      %c0_63 = arith.constant 0 : index
      %89 = vector.load %arg2[%c0_62, %c0_63] : memref<16x128xf32, #tpu.memory_space<vmem>>, vector<16x128xf32>
      %cst_64 = arith.constant dense<0.000000e+00> : vector<64x128xf32>
      %90 = tpu.matmul %88, %89, %cst_64 {dimension_numbers = #tpu.dot_dimension_numbers<[0], [0], [1], [1], [0, 1, 1, 1], [], []>} : vector<16x64xf32>, vector<16x128xf32>, vector<64x128xf32> -> vector<64x128xf32>
      %c0_65 = arith.constant 0 : index
      %c0_66 = arith.constant 0 : index
      %91 = vector.load %arg10[%c0_65, %c0_66] : memref<64x1xf32, #tpu.memory_space<vmem>>, vector<64x1xf32>
      %92 = vector.broadcast %91 : vector<64x1xf32> to vector<64x128xf32>
      %93 = arith.addf %90, %92 : vector<64x128xf32>
      %cst_67 = arith.constant 0.000000e+00 : f32
      %94 = vector.broadcast %cst_67 : f32 to vector<64x128xf32>
      %95 = arith.maximumf %93, %94 : vector<64x128xf32>
      %c0_68 = arith.constant 0 : index
      %c0_69 = arith.constant 0 : index
      %96 = vector.load %arg24[%c0_68, %c0_69] : memref<64x128xf32, #tpu.memory_space<vmem>>, vector<64x128xf32>
      tpu.vector_store %arg24[%c0_68, %c0_69], %95 {strides = array<i32>} : memref<64x128xf32, #tpu.memory_space<vmem>>, vector<64x128xf32>,
    } else {
    }
    %c0_i32_2 = arith.constant 0 : i32
    %5 = arith.cmpi eq, %arg1, %c0_i32_2 : i32
    %6 = arith.extui %5 : i1 to i32
    %c0_i32_3 = arith.constant 0 : i32
    %7 = arith.cmpi ne, %6, %c0_i32_3 : i32
    scf.if %7 {
      %c0_60 = arith.constant 0 : index
      %c0_61 = arith.constant 0 : index
      %c0_62 = arith.constant 0 : index
      %88 = vector.load %arg11[%c0_60, %c0_61, %c0_62] : memref<1x64x64xf32, #tpu.memory_space<vmem>>, vector<1x64x64xf32>
      %89 = vector.shape_cast %88 : vector<1x64x64xf32> to vector<64x64xf32>
      %c0_63 = arith.constant 0 : index
      %c0_64 = arith.constant 0 : index
      %90 = vector.load %arg24[%c0_63, %c0_64] : memref<64x128xf32, #tpu.memory_space<vmem>>, vector<64x128xf32>
      %cst_65 = arith.constant dense<0.000000e+00> : vector<64x128xf32>
      %91 = tpu.matmul %89, %90, %cst_65 {dimension_numbers = #tpu.dot_dimension_numbers<[0], [0], [1], [1], [0, 1, 1, 1], [], []>} : vector<64x64xf32>, vector<64x128xf32>, vector<64x128xf32> -> vector<64x128xf32>
      %92 = arith.truncf %91 : vector<64x128xf32> to vector<64x128xbf16>
      %c0_66 = arith.constant 0 : index
      %c0_67 = arith.constant 0 : index
      %93 = vector.load %arg25[%c0_66, %c0_67] : memref<64x128xbf16, #tpu.memory_space<vmem>>, vector<64x128xbf16>
      tpu.vector_store %arg25[%c0_66, %c0_67], %92 {strides = array<i32>} : memref<64x128xbf16, #tpu.memory_space<vmem>>, vector<64x128xbf16>,
      %cst_68 = arith.constant 0.000000e+00 : f32
      %94 = vector.broadcast %cst_68 : f32 to vector<1x128xf32>
      %c0_69 = arith.constant 0 : index
      %c0_70 = arith.constant 0 : index
      %95 = vector.load %arg26[%c0_69, %c0_70] : memref<1x128xf32, #tpu.memory_space<vmem>>, vector<1x128xf32>
      tpu.vector_store %arg26[%c0_69, %c0_70], %94 {strides = array<i32>} : memref<1x128xf32, #tpu.memory_space<vmem>>, vector<1x128xf32>,
      %cst_71 = arith.constant 0.000000e+00 : f32
      %96 = vector.broadcast %cst_71 : f32 to vector<1x128xf32>
      %c0_72 = arith.constant 0 : index
      %c0_73 = arith.constant 0 : index
      %97 = vector.load %arg27[%c0_72, %c0_73] : memref<1x128xf32, #tpu.memory_space<vmem>>, vector<1x128xf32>
      tpu.vector_store %arg27[%c0_72, %c0_73], %96 {strides = array<i32>} : memref<1x128xf32, #tpu.memory_space<vmem>>, vector<1x128xf32>,
      %cst_74 = arith.constant 0.000000e+00 : f32
      %98 = vector.broadcast %cst_74 : f32 to vector<64x128xf32>
      %c0_75 = arith.constant 0 : index
      %c0_76 = arith.constant 0 : index
      %99 = vector.load %arg28[%c0_75, %c0_76] : memref<64x128xf32, #tpu.memory_space<vmem>>, vector<64x128xf32>
      tpu.vector_store %arg28[%c0_75, %c0_76], %98 {strides = array<i32>} : memref<64x128xf32, #tpu.memory_space<vmem>>, vector<64x128xf32>,
    } else {
    }
    %c0 = arith.constant 0 : index
    %c0_4 = arith.constant 0 : index
    %8 = vector.load %arg5[%c0, %c0_4] : memref<128x128xbf16, #tpu.memory_space<vmem>>, vector<128x128xbf16>
    %c0_5 = arith.constant 0 : index
    %c0_6 = arith.constant 0 : index
    %9 = vector.load %arg4[%c0_5, %c0_6] : memref<128x128xbf16, #tpu.memory_space<vmem>>, vector<128x128xbf16>
    %c0_7 = arith.constant 0 : index
    %c0_8 = arith.constant 0 : index
    %10 = vector.load %arg3[%c0_7, %c0_8] : memref<128x8xf32, #tpu.memory_space<vmem>>, vector<128x8xf32>
    %c0_9 = arith.constant 0 : index
    %c0_10 = arith.constant 0 : index
    %c0_11 = arith.constant 0 : index
    %11 = vector.load %arg12[%c0_9, %c0_10, %c0_11] : memref<1x8x64xf32, #tpu.memory_space<vmem>>, vector<1x8x64xf32>
    %12 = vector.shape_cast %11 : vector<1x8x64xf32> to vector<8x64xf32>
    %cst = arith.constant dense<0.000000e+00> : vector<128x64xf32>
    %13 = tpu.matmul %10, %12, %cst {dimension_numbers = #tpu.dot_dimension_numbers<[1], [0], [0], [1], [0, 0, 1, 1], [], []>} : vector<128x8xf32>, vector<8x64xf32>, vector<128x64xf32> -> vector<128x64xf32>
    %c0_12 = arith.constant 0 : index
    %c0_13 = arith.constant 0 : index
    %14 = vector.load %arg25[%c0_12, %c0_13] : memref<64x128xbf16, #tpu.memory_space<vmem>>, vector<64x128xbf16>
    %cst_14 = arith.constant dense<0.000000e+00> : vector<128x64xf32>
    %15 = tpu.matmul %8, %14, %cst_14 {dimension_numbers = #tpu.dot_dimension_numbers<[1], [1], [0], [0], [0, 0, 1, 0], [], []>} : vector<128x128xbf16>, vector<64x128xbf16>, vector<128x64xf32> -> vector<128x64xf32>
    %c0_15 = arith.constant 0 : index
    %c0_16 = arith.constant 0 : index
    %16 = vector.load %arg25[%c0_15, %c0_16] : memref<64x128xbf16, #tpu.memory_space<vmem>>, vector<64x128xbf16>
    %cst_17 = arith.constant dense<0.000000e+00> : vector<128x64xf32>
    %17 = tpu.matmul %9, %16, %cst_17 {dimension_numbers = #tpu.dot_dimension_numbers<[1], [1], [0], [0], [0, 0, 1, 0], [], []>} : vector<128x128xbf16>, vector<64x128xbf16>, vector<128x64xf32> -> vector<128x64xf32>
    %18 = arith.addf %15, %13 : vector<128x64xf32>
    %cst_18 = arith.constant 2.000000e+01 : f32
    %19 = vector.broadcast %cst_18 : f32 to vector<128x64xf32>
    %20 = arith.cmpf ogt, %18, %19 : vector<128x64xf32>
    %cst_19 = arith.constant 2.000000e+01 : f32
    %21 = vector.broadcast %cst_19 : f32 to vector<128x64xf32>
    %22 = arith.minimumf %18, %21 : vector<128x64xf32>
    %23 = math.exp %22 : vector<128x64xf32>
    %24 = math.log1p %23 : vector<128x64xf32>
    %25 = arith.select %20, %18, %24 : vector<128x64xi1>, vector<128x64xf32>
    %26 = arith.addf %17, %13 : vector<128x64xf32>
    %cst_20 = arith.constant 2.000000e+01 : f32
    %27 = vector.broadcast %cst_20 : f32 to vector<128x64xf32>
    %28 = arith.cmpf ogt, %26, %27 : vector<128x64xf32>
    %cst_21 = arith.constant 2.000000e+01 : f32
    %29 = vector.broadcast %cst_21 : f32 to vector<128x64xf32>
    %30 = arith.minimumf %26, %29 : vector<128x64xf32>
    %31 = math.exp %30 : vector<128x64xf32>
    %32 = math.log1p %31 : vector<128x64xf32>
    %33 = arith.select %28, %26, %32 : vector<128x64xi1>, vector<128x64xf32>
    %c0_22 = arith.constant 0 : index
    %c0_23 = arith.constant 0 : index
    %c0_24 = arith.constant 0 : index
    %34 = vector.load %arg13[%c0_22, %c0_23, %c0_24] : memref<1x64x1xf32, #tpu.memory_space<vmem>>, vector<1x64x1xf32>
    %35 = vector.shape_cast %34 : vector<1x64x1xf32> to vector<64x1xf32>
    %cst_25 = arith.constant dense<0.000000e+00> : vector<128x1xf32>
    %36 = tpu.matmul %25, %35, %cst_25 {dimension_numbers = #tpu.dot_dimension_numbers<[1], [0], [0], [1], [0, 0, 1, 1], [], []>} : vector<128x64xf32>, vector<64x1xf32>, vector<128x1xf32> -> vector<128x1xf32>
    %c0_26 = arith.constant 0 : index
    %c0_27 = arith.constant 0 : index
    %c0_28 = arith.constant 0 : index
    %37 = vector.load %arg14[%c0_26, %c0_27, %c0_28] : memref<1x64x1xf32, #tpu.memory_space<vmem>>, vector<1x64x1xf32>
    %38 = vector.shape_cast %37 : vector<1x64x1xf32> to vector<64x1xf32>
    %cst_29 = arith.constant dense<0.000000e+00> : vector<128x1xf32>
    %39 = tpu.matmul %33, %38, %cst_29 {dimension_numbers = #tpu.dot_dimension_numbers<[1], [0], [0], [1], [0, 0, 1, 1], [], []>} : vector<128x64xf32>, vector<64x1xf32>, vector<128x1xf32> -> vector<128x1xf32>
    %40 = arith.addf %36, %39 : vector<128x1xf32>
    %cst_30 = arith.constant 2.000000e+01 : f32
    %41 = vector.broadcast %cst_30 : f32 to vector<128x1xf32>
    %42 = arith.cmpf ogt, %40, %41 : vector<128x1xf32>
    %cst_31 = arith.constant 2.000000e+01 : f32
    %43 = vector.broadcast %cst_31 : f32 to vector<128x1xf32>
    %44 = arith.minimumf %40, %43 : vector<128x1xf32>
    %45 = math.exp %44 : vector<128x1xf32>
    %46 = math.log1p %45 : vector<128x1xf32>
    %47 = arith.select %42, %40, %46 : vector<128x1xi1>, vector<128x1xf32>
    %48 = arith.extf %8 : vector<128x128xbf16> to vector<128x128xf32>
    %49 = vector.broadcast %47 : vector<128x1xf32> to vector<128x128xf32>
    %50 = arith.mulf %48, %49 : vector<128x128xf32>
    %cst_32 = arith.constant dense<0xFF800000> : vector<128xf32>
    %51 = vector.multi_reduction <maximumf>, %50, %cst_32 [0] : vector<128x128xf32> to vector<128xf32>
    %52 = vector.shape_cast %51 : vector<128xf32> to vector<1x128xf32>
    %c0_33 = arith.constant 0 : index
    %c0_34 = arith.constant 0 : index
    %53 = vector.load %arg26[%c0_33, %c0_34] : memref<1x128xf32, #tpu.memory_space<vmem>>, vector<1x128xf32>
    %54 = arith.maximumf %53, %52 : vector<1x128xf32>
    %55 = arith.subf %53, %54 : vector<1x128xf32>
    %56 = math.exp %55 : vector<1x128xf32>
    %c0_35 = arith.constant 0 : index
    %c0_36 = arith.constant 0 : index
    %57 = vector.load %arg27[%c0_35, %c0_36] : memref<1x128xf32, #tpu.memory_space<vmem>>, vector<1x128xf32>
    %58 = arith.mulf %57, %56 : vector<1x128xf32>
    %c0_37 = arith.constant 0 : index
    %c0_38 = arith.constant 0 : index
    %59 = vector.load %arg27[%c0_37, %c0_38] : memref<1x128xf32, #tpu.memory_space<vmem>>, vector<1x128xf32>
    tpu.vector_store %arg27[%c0_37, %c0_38], %58 {strides = array<i32>} : memref<1x128xf32, #tpu.memory_space<vmem>>, vector<1x128xf32>,
    %c0_39 = arith.constant 0 : index
    %c0_40 = arith.constant 0 : index
    %60 = vector.load %arg28[%c0_39, %c0_40] : memref<64x128xf32, #tpu.memory_space<vmem>>, vector<64x128xf32>
    %61 = vector.broadcast %56 : vector<1x128xf32> to vector<64x128xf32>
    %62 = arith.mulf %60, %61 : vector<64x128xf32>
    %c0_41 = arith.constant 0 : index
    %c0_42 = arith.constant 0 : index
    %63 = vector.load %arg28[%c0_41, %c0_42] : memref<64x128xf32, #tpu.memory_space<vmem>>, vector<64x128xf32>
    tpu.vector_store %arg28[%c0_41, %c0_42], %62 {strides = array<i32>} : memref<64x128xf32, #tpu.memory_space<vmem>>, vector<64x128xf32>,
    %c0_43 = arith.constant 0 : index
    %c0_44 = arith.constant 0 : index
    %64 = vector.load %arg26[%c0_43, %c0_44] : memref<1x128xf32, #tpu.memory_space<vmem>>, vector<1x128xf32>
    tpu.vector_store %arg26[%c0_43, %c0_44], %54 {strides = array<i32>} : memref<1x128xf32, #tpu.memory_space<vmem>>, vector<1x128xf32>,
    %cst_45 = arith.constant dense<0.000000e+00> : vector<128x1xf32>
    %65 = tpu.matmul %48, %54, %cst_45 {dimension_numbers = #tpu.dot_dimension_numbers<[1], [1], [0], [0], [0, 0, 1, 0], [], []>} : vector<128x128xf32>, vector<1x128xf32>, vector<128x1xf32> -> vector<128x1xf32>
    %66 = arith.subf %47, %65 : vector<128x1xf32>
    %67 = math.exp %66 : vector<128x1xf32>
    %c0_46 = arith.constant 0 : index
    %c0_47 = arith.constant 0 : index
    %68 = vector.load %arg27[%c0_46, %c0_47] : memref<1x128xf32, #tpu.memory_space<vmem>>, vector<1x128xf32>
    %69 = arith.truncf %67 : vector<128x1xf32> to vector<128x1xbf16>
    %cst_48 = arith.constant dense<0.000000e+00> : vector<1x128xf32>
    %70 = tpu.matmul %69, %8, %cst_48 {dimension_numbers = #tpu.dot_dimension_numbers<[0], [0], [1], [1], [0, 1, 1, 1], [], []>} : vector<128x1xbf16>, vector<128x128xbf16>, vector<1x128xf32> -> vector<1x128xf32>
    %71 = arith.addf %68, %70 : vector<1x128xf32>
    %c0_49 = arith.constant 0 : index
    %c0_50 = arith.constant 0 : index
    %72 = vector.load %arg27[%c0_49, %c0_50] : memref<1x128xf32, #tpu.memory_space<vmem>>, vector<1x128xf32>
    tpu.vector_store %arg27[%c0_49, %c0_50], %71 {strides = array<i32>} : memref<1x128xf32, #tpu.memory_space<vmem>>, vector<1x128xf32>,
    %73 = vector.broadcast %67 : vector<128x1xf32> to vector<128x64xf32>
    %74 = arith.mulf %33, %73 : vector<128x64xf32>
    %c0_51 = arith.constant 0 : index
    %c0_52 = arith.constant 0 : index
    %75 = vector.load %arg28[%c0_51, %c0_52] : memref<64x128xf32, #tpu.memory_space<vmem>>, vector<64x128xf32>
    %76 = arith.truncf %74 : vector<128x64xf32> to vector<128x64xbf16>
    %cst_53 = arith.constant dense<0.000000e+00> : vector<64x128xf32>
    %77 = tpu.matmul %76, %8, %cst_53 {dimension_numbers = #tpu.dot_dimension_numbers<[0], [0], [1], [1], [0, 1, 1, 1], [], []>} : vector<128x64xbf16>, vector<128x128xbf16>, vector<64x128xf32> -> vector<64x128xf32>
    %78 = arith.addf %75, %77 : vector<64x128xf32>
    %c0_54 = arith.constant 0 : index
    %c0_55 = arith.constant 0 : index
    %79 = vector.load %arg28[%c0_54, %c0_55] : memref<64x128xf32, #tpu.memory_space<vmem>>, vector<64x128xf32>
    tpu.vector_store %arg28[%c0_54, %c0_55], %78 {strides = array<i32>} : memref<64x128xf32, #tpu.memory_space<vmem>>, vector<64x128xf32>,
    %c0_i32_56 = arith.constant 0 : i32
    %80 = arith.cmpi eq, %arg1, %c0_i32_56 : i32
    %81 = arith.extui %80 : i1 to i32
    %c0_i32_57 = arith.constant 0 : i32
    %82 = arith.cmpi ne, %81, %c0_i32_57 : i32
    scf.if %82 {
      %c0_60 = arith.constant 0 : index
      %c0_61 = arith.constant 0 : index
      %88 = vector.load %arg27[%c0_60, %c0_61] : memref<1x128xf32, #tpu.memory_space<vmem>>, vector<1x128xf32>
      %cst_62 = arith.constant 1.000000e-16 : f32
      %89 = vector.broadcast %cst_62 : f32 to vector<1x128xf32>
      %90 = arith.addf %88, %89 : vector<1x128xf32>
      %cst_63 = arith.constant 1.000000e+00 : f32
      %91 = vector.broadcast %cst_63 : f32 to vector<1x128xf32>
      %92 = arith.divf %91, %90 : vector<1x128xf32>
      %c0_64 = arith.constant 0 : index
      %c0_65 = arith.constant 0 : index
      %93 = vector.load %arg6[%c0_64, %c0_65] : memref<1x128xf32, #tpu.memory_space<vmem>>, vector<1x128xf32>
      %cst_66 = arith.constant 1.000000e+00 : f32
      %94 = vector.broadcast %cst_66 : f32 to vector<1x128xf32>
      %95 = arith.maximumf %93, %94 : vector<1x128xf32>
      %cst_67 = arith.constant 1.000000e+00 : f32
      %96 = vector.broadcast %cst_67 : f32 to vector<1x128xf32>
      %97 = arith.mulf %95, %96 : vector<1x128xf32>
      %cst_68 = arith.constant 1.000000e+00 : f32
      %98 = vector.broadcast %cst_68 : f32 to vector<1x128xf32>
      %99 = arith.divf %98, %97 : vector<1x128xf32>
      %c0_69 = arith.constant 0 : index
      %c0_70 = arith.constant 0 : index
      %100 = vector.load %arg28[%c0_69, %c0_70] : memref<64x128xf32, #tpu.memory_space<vmem>>, vector<64x128xf32>
      %101 = vector.broadcast %92 : vector<1x128xf32> to vector<64x128xf32>
      %102 = arith.mulf %100, %101 : vector<64x128xf32>
      %103 = vector.broadcast %99 : vector<1x128xf32> to vector<64x128xf32>
      %104 = arith.mulf %102, %103 : vector<64x128xf32>
      %c0_71 = arith.constant 0 : index
      %c0_72 = arith.constant 0 : index
      %c0_73 = arith.constant 0 : index
      %105 = vector.load %arg15[%c0_71, %c0_72, %c0_73] : memref<1x64x1xf32, #tpu.memory_space<vmem>>, vector<1x64x1xf32>
      %106 = vector.shape_cast %105 : vector<1x64x1xf32> to vector<64x1xf32>
      %107 = vector.broadcast %106 : vector<64x1xf32> to vector<64x128xf32>
      %108 = arith.addf %104, %107 : vector<64x128xf32>
      %c0_74 = arith.constant 0 : index
      %c0_75 = arith.constant 0 : index
      %109 = vector.load %arg18[%c0_74, %c0_75] : memref<1x128xf32, #tpu.memory_space<vmem>>, vector<1x128xf32>
      %110 = vector.broadcast %109 : vector<1x128xf32> to vector<64x128xf32>
      %111 = arith.mulf %108, %110 : vector<64x128xf32>
      %cst_76 = arith.constant dense<0.000000e+00> : vector<64xf32>
      %112 = vector.multi_reduction <add>, %111, %cst_76 [1] : vector<64x128xf32> to vector<64xf32>
      %113 = vector.shape_cast %112 : vector<64xf32> to vector<64x1xf32>
      %cst_77 = arith.constant 0.0833333358 : f32
      %114 = vector.broadcast %cst_77 : f32 to vector<64x1xf32>
      %115 = arith.mulf %113, %114 : vector<64x1xf32>
      %116 = vector.broadcast %115 : vector<64x1xf32> to vector<64x128xf32>
      %117 = arith.subf %108, %116 : vector<64x128xf32>
      %118 = vector.broadcast %109 : vector<1x128xf32> to vector<64x128xf32>
      %119 = arith.mulf %117, %118 : vector<64x128xf32>
      %120 = arith.mulf %119, %119 : vector<64x128xf32>
      %cst_78 = arith.constant dense<0.000000e+00> : vector<64xf32>
      %121 = vector.multi_reduction <add>, %120, %cst_78 [1] : vector<64x128xf32> to vector<64xf32>
      %122 = vector.shape_cast %121 : vector<64xf32> to vector<64x1xf32>
      %cst_79 = arith.constant 0.0833333358 : f32
      %123 = vector.broadcast %cst_79 : f32 to vector<64x1xf32>
      %124 = arith.mulf %122, %123 : vector<64x1xf32>
      %125 = vector.broadcast %115 : vector<64x1xf32> to vector<64x128xf32>
      %126 = arith.subf %108, %125 : vector<64x128xf32>
      %cst_80 = arith.constant 9.99999974E-6 : f32
      %127 = vector.broadcast %cst_80 : f32 to vector<64x1xf32>
      %128 = arith.addf %124, %127 : vector<64x1xf32>
      %129 = math.rsqrt %128 : vector<64x1xf32>
      %130 = vector.broadcast %129 : vector<64x1xf32> to vector<64x128xf32>
      %131 = arith.mulf %126, %130 : vector<64x128xf32>
      %c0_81 = arith.constant 0 : index
      %c0_82 = arith.constant 0 : index
      %c0_83 = arith.constant 0 : index
      %132 = vector.load %arg16[%c0_81, %c0_82, %c0_83] : memref<1x64x1xf32, #tpu.memory_space<vmem>>, vector<1x64x1xf32>
      %133 = vector.shape_cast %132 : vector<1x64x1xf32> to vector<64x1xf32>
      %134 = vector.broadcast %133 : vector<64x1xf32> to vector<64x128xf32>
      %135 = arith.mulf %131, %134 : vector<64x128xf32>
      %c0_84 = arith.constant 0 : index
      %c0_85 = arith.constant 0 : index
      %c0_86 = arith.constant 0 : index
      %136 = vector.load %arg17[%c0_84, %c0_85, %c0_86] : memref<1x64x1xf32, #tpu.memory_space<vmem>>, vector<1x64x1xf32>
      %137 = vector.shape_cast %136 : vector<1x64x1xf32> to vector<64x1xf32>
      %138 = vector.broadcast %137 : vector<64x1xf32> to vector<64x128xf32>
      %139 = arith.addf %135, %138 : vector<64x128xf32>
      %c0_87 = arith.constant 0 : index
      %c0_88 = arith.constant 0 : index
      %140 = vector.load %arg24[%c0_87, %c0_88] : memref<64x128xf32, #tpu.memory_space<vmem>>, vector<64x128xf32>
      tpu.vector_store %arg24[%c0_87, %c0_88], %139 {strides = array<i32>} : memref<64x128xf32, #tpu.memory_space<vmem>>, vector<64x128xf32>,
    } else {
    }
    %c2_i32 = arith.constant 2 : i32
    %83 = arith.cmpi eq, %arg0, %c2_i32 : i32
    %c0_i32_58 = arith.constant 0 : i32
    %84 = arith.cmpi eq, %arg1, %c0_i32_58 : i32
    %85 = arith.andi %83, %84 : i1
    %86 = arith.extui %85 : i1 to i32
    %c0_i32_59 = arith.constant 0 : i32
    %87 = arith.cmpi ne, %86, %c0_i32_59 : i32
    scf.if %87 {
      %c0_60 = arith.constant 0 : index
      %c0_61 = arith.constant 0 : index
      %88 = vector.load %arg7[%c0_60, %c0_61] : memref<2x128xf32, #tpu.memory_space<vmem>>, vector<2x128xf32>
      %c0_62 = arith.constant 0 : index
      %c0_63 = arith.constant 0 : index
      %89 = vector.load %arg24[%c0_62, %c0_63] : memref<64x128xf32, #tpu.memory_space<vmem>>, vector<64x128xf32>
      %cst_64 = arith.constant dense<0.000000e+00> : vector<2x64xf32>
      %90 = tpu.matmul %88, %89, %cst_64 {dimension_numbers = #tpu.dot_dimension_numbers<[1], [1], [0], [0], [0, 0, 1, 0], [], []>} : vector<2x128xf32>, vector<64x128xf32>, vector<2x64xf32> -> vector<2x64xf32>
      %c0_65 = arith.constant 0 : index
      %c0_66 = arith.constant 0 : index
      %91 = vector.load %arg8[%c0_65, %c0_66] : memref<2x1xf32, #tpu.memory_space<vmem>>, vector<2x1xf32>
      %92 = vector.broadcast %91 : vector<2x1xf32> to vector<2x64xf32>
      %93 = arith.divf %90, %92 : vector<2x64xf32>
      %c0_67 = arith.constant 0 : index
      %c0_68 = arith.constant 0 : index
      %94 = vector.load %arg19[%c0_67, %c0_68] : memref<64x64xf32, #tpu.memory_space<vmem>>, vector<64x64xf32>
      %cst_69 = arith.constant dense<0.000000e+00> : vector<2x64xf32>
      %95 = tpu.matmul %93, %94, %cst_69 {dimension_numbers = #tpu.dot_dimension_numbers<[1], [0], [0], [1], [0, 0, 1, 1], [], []>} : vector<2x64xf32>, vector<64x64xf32>, vector<2x64xf32> -> vector<2x64xf32>
      %c0_70 = arith.constant 0 : index
      %c0_71 = arith.constant 0 : index
      %96 = vector.load %arg20[%c0_70, %c0_71] : memref<1x64xf32, #tpu.memory_space<vmem>>, vector<1x64xf32>
      %97 = vector.broadcast %96 : vector<1x64xf32> to vector<2x64xf32>
      %98 = arith.addf %95, %97 : vector<2x64xf32>
      %cst_72 = arith.constant 0.000000e+00 : f32
      %99 = vector.broadcast %cst_72 : f32 to vector<2x64xf32>
      %100 = arith.maximumf %98, %99 : vector<2x64xf32>
      %c0_73 = arith.constant 0 : index
      %c0_74 = arith.constant 0 : index
      %101 = vector.load %arg21[%c0_73, %c0_74] : memref<64x1xf32, #tpu.memory_space<vmem>>, vector<64x1xf32>
      %cst_75 = arith.constant dense<0.000000e+00> : vector<2x1xf32>
      %102 = tpu.matmul %100, %101, %cst_75 {dimension_numbers = #tpu.dot_dimension_numbers<[1], [0], [0], [1], [0, 0, 1, 1], [], []>} : vector<2x64xf32>, vector<64x1xf32>, vector<2x1xf32> -> vector<2x1xf32>
      %c0_76 = arith.constant 0 : index
      %c0_77 = arith.constant 0 : index
      %103 = vector.load %arg22[%c0_76, %c0_77] : memref<1x1xf32, #tpu.memory_space<vmem>>, vector<1x1xf32>
      %104 = vector.broadcast %103 : vector<1x1xf32> to vector<2x1xf32>
      %105 = arith.addf %102, %104 : vector<2x1xf32>
      %c0_78 = arith.constant 0 : index
      %c0_79 = arith.constant 0 : index
      %106 = vector.load %arg23[%c0_78, %c0_79] : memref<2x1xf32, #tpu.memory_space<vmem>>, vector<2x1xf32>
      tpu.vector_store %arg23[%c0_78, %c0_79], %105 {strides = array<i32>} : memref<2x1xf32, #tpu.memory_space<vmem>>, vector<2x1xf32>,
    } else {
    }
    return
  }
  func.func @transform_0(%arg0: i32, %arg1: i32) -> (i32, i32) {
    %c0_i32 = arith.constant 0 : i32
    %c0_i32_0 = arith.constant 0 : i32
    %c0_i32_1 = arith.constant 0 : i32
    return %c0_i32, %c0_i32_0 : i32, i32
  }
  func.func @transform_1(%arg0: i32, %arg1: i32) -> (i32, i32) {
    %c0_i32 = arith.constant 0 : i32
    %c0_i32_0 = arith.constant 0 : i32
    return %arg1, %c0_i32 : i32, i32
  }
  func.func @transform_2(%arg0: i32, %arg1: i32) -> (i32, i32) {
    %c0_i32 = arith.constant 0 : i32
    %c0_i32_0 = arith.constant 0 : i32
    return %arg1, %c0_i32 : i32, i32
  }
  func.func @transform_3(%arg0: i32, %arg1: i32) -> (i32, i32) {
    %c0_i32 = arith.constant 0 : i32
    %c0_i32_0 = arith.constant 0 : i32
    return %arg1, %c0_i32 : i32, i32
  }
  func.func @transform_4(%arg0: i32, %arg1: i32) -> (i32, i32) {
    %c0_i32 = arith.constant 0 : i32
    %c0_i32_0 = arith.constant 0 : i32
    %c0_i32_1 = arith.constant 0 : i32
    return %c0_i32, %c0_i32_0 : i32, i32
  }
  func.func @transform_5(%arg0: i32, %arg1: i32) -> (i32, i32) {
    %c0_i32 = arith.constant 0 : i32
    %c0_i32_0 = arith.constant 0 : i32
    %c0_i32_1 = arith.constant 0 : i32
    return %c0_i32, %c0_i32_0 : i32, i32
  }
  func.func @transform_6(%arg0: i32, %arg1: i32) -> (i32, i32) {
    %c0_i32 = arith.constant 0 : i32
    %c0_i32_0 = arith.constant 0 : i32
    %c0_i32_1 = arith.constant 0 : i32
    return %c0_i32, %c0_i32_0 : i32, i32
  }
  func.func @transform_7(%arg0: i32, %arg1: i32) -> (i32, i32) {
    %c0_i32 = arith.constant 0 : i32
    %c0_i32_0 = arith.constant 0 : i32
    %c0_i32_1 = arith.constant 0 : i32
    return %c0_i32, %c0_i32_0 : i32, i32
  }
  func.func @transform_8(%arg0: i32, %arg1: i32) -> (i32, i32) {
    %c0_i32 = arith.constant 0 : i32
    %c0_i32_0 = arith.constant 0 : i32
    %c0_i32_1 = arith.constant 0 : i32
    return %c0_i32, %c0_i32_0 : i32, i32
  }
  func.func @transform_9(%arg0: i32, %arg1: i32) -> (i32, i32, i32) {
    %c0_i32 = arith.constant 0 : i32
    %c0_i32_0 = arith.constant 0 : i32
    %c0_i32_1 = arith.constant 0 : i32
    return %arg0, %c0_i32, %c0_i32_0 : i32, i32, i32
  }
  func.func @transform_10(%arg0: i32, %arg1: i32) -> (i32, i32, i32) {
    %c0_i32 = arith.constant 0 : i32
    %c0_i32_0 = arith.constant 0 : i32
    %c0_i32_1 = arith.constant 0 : i32
    return %arg0, %c0_i32, %c0_i32_0 : i32, i32, i32
  }
  func.func @transform_11(%arg0: i32, %arg1: i32) -> (i32, i32, i32) {
    %c0_i32 = arith.constant 0 : i32
    %c0_i32_0 = arith.constant 0 : i32
    %c0_i32_1 = arith.constant 0 : i32
    return %arg0, %c0_i32, %c0_i32_0 : i32, i32, i32
  }
  func.func @transform_12(%arg0: i32, %arg1: i32) -> (i32, i32, i32) {
    %c0_i32 = arith.constant 0 : i32
    %c0_i32_0 = arith.constant 0 : i32
    %c0_i32_1 = arith.constant 0 : i32
    return %arg0, %c0_i32, %c0_i32_0 : i32, i32, i32
  }
  func.func @transform_13(%arg0: i32, %arg1: i32) -> (i32, i32, i32) {
    %c0_i32 = arith.constant 0 : i32
    %c0_i32_0 = arith.constant 0 : i32
    %c0_i32_1 = arith.constant 0 : i32
    return %arg0, %c0_i32, %c0_i32_0 : i32, i32, i32
  }
  func.func @transform_14(%arg0: i32, %arg1: i32) -> (i32, i32, i32) {
    %c0_i32 = arith.constant 0 : i32
    %c0_i32_0 = arith.constant 0 : i32
    %c0_i32_1 = arith.constant 0 : i32
    return %arg0, %c0_i32, %c0_i32_0 : i32, i32, i32
  }
  func.func @transform_15(%arg0: i32, %arg1: i32) -> (i32, i32, i32) {
    %c0_i32 = arith.constant 0 : i32
    %c0_i32_0 = arith.constant 0 : i32
    %c0_i32_1 = arith.constant 0 : i32
    return %arg0, %c0_i32, %c0_i32_0 : i32, i32, i32
  }
  func.func @transform_16(%arg0: i32, %arg1: i32) -> (i32, i32) {
    %c0_i32 = arith.constant 0 : i32
    %c0_i32_0 = arith.constant 0 : i32
    %c0_i32_1 = arith.constant 0 : i32
    return %c0_i32, %c0_i32_0 : i32, i32
  }
  func.func @transform_17(%arg0: i32, %arg1: i32) -> (i32, i32) {
    %c0_i32 = arith.constant 0 : i32
    %c0_i32_0 = arith.constant 0 : i32
    %c0_i32_1 = arith.constant 0 : i32
    return %c0_i32, %c0_i32_0 : i32, i32
  }
  func.func @transform_18(%arg0: i32, %arg1: i32) -> (i32, i32) {
    %c0_i32 = arith.constant 0 : i32
    %c0_i32_0 = arith.constant 0 : i32
    %c0_i32_1 = arith.constant 0 : i32
    return %c0_i32, %c0_i32_0 : i32, i32
  }
  func.func @transform_19(%arg0: i32, %arg1: i32) -> (i32, i32) {
    %c0_i32 = arith.constant 0 : i32
    %c0_i32_0 = arith.constant 0 : i32
    %c0_i32_1 = arith.constant 0 : i32
    return %c0_i32, %c0_i32_0 : i32, i32
  }
  func.func @transform_20(%arg0: i32, %arg1: i32) -> (i32, i32) {
    %c0_i32 = arith.constant 0 : i32
    %c0_i32_0 = arith.constant 0 : i32
    %c0_i32_1 = arith.constant 0 : i32
    return %c0_i32, %c0_i32_0 : i32, i32
  }
  func.func @transform_21(%arg0: i32, %arg1: i32) -> (i32, i32) {
    %c0_i32 = arith.constant 0 : i32
    %c0_i32_0 = arith.constant 0 : i32
    %c0_i32_1 = arith.constant 0 : i32
    return %c0_i32, %c0_i32_0 : i32, i32
  }
}

</mosaic_0001>

<bundles_post_ra>
// kernel: tpu_custom_call.1
= control target key start
LH: loop header
LB: loop body
LE: loop exit
PB: predicated region body
PF: predicated region fallthrough
CT: control target
= control target key end

     0   :  { %s4337_s26 = smov 0   ;;  %s4339_s27 = smov 0   ;;  %s5524_s0 = inlined_call_operand.vmem [shape: f32[16,128], index: 0, kind: input, shape index: {}]   ;;  %s5525_s1 = inlined_call_operand.vmem [shape: f32[128,8], index: 1, kind: input, shape index: {}]   ;;  %s5526_s2 = inlined_call_operand.vmem [shape: bf16[128,128], index: 2, kind: input, shape index: {}]   ;;  %s5527_s3 = inlined_call_operand.vmem [shape: bf16[128,128], index: 3, kind: input, shape index: {}]   ;;  %s5528_s4 = inlined_call_operand.vmem [shape: f32[1,128], index: 4, kind: input, shape index: {}]   ;;  %s5529_s5 = inlined_call_operand.vmem [shape: f32[2,128], index: 5, kind: input, shape index: {}]   ;;  %s5530_s6 = inlined_call_operand.vmem [shape: f32[2,1], index: 6, kind: input, shape index: {}]   ;;  %s5531_s7 = inlined_call_operand.vmem [shape: f32[16,64], index: 7, kind: input, shape index: {}]   ;;  %s5532_s8 = inlined_call_operand.vmem [shape: f32[64,1], index: 8, kind: input, shape index: {}]   ;;  %s5533_s9 = inlined_call_operand.vmem [shape: f32[3,64,64], index: 9, kind: input, shape index: {}]   ;;  %s5534_s10 = inlined_call_operand.vmem [shape: f32[3,8,64], index: 10, kind: input, shape index: {}]   ;;  %s5535_s11 = inlined_call_operand.vmem [shape: f32[3,64,1], index: 11, kind: input, shape index: {}]   ;;  %s5536_s12 = inlined_call_operand.vmem [shape: f32[3,64,1], index: 12, kind: input, shape index: {}]   ;;  %s5537_s13 = inlined_call_operand.vmem [shape: f32[3,64,1], index: 13, kind: input, shape index: {}]   ;;  %s5538_s14 = inlined_call_operand.vmem [shape: f32[3,64,1], index: 14, kind: input, shape index: {}]   ;;  %s5539_s15 = inlined_call_operand.vmem [shape: f32[3,64,1], index: 15, kind: input, shape index: {}]   ;;  %s5540_s16 = inlined_call_operand.vmem [shape: f32[1,128], index: 16, kind: input, shape index: {}]   ;;  %s5541_s17 = inlined_call_operand.vmem [shape: f32[64,64], index: 17, kind: input, shape index: {}]   ;;  %s5542_s18 = inlined_call_operand.vmem [shape: f32[1,64], index: 18, kind: input, shape index: {}]   ;;  %s5543_s19 = inlined_call_operand.vmem [shape: f32[64,1], index: 19, kind: input, shape index: {}]   ;;  %s5544_s20 = inlined_call_operand.<no memory space> [shape: f32[1,1], index: 20, kind: input, shape index: {}]   ;;  %s5545_s21 = inlined_call_operand.vmem [shape: f32[2,1], index: 21, kind: output, shape index: {}]  }
   0x1   :  { %5570 = sst [smem:[#allocation25_spill]] %s5524_s0  ;;  %v26_v0 = vstv %s5544_s20 }
   0x2   :  { %5571 = sst [smem:[#allocation26_spill]] %s5525_s1  ;;  %27 = vst [vmem:[#allocation7] sm:$0x1] %v26_v0 }
   0x3   :  { %5572 = sst [smem:[#allocation27_spill]] %s5526_s2 }
   0x4   :  { %5573 = sst [smem:[#allocation28_spill]] %s5527_s3  ;;  %s4341_s3 = smov 0  }
   0x5   :  { %5574 = sst [smem:[#allocation29_spill]] %s5528_s4 }
   0x6   :  { %5575 = sst [smem:[#allocation30_spill]] %s5529_s5 }
   0x7   :  { %5576 = sst [smem:[#allocation31_spill]] %s5533_s9 }
   0x8   :  { %5577 = sst [smem:[#allocation32_spill]] %s5534_s10 }
   0x9   :  { %5578 = sst [smem:[#allocation33_spill]] %s5545_s21 }
   0xa LB: > { %5579 = sst [smem:[#allocation8_spill]] %s4212_s27  ;;  %s45_s20 = sadd.s32 1, %s4212_s27  ;;  %s4216_s3 = sphi %s4341_s3, %s33_s3   ;;  %s4212_s27 = sphi %s4339_s27, %s5691_s27   ;;  %s4208_s26 = sphi %s4337_s26, %s5690_s26  }
   0xb   : > { %5580 = sst [smem:[#allocation9_spill]] %s4216_s3  ;;  %p3651_p0 = scmp.ge.s32.totalorder %s4216_s3, 1 }
   0xc   : > { %p47_p1 = scmp.ge.s32.totalorder %s45_s20, 3  ;;  %p688_p2 = scmp.lt.s32.totalorder %s4216_s3, 4 }
   0xe   : > { %s5693_s20 = smov (%p47_p1, %s45_s20), 0  ;;  %p689_p3 = pnand %p3651_p0, %p688_p2 }
   0xf   : > { %5581 = sst [smem:[#allocation10_spill]] %s5693_s20 }
  0x10   : > { %692 = sbr.rel (%p689_p3) target bundleno = 2571 (0xa0b), region = 104 }
  0x15   : > { %p805_p4 = scmp.lt.s32.totalorder %s4208_s26, 2  ;;  %p840_p5 = scmp.eq.s32.totalorder %s4208_s26, 0 }
  0x16   : > { %s5582_s9 = sld [smem:[#allocation31_spill]]  ;;  %v846_v1 = vld [vmem:[%s5531_s7] sm:$0xff] (%p840_p5)  ;;  %v847_v4 = vld [vmem:[%s5531_s7 + $0x8] sm:$0xff] (%p840_p5)  ;;  %v4218_v6 = vmov (%p840_p5), 0   ;;  %vm930_vm0 = vcmask (%p840_p5), 130048   ;;  %v857_v12 = vld [vmem:[%s5532_s8 + $0x38] sm:$0xff] (%p840_p5) }
  0x17   : > { %s806_s28 = scalar_select %p805_p4, %s4208_s26, 2  ;;  %898 = vxpose.xlu0.b32.start [1/2] (short) (narrow) (%p840_p5), %v846_v1, 64  ;;  %v850_v5 = vld [vmem:[%s5532_s8] sm:$0xff] (%p840_p5)  ;;  %3936 = vset.pattern.permute.xlu1 (%p840_p5), %v4218_v6  ;;  %v851_v7 = vld [vmem:[%s5532_s8 + $0x8] sm:$0xff] (%p840_p5)  ;;  %v852_v14 = vld [vmem:[%s5532_s8 + $0x10] sm:$0xff] (%p840_p5) }
  0x18   : > { %s5583_s10 = sld [smem:[#allocation32_spill]]  ;;  %860 = vperm.xlu1 (%p840_p5), %3936, %v850_v5   ;;  %3937 = vset.pattern.permute.xlu2 (%p840_p5), %v4218_v6  ;;  %v855_v10 = vld [vmem:[%s5532_s8 + $0x28] sm:$0xff] (%p840_p5)  ;;  %v854_v13 = vld [vmem:[%s5532_s8 + $0x20] sm:$0xff] (%p840_p5)  ;;  %v853_v16 = vld [vmem:[%s5532_s8 + $0x18] sm:$0xff] (%p840_p5) }
  0x19   : > { %s3815_s29 = sshll.u32 %s806_s28, 6  ;;  %s3654_s0 = sshll.u32 %s806_s28, 3  ;;  %870 = vperm.xlu2 (%p840_p5), %3937, %v852_v14   ;;  %v856_v18 = vld [vmem:[%s5532_s8 + $0x30] sm:$0xff] (%p840_p5) }
  0x1a   : > { %s4373_s25 = scalar_lea.vmem %s5535_s11, %s3815_s29  ;;  %s4378_s3 = scalar_lea.vmem %s5536_s12, %s3815_s29 }
  0x1b   : > { %s4383_s4 = scalar_lea.vmem %s5537_s13, %s3815_s29  ;;  %s4393_s24 = scalar_lea.vmem %s5539_s15, %s3815_s29 }
  0x1c   : > { %s4363_s5 = scalar_lea.vmem %s5582_s9, %s3815_s29  ;;  %845 = sbr.rel (!%p840_p5) target bundleno = 381 (0x17d), region = 108 }
  0x1d   : > { %s5584_s21 = sld [smem:[#allocation25_spill]] (%p840_p5) }
  0x1e   : > { %s4368_s1 = scalar_lea.vmem %s5583_s10, %s3654_s0  ;;  %s4388_s0 = scalar_lea.vmem %s5538_s14, %s3815_s29 }
  0x1f   : > { %899 = vxpose.xlu0.b32.end [2/2] (short) (narrow) (%p840_p5), %v847_v4, 64 }
  0x20   : > { %865 = vperm.xlu1 (%p840_p5), %3936, %v851_v7  }
  0x21   : > { %875 = vperm.xlu2 %3937, %v853_v16  }
  0x23   : > { %v849_v2 = vld [vmem:[%s5584_s21 + $0x8] sm:$0xff]  ;;  %v848_v3 = vld [vmem:[%s5584_s21] sm:$0xff] }
  0x24   : > { %969 = vmatpush.msra.mxu0 %v849_v2  ;;  %3866 = vmatpush.msra.mxu1 %v849_v2 }
  0x25   : > { %3867 = vmatpush.msra.mxu2 %v849_v2  ;;  %3868 = vmatpush.msra.mxu3 %v849_v2 }
  0x26   : > { %970 = vmatpush.msra.mxu0 %v848_v3  ;;  %3869 = vmatpush.msra.mxu1 %v848_v3 }
  0x27   : > { %3870 = vmatpush.msra.mxu2 %v848_v3  ;;  %3871 = vmatpush.msra.mxu3 %v848_v3 }
  0x28   : > { %885 = vperm.xlu1 %3936, %v855_v10  }
  0x29   : > { %890 = vperm.xlu2 %3937, %v856_v18  }
  0x30   : > { %895 = vperm.xlu1 %3936, %v857_v12  }
  0x73   : > { %v871_v30 = vpop.permute.xlu2 %870 }
  0x7b   : > { %v876_v34 = vpop.permute.xlu2 %875 }
  0x83   : > { %v891_v46 = vpop.permute.xlu2 %890 }
  0x86   : > { %3938 = vset.pattern.permute.xlu0 %v4218_v6 }
  0x8a   : > { %v861_v22 = vpop.permute.xlu1 %860 }
  0x92   : > { %v866_v26 = vpop.permute.xlu1 %865 }
  0x9a   : > { %v886_v42 = vpop.permute.xlu1 %885 }
  0xa2   : > { %v896_v50 = vpop.permute.xlu1 %895 }
  0xbb   : > { %v914_v8 = vpop.trf.xlu0 }
  0xbc   : > { %3666 = vmatmul.msk.f32.vlgmr.msra.gmra.mxu0 %vm930_vm0, %v914_v8 }
  0xbd   : > { %880 = vperm.xlu0 %3938, %v854_v13  }
  0xc3   : > { %v915_v9 = vpop.trf.xlu0 }
  0xc4   : > { %3667 = vmatmul.msk.f32.gmra.mxu0 %vm930_vm0, %v915_v9 }
  0xcb   : > { %v916_v11 = vpop.trf.xlu0 }
  0xcc   : > { %3668 = vmatmul.msk.f32.vlgmr.msra.gmra.mxu1 %vm930_vm0, %v916_v11 }
  0xd3   : > { %v917_v15 = vpop.trf.xlu0 }
  0xd4   : > { %3669 = vmatmul.msk.f32.gmra.mxu1 %vm930_vm0, %v917_v15 }
  0xdb   : > { %v918_v17 = vpop.trf.xlu0 }
  0xdc   : > { %3670 = vmatmul.msk.f32.vlgmr.msra.gmra.mxu2 %vm930_vm0, %v918_v17 }
  0xe3   : > { %v919_v19 = vpop.trf.xlu0 }
  0xe4   : > { %3671 = vmatmul.msk.f32.gmra.mxu2 %vm930_vm0, %v919_v19 }
  0xeb   : > { %v920_v20 = vpop.trf.xlu0 }
  0xec   : > { %3672 = vmatmul.msk.f32.vlgmr.msra.gmra.mxu3 %vm930_vm0, %v920_v20 }
  0xf3   : > { %v921_v21 = vpop.trf.xlu0 }
  0xf4   : > { %3673 = vmatmul.msk.f32.gmra.mxu3 %vm930_vm0, %v921_v21 }
 0x12f   : > { %v881_v38 = vpop.permute.xlu0 %880 }
 0x139   : > { %v972_v23 = vpop.f32.mrf.mxu0 }
 0x13a   : > { %v973_v24 = vadd.f32 %v972_v23, %v861_v22 }
 0x13c   : > { %v996_v25 = vmax.f32 %v973_v24, 0.0 }
 0x13e   : > { %1004 = vst [vmem:[#allocation2 + $0x30] sm:$0xff] %v996_v25 }
 0x141   : > { %v975_v27 = vpop.f32.mrf.mxu0 }
 0x142   : > { %v976_v28 = vadd.f32 %v975_v27, %v866_v26 }
 0x144   : > { %v997_v29 = vmax.f32 %v976_v28, 0.0 }
 0x146   : > { %1005 = vst [vmem:[#allocation2] sm:$0xff] %v997_v29 }
 0x149   : > { %v978_v31 = vpop.f32.mrf.mxu1 }
 0x14a   : > { %v979_v32 = vadd.f32 %v978_v31, %v871_v30 }
 0x14c   : > { %v998_v33 = vmax.f32 %v979_v32, 0.0 }
 0x14e   : > { %1006 = vst [vmem:[#allocation2 + $0x18] sm:$0xff] %v998_v33 }
 0x151   : > { %v981_v35 = vpop.f32.mrf.mxu1 }
 0x152   : > { %v982_v36 = vadd.f32 %v981_v35, %v876_v34 }
 0x154   : > { %v999_v37 = vmax.f32 %v982_v36, 0.0 }
 0x156   : > { %1007 = vst [vmem:[#allocation2 + $0x10] sm:$0xff] %v999_v37 }
 0x15f   : > { %v984_v39 = vpop.f32.mrf.mxu2 }
 0x160   : > { %v985_v40 = vadd.f32 %v984_v39, %v881_v38 }
 0x162   : > { %v1000_v41 = vmax.f32 %v985_v40, 0.0 }
 0x164   : > { %1008 = vst [vmem:[#allocation2 + $0x8] sm:$0xff] %v1000_v41 }
 0x167   : > { %v987_v43 = vpop.f32.mrf.mxu2 }
 0x168   : > { %v988_v44 = vadd.f32 %v987_v43, %v886_v42 }
 0x16a   : > { %v1001_v45 = vmax.f32 %v988_v44, 0.0 }
 0x16c   : > { %1009 = vst [vmem:[#allocation2 + $0x20] sm:$0xff] %v1001_v45 }
 0x16f   : > { %v990_v47 = vpop.f32.mrf.mxu3 }
 0x170   : > { %v991_v48 = vadd.f32 %v990_v47, %v891_v46 }
 0x172   : > { %v1002_v49 = vmax.f32 %v991_v48, 0.0 }
 0x174   : > { %1010 = vst [vmem:[#allocation2 + $0x28] sm:$0xff] %v1002_v49 }
 0x177   : > { %v993_v51 = vpop.f32.mrf.mxu3 }
 0x178   : > { %v994_v52 = vadd.f32 %v993_v51, %v896_v50 }
 0x17a   : > { %v1003_v53 = vmax.f32 %v994_v52, 0.0 }
 0x17c   : > { %1011 = vst [vmem:[#allocation2 + $0x38] sm:$0xff] %v1003_v53 }
 0x17d PF: > { %v1015_v54 = vld [vmem:[%s4363_s5] sm:$0xff]  ;;  %v1016_v55 = vld [vmem:[%s4363_s5 + $0x8] sm:$0xff]  ;;  %v1017_v56 = vld [vmem:[%s4363_s5 + $0x10] sm:$0xff]  ;;  %vm1063_vm1 = vcmask 523264   ;;  %s5585_s9 = sld [smem:[#allocation26_spill]]  ;;  %vm1204_vm2 = vcmask 64512  }
 0x17e   : > { %1031 = vxpose.xlu0.b32.start [1/8] (short) (narrow) %v1015_v54, 64  ;;  %v1018_v57 = vld [vmem:[%s4363_s5 + $0x18] sm:$0xff]  ;;  %v1029_v59 = vld [vmem:[#allocation2 + $0x28] sm:$0xff]  ;;  %v1028_v60 = vld [vmem:[#allocation2 + $0x20] sm:$0xff]  ;;  %s5587_s30 = sld [smem:[#allocation27_spill]]  ;;  %p3363_p6 = scmp.eq.s32.totalorder %s4208_s26, 2 }
 0x17f   : > { %v1027_v61 = vld [vmem:[#allocation2 + $0x8] sm:$0xff]  ;;  %v1019_v62 = vld [vmem:[%s4363_s5 + $0x20] sm:$0xff]  ;;  %v1026_v63 = vld [vmem:[#allocation2 + $0x10] sm:$0xff] }
 0x180   : > { %v1025_v0 = vld [vmem:[#allocation2 + $0x18] sm:$0xff]  ;;  %v1024_v1 = vld [vmem:[#allocation2] sm:$0xff]  ;;  %v1023_v2 = vld [vmem:[#allocation2 + $0x30] sm:$0xff] }
 0x181   : > { %v1020_v3 = vld [vmem:[%s4363_s5 + $0x28] sm:$0xff]  ;;  %v1021_v4 = vld [vmem:[%s4363_s5 + $0x30] sm:$0xff]  ;;  %v1022_v5 = vld [vmem:[%s4363_s5 + $0x38] sm:$0xff]  ;;  %s5586_s5 = sld [smem:[#allocation28_spill]] }
 0x182   : > { %v1203_v18 = vld [vmem:[%s4368_s1] sm:$0xff]  ;;  %s5686_s1 = sld [smem:[#allocation29_spill]] }
 0x183   : > { %v1030_v58 = vld [vmem:[#allocation2 + $0x38] sm:$0xff]  ;;  %v1197_v19 = vld [vmem:[%s5585_s9 + $0x50] sm:$0xff]  ;;  %3872 = vmatpush.msra.mxu2 %v1203_v18  ;;  %1268 = vmatpush.msra.mxu1 %v1203_v18  ;;  %v1199_v24 = vld [vmem:[%s5585_s9 + $0x60] sm:$0xff] }
 0x184   : > { %1096 = vmatpush.msra.mxu0 %v1030_v58  ;;  %3692 = vmatmul.msk.f32.vlgmr.msra.gmra.mxu2 %vm1204_vm2, %v1197_v19  ;;  %v1198_v22 = vld [vmem:[%s5585_s9 + $0x58] sm:$0xff]  ;;  %v1200_v26 = vld [vmem:[%s5585_s9 + $0x68] sm:$0xff]  ;;  %v1201_v29 = vld [vmem:[%s5585_s9 + $0x70] sm:$0xff] }
 0x185   : > { %v1202_v31 = vld [vmem:[%s5585_s9 + $0x78] sm:$0xff]  ;;  %v1187_v34 = vld [vmem:[%s5585_s9] sm:$0xff]  ;;  %v1188_v36 = vld [vmem:[%s5585_s9 + $0x8] sm:$0xff] }
 0x186   : > { %1032 = vxpose.xlu0.b32.cont [2/8] (short) (narrow) %v1016_v55, 64  ;;  %1097 = vmatpush.msra.mxu0 %v1029_v59  ;;  %v1189_v38 = vld [vmem:[%s5585_s9 + $0x10] sm:$0xff]  ;;  %v1190_v40 = vld [vmem:[%s5585_s9 + $0x18] sm:$0xff]  ;;  %v3830_v42 = vld [vmem:[%s5587_s30] sm:$0xff] }
 0x187   : > { %3682 = vmatmul.msk.f32.vlgmr.msra.gmra.mxu1 %vm1204_vm2, %v1187_v34  ;;  %v4499_v41 = vld [vmem:[%s5586_s5] sm:$0xff]  ;;  %v1192_v44 = vld [vmem:[%s5585_s9 + $0x28] sm:$0xff]  ;;  %v1193_v47 = vld [vmem:[%s5585_s9 + $0x30] sm:$0xff] }
 0x188   : > { %1098 = vmatpush.msra.mxu0 %v1028_v60  ;;  %v1191_v43 = vld [vmem:[%s5585_s9 + $0x20] sm:$0xff]  ;;  %v3823_v45 = vld [vmem:[%s5586_s5 + $0x8] sm:$0xff]  ;;  %v1194_v48 = vld [vmem:[%s5585_s9 + $0x38] sm:$0xff] }
 0x189   : > { %v3831_v46 = vld [vmem:[%s5587_s30 + $0x8] sm:$0xff]  ;;  %v3824_v49 = vld [vmem:[%s5586_s5 + $0x10] sm:$0xff]  ;;  %v1195_v51 = vld [vmem:[%s5585_s9 + $0x40] sm:$0xff] }
 0x18a   : > { %1099 = vmatpush.msra.mxu0 %v1027_v61  ;;  %v3832_v50 = vld [vmem:[%s5587_s30 + $0x10] sm:$0xff]  ;;  %v1196_v52 = vld [vmem:[%s5585_s9 + $0x48] sm:$0xff]  ;;  %v3825_v53 = vld [vmem:[%s5586_s5 + $0x18] sm:$0xff] }
 0x18b   : > { %v3833_v54 = vld [vmem:[%s5587_s30 + $0x18] sm:$0xff]  ;;  %v1998_v58 = vld [vmem:[%s4373_s25 + $0x30] sm:$0xff]  ;;  %v2001_v19 = vld [vmem:[%s4378_s3 + $0x8] sm:$0xff] }
 0x18c   : > { %1100 = vmatpush.msra.mxu0 %v1026_v63  ;;  %3693 = vmatmul.msk.f32.gmra.mxu2 %vm1204_vm2, %v1198_v22  ;;  %v1999_v55 = vld [vmem:[%s4373_s25 + $0x38] sm:$0xff]  ;;  %v3828_v61 = vld [vmem:[%s5586_s5 + $0x30] sm:$0xff]  ;;  %v3827_v63 = vld [vmem:[%s5586_s5 + $0x28] sm:$0xff] }
 0x18d   : > { %2178 = vmatpush.msrb.mxu1 %v1999_v55  ;;  %v2007_v59 = vld [vmem:[%s4378_s3 + $0x38] sm:$0xff]  ;;  %v2002_v18 = vld [vmem:[%s4378_s3 + $0x10] sm:$0xff]  ;;  %v1992_v22 = vld [vmem:[%s4373_s25] sm:$0xff] }
 0x18e   : > { %1033 = vxpose.xlu0.b32.cont [3/8] (short) (narrow) %v1017_v56, 64  ;;  %1101 = vmatpush.msra.mxu0 %v1025_v0  ;;  %v3826_v56 = vld [vmem:[%s5586_s5 + $0x20] sm:$0xff]  ;;  %v3829_v60 = vld [vmem:[%s5586_s5 + $0x38] sm:$0xff]  ;;  %v3835_v0 = vld [vmem:[%s5587_s30 + $0x28] sm:$0xff] }
 0x18f   : > { %3683 = vmatmul.msk.f32.gmra.mxu1 %vm1204_vm2, %v1188_v36 }
 0x190   : > { %1102 = vmatpush.msra.mxu0 %v1024_v1  ;;  %2179 = vmatpush.msrb.mxu1 %v1998_v58  ;;  %v1997_v1 = vld [vmem:[%s4373_s25 + $0x28] sm:$0xff] }
 0x192   : > { %1103 = vmatpush.msra.mxu0 %v1023_v2  ;;  %v2006_v2 = vld [vmem:[%s4378_s3 + $0x30] sm:$0xff]  ;;  %2180 = vmatpush.msrb.mxu1 %v1997_v1 }
 0x194   : > { %3694 = vmatmul.msk.f32.gmra.mxu2 %vm1204_vm2, %v1199_v24  ;;  %2065 = vmatpush.msrb.mxu0 %v2007_v59 }
 0x196   : > { %1034 = vxpose.xlu0.b32.cont [4/8] (short) (narrow) %v1018_v57, 64  ;;  %v3834_v57 = vld [vmem:[%s5587_s30 + $0x20] sm:$0xff]  ;;  %2066 = vmatpush.msrb.mxu0 %v2006_v2 }
 0x197   : > { %3684 = vmatmul.msk.f32.gmra.mxu1 %vm1204_vm2, %v1189_v38 }
 0x19c   : > { %3695 = vmatmul.msk.f32.gmra.mxu2 %vm1204_vm2, %v1200_v26 }
 0x19e   : > { %1035 = vxpose.xlu0.b32.cont [5/8] (short) (narrow) %v1019_v62, 64 }
 0x19f   : > { %3685 = vmatmul.msk.f32.gmra.mxu1 %vm1204_vm2, %v1190_v40 }
 0x1a4   : > { %3696 = vmatmul.msk.f32.gmra.mxu2 %vm1204_vm2, %v1201_v29 }
 0x1a6   : > { %1036 = vxpose.xlu0.b32.cont [6/8] (short) (narrow) %v1020_v3, 64  ;;  %v1996_v3 = vld [vmem:[%s4373_s25 + $0x20] sm:$0xff] }
 0x1a7   : > { %3686 = vmatmul.msk.f32.gmra.mxu1 %vm1204_vm2, %v1191_v43 }
 0x1a8   : > { %2181 = vmatpush.msrb.mxu1 %v1996_v3 }
 0x1ac   : > { %3697 = vmatmul.msk.f32.gmra.mxu2 %vm1204_vm2, %v1202_v31 }
 0x1ae   : > { %1037 = vxpose.xlu0.b32.cont [7/8] (short) (narrow) %v1021_v4, 64 }
 0x1af   : > { %3687 = vmatmul.msk.f32.gmra.mxu1 %vm1204_vm2, %v1192_v44 }
 0x1b6   : > { %1038 = vxpose.xlu0.b32.end [8/8] (short) (narrow) %v1022_v5, 64  ;;  %v2005_v5 = vld [vmem:[%s4378_s3 + $0x28] sm:$0xff] }
 0x1b7   : > { %3688 = vmatmul.msk.f32.gmra.mxu1 %vm1204_vm2, %v1193_v47  ;;  %2067 = vmatpush.msrb.mxu0 %v2005_v5 }
 0x1bf   : > { %3689 = vmatmul.msk.f32.gmra.mxu1 %vm1204_vm2, %v1194_v48 }
 0x1c7   : > { %3690 = vmatmul.msk.f32.gmra.mxu1 %vm1204_vm2, %v1195_v51 }
 0x1cf   : > { %3691 = vmatmul.msk.f32.gmra.mxu1 %vm1204_vm2, %v1196_v52 }
 0x207   : > { %v4562_v62 = vpop.f32.mrf.mxu2 }
 0x20f   : > { %v4573_v4 = vpop.f32.mrf.mxu2 }
 0x222   : > { %v1047_v6 = vpop.trf.xlu0 }
 0x223   : > { %3674 = vmatmul.msk.f32.vlgmr.msra.gmra.mxu0 %vm1063_vm1, %v1047_v6  ;;  %v4576_v6 = vpop.f32.mrf.mxu2 }
 0x22a   : > { %v1048_v7 = vpop.trf.xlu0 }
 0x22b   : > { %3675 = vmatmul.msk.f32.gmra.mxu0 %vm1063_vm1, %v1048_v7  ;;  %v3836_v7 = vld [vmem:[%s5587_s30 + $0x30] sm:$0xff] }
 0x232   : > { %v1049_v8 = vpop.trf.xlu0 }
 0x233   : > { %3676 = vmatmul.msk.f32.gmra.mxu0 %vm1063_vm1, %v1049_v8  ;;  %v4583_v8 = vpop.f32.mrf.mxu2 }
 0x23a   : > { %v1050_v9 = vpop.trf.xlu0 }
 0x23b   : > { %3677 = vmatmul.msk.f32.gmra.mxu0 %vm1063_vm1, %v1050_v9  ;;  %v2004_v9 = vld [vmem:[%s4378_s3 + $0x20] sm:$0xff] }
 0x23c   : > { %2068 = vmatpush.msrb.mxu0 %v2004_v9 }
 0x242   : > { %v1051_v10 = vpop.trf.xlu0 }
 0x243   : > { %3678 = vmatmul.msk.f32.gmra.mxu0 %vm1063_vm1, %v1051_v10  ;;  %v1995_v10 = vld [vmem:[%s4373_s25 + $0x18] sm:$0xff] }
 0x244   : > { %2182 = vmatpush.msrb.mxu1 %v1995_v10 }
 0x24a   : > { %v1052_v11 = vpop.trf.xlu0 }
 0x24b   : > { %3679 = vmatmul.msk.f32.gmra.mxu0 %vm1063_vm1, %v1052_v11  ;;  %v3837_v11 = vld [vmem:[%s5587_s30 + $0x38] sm:$0xff] }
 0x252   : > { %v1053_v12 = vpop.trf.xlu0 }
 0x253   : > { %3680 = vmatmul.msk.f32.gmra.mxu0 %vm1063_vm1, %v1053_v12  ;;  %v1270_v12 = vpop.f32.mrf.mxu1 }
 0x25a   : > { %v1054_v13 = vpop.trf.xlu0 }
 0x25b   : > { %3681 = vmatmul.msk.f32.gmra.mxu0 %vm1063_vm1, %v1054_v13  ;;  %v4590_v13 = vpop.f32.mrf.mxu2 }
 0x2a0   : > { %v1105_v14 = vpop.f32.mrf.mxu0 }
 0x2a8   : > { %v1108_v15 = vpop.f32.mrf.mxu0 }
 0x2a9   : > { %v3846_v16 = vpack.c.bf16 %v1108_v15, %v1105_v14  ;;  %v2003_v14 = vld [vmem:[%s4378_s3 + $0x18] sm:$0xff]  ;;  %v1994_v15 = vld [vmem:[%s4373_s25 + $0x10] sm:$0xff] }
 0x2aa   : > { %2069 = vmatpush.msrb.mxu0 %v2003_v14  ;;  %2183 = vmatpush.msrb.mxu1 %v1994_v15 }
 0x2ab   : > { %3847 = vst [vmem:[#allocation3] sm:$0xff] %v3846_v16   ;;  %v1273_v16 = vpop.f32.mrf.mxu1 }
 0x2ac   : > { %2070 = vmatpush.msrb.mxu0 %v2002_v18 }
 0x2ae   : > { %2071 = vmatpush.msrb.mxu0 %v2001_v19 }
 0x2b0   : > { %v1111_v17 = vpop.f32.mrf.mxu0 }
 0x2b2   : > { %v3838_v39 = vld [vmem:[#allocation3] sm:$0xff] }
 0x2b8   : > { %v1114_v20 = vpop.f32.mrf.mxu0 }
 0x2b9   : > { %v3851_v21 = vpack.c.bf16 %v1114_v20, %v1111_v17  ;;  %v4594_v17 = vpop.f32.mrf.mxu2  ;;  %v1993_v20 = vld [vmem:[%s4373_s25 + $0x8] sm:$0xff]  ;;  %s5687_s25 = sld [smem:[#allocation30_spill]] (%p3363_p6) }
 0x2ba   : > { %2184 = vmatpush.msrb.mxu1 %v1993_v20 }
 0x2bb   : > { %3863 = vst [vmem:[#allocation3 + $0x18] sm:$0xff] %v3851_v21   ;;  %v2000_v21 = vld [vmem:[%s4378_s3] sm:$0xff] }
 0x2bc   : > { %2072 = vmatpush.msrb.mxu0 %v2000_v21  ;;  %2185 = vmatpush.msrb.mxu1 %v1992_v22 }
 0x2c0   : > { %v1117_v23 = vpop.f32.mrf.mxu0 }
 0x2c2   : > { %v3839_v37 = vld [vmem:[#allocation3 + $0x18] sm:$0xff] }
 0x2c8   : > { %v1120_v25 = vpop.f32.mrf.mxu0 }
 0x2c9   : > { %v3856_v27 = vpack.c.bf16 %v1120_v25, %v1117_v23  ;;  %v1276_v23 = vpop.f32.mrf.mxu1 }
 0x2cb   : > { %3864 = vst [vmem:[#allocation3 + $0x10] sm:$0xff] %v3856_v27  }
 0x2d0   : > { %v1123_v28 = vpop.f32.mrf.mxu0 }
 0x2d1   : > { %v1279_v36 = vpop.f32.mrf.mxu1 }
 0x2d2   : > { %v3840_v35 = vld [vmem:[#allocation3 + $0x10] sm:$0xff] }
 0x2d8   : > { %v1126_v30 = vpop.f32.mrf.mxu0 }
 0x2d9   : > { %v3861_v32 = vpack.c.bf16 %v1126_v30, %v1123_v28 }
 0x2db   : > { %3865 = vst [vmem:[#allocation3 + $0x8] sm:$0xff] %v3861_v32  }
 0x2e2   : > { %v3841_v33 = vld [vmem:[#allocation3 + $0x8] sm:$0xff] }
 0x2e3   : > { %1402 = vmatpush.bf16.xpose.msra.mxu2 %v3841_v33  ;;  %1723 = vmatpush.bf16.xpose.msra.mxu3 %v3841_v33 }
 0x2eb   : > { %1403 = vmatpush.bf16.xpose.msra.mxu2 %v3840_v35  ;;  %1724 = vmatpush.bf16.xpose.msra.mxu3 %v3840_v35 }
 0x2f3   : > { %1404 = vmatpush.bf16.xpose.msra.mxu2 %v3839_v37  ;;  %1725 = vmatpush.bf16.xpose.msra.mxu3 %v3839_v37 }
 0x2fb   : > { %1405 = vmatpush.bf16.xpose.msra.mxu2 %v3838_v39  ;;  %1726 = vmatpush.bf16.xpose.msra.mxu3 %v3838_v39 }
 0x302   : > { %1406 = vmatmul.bf16.vlgmr.msra.gmra.mxu2 %v4499_v41  ;;  %1727 = vmatmul.bf16.vlgmr.msra.gmra.mxu3 %v3830_v42 }
 0x303   : > { %2752 = vmatpush.bf16.msra.mxu2 %v3829_v60  ;;  %2895 = vmatpush.bf16.msra.mxu3 %v3829_v60 }
 0x307   : > { %2753 = vmatpush.bf16.msra.mxu2 %v3828_v61  ;;  %2896 = vmatpush.bf16.msra.mxu3 %v3828_v61 }
 0x30b   : > { %2754 = vmatpush.bf16.msra.mxu2 %v3827_v63  ;;  %2897 = vmatpush.bf16.msra.mxu3 %v3827_v63 }
 0x30f   : > { %2755 = vmatpush.bf16.msra.mxu2 %v3826_v56  ;;  %2898 = vmatpush.bf16.msra.mxu3 %v3826_v56 }
 0x312   : > { %1411 = vmatmul.bf16.gmra.mxu2 %v3823_v45  ;;  %1732 = vmatmul.bf16.gmra.mxu3 %v3831_v46 }
 0x313   : > { %2756 = vmatpush.bf16.msra.mxu2 %v3825_v53  ;;  %2899 = vmatpush.bf16.msra.mxu3 %v3825_v53 }
 0x317   : > { %2757 = vmatpush.bf16.msra.mxu2 %v3824_v49  ;;  %2900 = vmatpush.bf16.msra.mxu3 %v3824_v49 }
 0x31b   : > { %2758 = vmatpush.bf16.msra.mxu2 %v3823_v45  ;;  %2901 = vmatpush.bf16.msra.mxu3 %v3823_v45 }
 0x31f   : > { %2759 = vmatpush.bf16.msra.mxu2 %v4499_v41  ;;  %2902 = vmatpush.bf16.msra.mxu3 %v4499_v41 }
 0x322   : > { %1416 = vmatmul.bf16.gmra.mxu2 %v3824_v49  ;;  %1737 = vmatmul.bf16.gmra.mxu3 %v3832_v50 }
 0x332   : > { %1421 = vmatmul.bf16.gmra.mxu2 %v3825_v53  ;;  %1742 = vmatmul.bf16.gmra.mxu3 %v3833_v54 }
 0x342   : > { %1426 = vmatmul.bf16.gmra.mxu2 %v3826_v56  ;;  %1747 = vmatmul.bf16.gmra.mxu3 %v3834_v57  ;;  %v4619_v57 = vpop.f32.mrf.mxu1 }
 0x352   : > { %1431 = vmatmul.bf16.gmra.mxu2 %v3827_v63  ;;  %1752 = vmatmul.bf16.gmra.mxu3 %v3835_v0 }
 0x362   : > { %1436 = vmatmul.bf16.gmra.mxu2 %v3828_v61  ;;  %1757 = vmatmul.bf16.gmra.mxu3 %v3836_v7 }
 0x372   : > { %1441 = vmatmul.bf16.gmra.mxu2 %v3829_v60  ;;  %1762 = vmatmul.bf16.gmra.mxu3 %v3837_v11 }
 0x385   : > { %v1407_v24 = vpop.f32.mrf.mxu2  ;;  %v1728_v25 = vpop.f32.mrf.mxu3 }
 0x386   : > { %v4601_v26 = vadd.f32 %v1407_v24, %v1270_v12  ;;  %v4603_v27 = vadd.f32 %v1728_v25, %v1270_v12 }
 0x388   : > { %v1463_v28 = vmin.f32 %v4601_v26, 20.0  ;;  %v1784_v29 = vmin.f32 %v4603_v27, 20.0  ;;  %vm1447_vm3 = vcmp.gt.f32.partialorder %v4601_v26, 20.0  ;;  %vm1768_vm4 = vcmp.gt.f32.partialorder %v4603_v27, 20.0 }
 0x38a   : > { %v1479_v30 = vmul.f32 1.442695, %v1463_v28  ;;  %v1800_v31 = vmul.f32 1.442695, %v1784_v29 }
 0x38c   : > { %3943 = vpow2.f32 %v1479_v30 }
 0x38d   : > { %3945 = vpow2.f32 %v1800_v31  ;;  %v1409_v32 = vpop.f32.mrf.mxu2  ;;  %v1730_v33 = vpop.f32.mrf.mxu3 }
 0x38e   : > { %v4607_v34 = vadd.f32 %v1409_v32, %v1273_v16  ;;  %v4609_v35 = vadd.f32 %v1730_v33, %v1273_v16 }
 0x390   : > { %v1464_v37 = vmin.f32 %v4607_v34, 20.0  ;;  %v1785_v38 = vmin.f32 %v4609_v35, 20.0  ;;  %vm1769_vm7 = vcmp.gt.f32.partialorder %v4609_v35, 20.0  ;;  %vm1448_vm8 = vcmp.gt.f32.partialorder %v4607_v34, 20.0 }
 0x392   : > { %v3944_v39 = vpop.eup %3943  ;;  %v1481_v40 = vmul.f32 1.442695, %v1464_v37  ;;  %v1802_v41 = vmul.f32 1.442695, %v1785_v38  ;;  %v1285_v37 = vpop.f32.mrf.mxu1 }
 0x393   : > { %v3946_v42 = vpop.eup %3945  ;;  %v1511_v43 = vadd.f32 1.0, %v3944_v39  ;;  %v1514_v44 = vmul.f32 -0.5, %v3944_v39  ;;  %v1517_v51 = vand.u32 2147483647, %v3944_v39 }
 0x394   : > { %3947 = vpow2.f32 %v1481_v40  ;;  %v1832_v45 = vadd.f32 1.0, %v3946_v42  ;;  %v1835_v46 = vmul.f32 -0.5, %v3946_v42  ;;  %v1838_v52 = vand.u32 2147483647, %v3946_v42 }
 0x395   : > { %3949 = vpow2.f32 %v1802_v41  ;;  %v1412_v47 = vpop.f32.mrf.mxu2  ;;  %v1733_v48 = vpop.f32.mrf.mxu3  ;;  %v1515_v53 = vadd.f32 1.0, %v1514_v44  ;;  %vm4623_vm5 = vcmp.lt.f32.partialorder %v1517_v51, 0.0004427343 }
 0x396   : > { %v4613_v49 = vadd.f32 %v1412_v47, %v1276_v23  ;;  %v4615_v50 = vadd.f32 %v1733_v48, %v1276_v23  ;;  %3951 = vlog2.f32 %v1832_v45  ;;  %v1836_v56 = vadd.f32 1.0, %v1835_v46 }
 0x397   : > { %3953 = vlog2.f32 %v1511_v43  ;;  %vm4627_vm6 = vcmp.lt.f32.partialorder %v1838_v52, 0.0004427343  ;;  %v1516_v1 = vmul.f32 %v3944_v39, %v1515_v53 }
 0x398   : > { %v1465_v54 = vmin.f32 %v4613_v49, 20.0  ;;  %v1786_v55 = vmin.f32 %v4615_v50, 20.0  ;;  %v1837_v7 = vmul.f32 %v3946_v42, %v1836_v56  ;;  %vm1770_vm11 = vcmp.gt.f32.partialorder %v4615_v50, 20.0 }
 0x399   : > { %vm1449_vm12 = vcmp.gt.f32.partialorder %v4613_v49, 20.0 }
 0x39a   : > { %v3948_v58 = vpop.eup %3947  ;;  %v1483_v59 = vmul.f32 1.442695, %v1465_v54  ;;  %v1804_v60 = vmul.f32 1.442695, %v1786_v55 }
 0x39b   : > { %v3950_v63 = vpop.eup %3949  ;;  %v1520_v2 = vadd.f32 1.0, %v3948_v58  ;;  %v1523_v3 = vmul.f32 -0.5, %v3948_v58  ;;  %v1526_v18 = vand.u32 2147483647, %v3948_v58 }
 0x39c   : > { %v3952_v5 = vpop.eup %3951  ;;  %3955 = vpow2.f32 %v1483_v59  ;;  %v1841_v9 = vadd.f32 1.0, %v3950_v63  ;;  %v1844_v10 = vmul.f32 -0.5, %v3950_v63  ;;  %v1847_v16 = vand.u32 2147483647, %v3950_v63 }
 0x39d   : > { %v3954_v11 = vpop.eup %3953  ;;  %3957 = vpow2.f32 %v1804_v60  ;;  %v1414_v12 = vpop.f32.mrf.mxu2  ;;  %v1834_v15 = vmul.f32 0.6931472, %v3952_v5  ;;  %v1524_v24 = vadd.f32 1.0, %v1523_v3  ;;  %vm4654_vm9 = vcmp.lt.f32.partialorder %v1526_v18, 0.0004427343 }
 0x39e   : > { %v1735_v14 = vpop.f32.mrf.mxu3  ;;  %v4631_v19 = vadd.f32 %v1414_v12, %v1279_v36  ;;  %v1513_v21 = vmul.f32 0.6931472, %v3954_v11  ;;  %3959 = vlog2.f32 %v1841_v9  ;;  %v1845_v23 = vadd.f32 1.0, %v1844_v10 }
 0x39f   : > { %v4633_v20 = vadd.f32 %v1735_v14, %v1279_v36  ;;  %v1840_v22 = vsel %vm4627_vm6, %v1837_v7, %v1834_v15  ;;  %3961 = vlog2.f32 %v1520_v2  ;;  %vm4658_vm10 = vcmp.lt.f32.partialorder %v1847_v16, 0.0004427343  ;;  %v1288_v15 = vpop.f32.mrf.mxu1 }
 0x3a0   : > { %v1466_v25 = vmin.f32 %v4631_v19, 20.0  ;;  %v4642_v29 = vsel %vm1768_vm4, %v4603_v27, %v1840_v22  ;;  %v1519_v30 = vsel %vm4623_vm5, %v1516_v1, %v1513_v21  ;;  %v1846_v39 = vmul.f32 %v3950_v63, %v1845_v23 }
 0x3a1   : > { %v1787_v28 = vmin.f32 %v4633_v20, 20.0  ;;  %5592 = vst [vmem:[#allocation11_spill] sm:$0xff] %v4642_v29  ;;  %3778 = vmatmul.msk.f32.vlgmr.msrb.gmra.mxu0 %vm1063_vm1, %v4642_v29  ;;  %v1655_v31 = vsel %vm1447_vm3, %v4601_v26, %v1519_v30  ;;  %v1525_v43 = vmul.f32 %v3948_v58, %v1524_v24  ;;  %vm1771_vm15 = vcmp.gt.f32.partialorder %v4633_v20, 20.0 }
 0x3a2   : > { %v3956_v32 = vpop.eup %3955  ;;  %v1485_v33 = vmul.f32 1.442695, %v1466_v25  ;;  %3794 = vmatmul.msk.f32.vlgmr.msrb.gmra.mxu1 %vm1063_vm1, %v1655_v31  ;;  %vm1450_vm0 = vcmp.gt.f32.partialorder %v4631_v19, 20.0 }
 0x3a3   : > { %v1806_v36 = vmul.f32 1.442695, %v1787_v28  ;;  %v3958_v38 = vpop.eup %3957  ;;  %v1529_v26 = vadd.f32 1.0, %v3956_v32  ;;  %v1532_v41 = vmul.f32 -0.5, %v3956_v32  ;;  %v1535_v53 = vand.u32 2147483647, %v3956_v32 }
 0x3a4   : > { %v3960_v42 = vpop.eup %3959  ;;  %3963 = vpow2.f32 %v1485_v33  ;;  %v1850_v44 = vadd.f32 1.0, %v3958_v38  ;;  %v1853_v45 = vmul.f32 -0.5, %v3958_v38  ;;  %v1856_v52 = vand.u32 2147483647, %v3958_v38 }
 0x3a5   : > { %v3962_v46 = vpop.eup %3961  ;;  %3965 = vpow2.f32 %v1806_v36  ;;  %v1417_v47 = vpop.f32.mrf.mxu2  ;;  %v1843_v51 = vmul.f32 0.6931472, %v3960_v42  ;;  %v1533_v60 = vadd.f32 1.0, %v1532_v41  ;;  %vm4687_vm13 = vcmp.lt.f32.partialorder %v1535_v53, 0.0004427343 }
 0x3a6   : > { %v1738_v48 = vpop.f32.mrf.mxu3  ;;  %v4663_v54 = vadd.f32 %v1417_v47, %v4619_v57  ;;  %v1522_v56 = vmul.f32 0.6931472, %v3962_v46  ;;  %3967 = vlog2.f32 %v1850_v44  ;;  %v1854_v59 = vadd.f32 1.0, %v1853_v45 }
 0x3a7   : > { %v4666_v55 = vadd.f32 %v1738_v48, %v4619_v57  ;;  %v1849_v58 = vsel %vm4658_vm10, %v1846_v39, %v1843_v51  ;;  %3969 = vlog2.f32 %v1529_v26  ;;  %vm4691_vm14 = vcmp.lt.f32.partialorder %v1856_v52, 0.0004427343 }
 0x3a8   : > { %v1467_v61 = vmin.f32 %v4663_v54, 20.0  ;;  %v4675_v0 = vsel %vm1769_vm7, %v4609_v35, %v1849_v58  ;;  %v1528_v57 = vsel %vm4654_vm9, %v1525_v43, %v1522_v56  ;;  %v1855_v9 = vmul.f32 %v3958_v38, %v1854_v59  ;;  %v1291_v35 = vpop.f32.mrf.mxu1 }
 0x3a9   : > { %v1788_v63 = vmin.f32 %v4666_v55, 20.0  ;;  %5597 = vst [vmem:[#allocation12_spill] sm:$0xff] %v4675_v0  ;;  %3779 = vmatmul.msk.f32.gmra.mxu0 %vm1063_vm1, %v4675_v0  ;;  %v1656_v1 = vsel %vm1448_vm8, %v4607_v34, %v1528_v57  ;;  %v1534_v14 = vmul.f32 %v3956_v32, %v1533_v60  ;;  %vm1772_vm4 = vcmp.gt.f32.partialorder %v4666_v55, 20.0 }
 0x3aa   : > { %v3964_v2 = vpop.eup %3963  ;;  %v1487_v3 = vmul.f32 1.442695, %v1467_v61  ;;  %3795 = vmatmul.msk.f32.gmra.mxu1 %vm1063_vm1, %v1656_v1  ;;  %vm1451_vm5 = vcmp.gt.f32.partialorder %v4663_v54, 20.0 }
 0x3ab   : > { %v1808_v5 = vmul.f32 1.442695, %v1788_v63  ;;  %v3966_v7 = vpop.eup %3965  ;;  %v1538_v34 = vadd.f32 1.0, %v3964_v2  ;;  %v1541_v11 = vmul.f32 -0.5, %v3964_v2  ;;  %v1544_v28 = vand.u32 2147483647, %v3964_v2 }
 0x3ac   : > { %v3968_v12 = vpop.eup %3967  ;;  %3971 = vpow2.f32 %v1487_v3  ;;  %v1859_v16 = vadd.f32 1.0, %v3966_v7  ;;  %v1862_v18 = vmul.f32 -0.5, %v3966_v7  ;;  %v1865_v25 = vand.u32 2147483647, %v3966_v7 }
 0x3ad   : > { %v3970_v21 = vpop.eup %3969  ;;  %3973 = vpow2.f32 %v1808_v5  ;;  %v1419_v22 = vpop.f32.mrf.mxu2  ;;  %v1852_v24 = vmul.f32 0.6931472, %v3968_v12  ;;  %v1542_v27 = vadd.f32 1.0, %v1541_v11  ;;  %vm4718_vm2 = vcmp.lt.f32.partialorder %v1544_v28, 0.0004427343 }
 0x3ae   : > { %v1740_v23 = vpop.f32.mrf.mxu3  ;;  %v4695_v30 = vadd.f32 %v1419_v22, %v1285_v37  ;;  %v1531_v33 = vmul.f32 0.6931472, %v3970_v21  ;;  %3975 = vlog2.f32 %v1859_v16  ;;  %v1863_v32 = vadd.f32 1.0, %v1862_v18 }
 0x3af   : > { %v4697_v31 = vadd.f32 %v1740_v23, %v1285_v37  ;;  %v1858_v36 = vsel %vm4691_vm14, %v1855_v9, %v1852_v24  ;;  %3977 = vlog2.f32 %v1538_v34  ;;  %vm4722_vm3 = vcmp.lt.f32.partialorder %v1865_v25, 0.0004427343 }
 0x3b0   : > { %v1468_v38 = vmin.f32 %v4695_v30, 20.0  ;;  %v4706_v40 = vsel %vm1770_vm11, %v4615_v50, %v1858_v36  ;;  %v1537_v37 = vsel %vm4687_vm13, %v1534_v14, %v1531_v33  ;;  %v1864_v45 = vmul.f32 %v3966_v7, %v1863_v32 }
 0x3b1   : > { %v1789_v39 = vmin.f32 %v4697_v31, 20.0  ;;  %5602 = vst [vmem:[#allocation13_spill] sm:$0xff] %v4706_v40  ;;  %3780 = vmatmul.msk.f32.gmra.mxu0 %vm1063_vm1, %v4706_v40  ;;  %v1657_v26 = vsel %vm1449_vm12, %v4613_v49, %v1537_v37  ;;  %v1543_v51 = vmul.f32 %v3964_v2, %v1542_v27  ;;  %vm1773_vm8 = vcmp.gt.f32.partialorder %v4697_v31, 20.0 }
 0x3b2   : > { %v3972_v41 = vpop.eup %3971  ;;  %v1489_v42 = vmul.f32 1.442695, %v1468_v38  ;;  %3796 = vmatmul.msk.f32.gmra.mxu1 %vm1063_vm1, %v1657_v26  ;;  %vm1452_vm9 = vcmp.gt.f32.partialorder %v4695_v30, 20.0 }
 0x3b3   : > { %v1810_v43 = vmul.f32 1.442695, %v1789_v39  ;;  %v3974_v44 = vpop.eup %3973  ;;  %v1547_v49 = vadd.f32 1.0, %v3972_v41  ;;  %v1550_v47 = vmul.f32 -0.5, %v3972_v41  ;;  %v1553_v63 = vand.u32 2147483647, %v3972_v41 }
 0x3b4   : > { %v3976_v48 = vpop.eup %3975  ;;  %3979 = vpow2.f32 %v1489_v42  ;;  %v1868_v52 = vadd.f32 1.0, %v3974_v44  ;;  %v1871_v53 = vmul.f32 -0.5, %v3974_v44  ;;  %v1874_v61 = vand.u32 2147483647, %v3974_v44 }
 0x3b5   : > { %v3978_v56 = vpop.eup %3977  ;;  %3981 = vpow2.f32 %v1810_v43  ;;  %v1422_v58 = vpop.f32.mrf.mxu2  ;;  %v1861_v60 = vmul.f32 0.6931472, %v3976_v48  ;;  %v1551_v7 = vadd.f32 1.0, %v1550_v47  ;;  %vm4749_vm6 = vcmp.lt.f32.partialorder %v1553_v63, 0.0004427343 }
 0x3b6   : > { %v1743_v59 = vpop.f32.mrf.mxu3  ;;  %v4726_v57 = vadd.f32 %v1422_v58, %v1288_v15  ;;  %v1540_v3 = vmul.f32 0.6931472, %v3978_v56  ;;  %3983 = vlog2.f32 %v1868_v52  ;;  %v1872_v2 = vadd.f32 1.0, %v1871_v53 }
 0x3b7   : > { %v4728_v1 = vadd.f32 %v1743_v59, %v1288_v15  ;;  %v1867_v5 = vsel %vm4722_vm3, %v1864_v45, %v1861_v60  ;;  %3985 = vlog2.f32 %v1547_v49  ;;  %vm4753_vm7 = vcmp.lt.f32.partialorder %v1874_v61, 0.0004427343 }
 0x3b8   : > { %v1469_v9 = vmin.f32 %v4726_v57, 20.0  ;;  %v4737_v34 = vsel %vm1771_vm15, %v4633_v20, %v1867_v5  ;;  %v1546_v11 = vsel %vm4718_vm2, %v1543_v51, %v1540_v3  ;;  %v1873_v21 = vmul.f32 %v3974_v44, %v1872_v2  ;;  %v1294_v51 = vpop.f32.mrf.mxu1 }
 0x3b9   : > { %v1790_v10 = vmin.f32 %v4728_v1, 20.0  ;;  %5607 = vst [vmem:[#allocation14_spill] sm:$0xff] %v4737_v34  ;;  %3781 = vmatmul.msk.f32.gmra.mxu0 %vm1063_vm1, %v4737_v34  ;;  %v1658_v12 = vsel %vm1450_vm0, %v4631_v19, %v1546_v11  ;;  %v1552_v25 = vmul.f32 %v3972_v41, %v1551_v7  ;;  %vm1774_vm12 = vcmp.gt.f32.partialorder %v4728_v1, 20.0 }
 0x3ba   : > { %v3980_v14 = vpop.eup %3979  ;;  %v1491_v15 = vmul.f32 1.442695, %v1469_v9  ;;  %3797 = vmatmul.msk.f32.gmra.mxu1 %vm1063_vm1, %v1658_v12  ;;  %vm1453_vm13 = vcmp.gt.f32.partialorder %v4726_v57, 20.0 }
 0x3bb   : > { %v1812_v16 = vmul.f32 1.442695, %v1790_v10  ;;  %v3982_v18 = vpop.eup %3981  ;;  %v1556_v19 = vadd.f32 1.0, %v3980_v14  ;;  %v1559_v23 = vmul.f32 -0.5, %v3980_v14  ;;  %v1562_v37 = vand.u32 2147483647, %v3980_v14 }
 0x3bc   : > { %v3984_v24 = vpop.eup %3983  ;;  %3987 = vpow2.f32 %v1491_v15  ;;  %v1877_v28 = vadd.f32 1.0, %v3982_v18  ;;  %v1880_v33 = vmul.f32 -0.5, %v3982_v18  ;;  %v1883_v39 = vand.u32 2147483647, %v3982_v18 }
 0x3bd   : > { %v3986_v36 = vpop.eup %3985  ;;  %3989 = vpow2.f32 %v1812_v16  ;;  %v1424_v32 = vpop.f32.mrf.mxu2  ;;  %v1870_v38 = vmul.f32 0.6931472, %v3984_v24  ;;  %v1560_v41 = vadd.f32 1.0, %v1559_v23  ;;  %vm4780_vm10 = vcmp.lt.f32.partialorder %v1562_v37, 0.0004427343 }
 0x3be   : > { %v1745_v27 = vpop.f32.mrf.mxu3  ;;  %v4757_v26 = vadd.f32 %v1424_v32, %v1291_v35  ;;  %v1549_v43 = vmul.f32 0.6931472, %v3986_v36  ;;  %3991 = vlog2.f32 %v1877_v28  ;;  %v1881_v44 = vadd.f32 1.0, %v1880_v33 }
 0x3bf   : > { %v4759_v42 = vadd.f32 %v1745_v27, %v1291_v35  ;;  %v1876_v50 = vsel %vm4753_vm7, %v1873_v21, %v1870_v38  ;;  %3993 = vlog2.f32 %v1556_v19  ;;  %vm4784_vm11 = vcmp.lt.f32.partialorder %v1883_v39, 0.0004427343 }
 0x3c0   : > { %v1470_v45 = vmin.f32 %v4757_v26, 20.0  ;;  %v4768_v49 = vsel %vm1772_vm4, %v4666_v55, %v1876_v50  ;;  %v1555_v47 = vsel %vm4749_vm6, %v1552_v25, %v1549_v43  ;;  %v1882_v59 = vmul.f32 %v3982_v18, %v1881_v44  ;;  %v1297_v27 = vpop.f32.mrf.mxu1 }
 0x3c1   : > { %v1791_v46 = vmin.f32 %v4759_v42, 20.0  ;;  %5612 = vst [vmem:[#allocation15_spill] sm:$0xff] %v4768_v49  ;;  %3782 = vmatmul.msk.f32.gmra.mxu0 %vm1063_vm1, %v4768_v49  ;;  %v1659_v48 = vsel %vm1451_vm5, %v4663_v54, %v1555_v47  ;;  %v1561_v3 = vmul.f32 %v3980_v14, %v1560_v41  ;;  %vm1775_vm0 = vcmp.gt.f32.partialorder %v4759_v42, 20.0 }
 0x3c2   : > { %v3988_v52 = vpop.eup %3987  ;;  %v1493_v53 = vmul.f32 1.442695, %v1470_v45  ;;  %3798 = vmatmul.msk.f32.gmra.mxu1 %vm1063_vm1, %v1659_v48  ;;  %vm1454_vm2 = vcmp.gt.f32.partialorder %v4757_v26, 20.0 }
 0x3c3   : > { %v1814_v56 = vmul.f32 1.442695, %v1791_v46  ;;  %v3990_v58 = vpop.eup %3989  ;;  %v1565_v54 = vadd.f32 1.0, %v3988_v52  ;;  %v1568_v61 = vmul.f32 -0.5, %v3988_v52  ;;  %v1571_v12 = vand.u32 2147483647, %v3988_v52 }
 0x3c4   : > { %v3992_v63 = vpop.eup %3991  ;;  %3995 = vpow2.f32 %v1493_v53  ;;  %v1886_v5 = vadd.f32 1.0, %v3990_v58  ;;  %v1889_v35 = vmul.f32 -0.5, %v3990_v58  ;;  %v1892_v11 = vand.u32 2147483647, %v3990_v58 }
 0x3c5   : > { %v3994_v2 = vpop.eup %3993  ;;  %3997 = vpow2.f32 %v1814_v56  ;;  %v1427_v7 = vpop.f32.mrf.mxu2  ;;  %v1879_v10 = vmul.f32 0.6931472, %v3992_v63  ;;  %v1569_v14 = vadd.f32 1.0, %v1568_v61  ;;  %vm4811_vm14 = vcmp.lt.f32.partialorder %v1571_v12, 0.0004427343 }
 0x3c6   : > { %v1748_v9 = vpop.f32.mrf.mxu3  ;;  %v4788_v15 = vadd.f32 %v1427_v7, %v1294_v51  ;;  %v1558_v20 = vmul.f32 0.6931472, %v3994_v2  ;;  %3999 = vlog2.f32 %v1886_v5  ;;  %v1890_v21 = vadd.f32 1.0, %v1889_v35 }
 0x3c7   : > { %v4790_v16 = vadd.f32 %v1748_v9, %v1294_v51  ;;  %v1885_v18 = vsel %vm4784_vm11, %v1882_v59, %v1879_v10  ;;  %4001 = vlog2.f32 %v1565_v54  ;;  %vm4815_vm15 = vcmp.lt.f32.partialorder %v1892_v11, 0.0004427343 }
 0x3c8   : > { %v1471_v22 = vmin.f32 %v4788_v15, 20.0  ;;  %v4799_v23 = vsel %vm1773_vm8, %v4697_v31, %v1885_v18  ;;  %v1564_v24 = vsel %vm4780_vm10, %v1561_v3, %v1558_v20  ;;  %v1891_v38 = vmul.f32 %v3990_v58, %v1890_v21 }
 0x3c9   : > { %v1792_v19 = vmin.f32 %v4790_v16, 20.0  ;;  %5617 = vst [vmem:[#allocation16_spill] sm:$0xff] %v4799_v23  ;;  %3783 = vmatmul.msk.f32.gmra.mxu0 %vm1063_vm1, %v4799_v23  ;;  %v1660_v25 = vsel %vm1452_vm9, %v4695_v30, %v1564_v24  ;;  %v1570_v50 = vmul.f32 %v3988_v52, %v1569_v14  ;;  %vm1776_vm5 = vcmp.gt.f32.partialorder %v4790_v16, 20.0 }
 0x3ca   : > { %v3996_v28 = vpop.eup %3995  ;;  %v1495_v33 = vmul.f32 1.442695, %v1471_v22  ;;  %3799 = vmatmul.msk.f32.gmra.mxu1 %vm1063_vm1, %v1660_v25  ;;  %vm1455_vm6 = vcmp.gt.f32.partialorder %v4788_v15, 20.0 }
 0x3cb   : > { %v1816_v36 = vmul.f32 1.442695, %v1792_v19  ;;  %v3998_v32 = vpop.eup %3997  ;;  %v1574_v30 = vadd.f32 1.0, %v3996_v28  ;;  %v1577_v37 = vmul.f32 -0.5, %v3996_v28  ;;  %v1580_v53 = vand.u32 2147483647, %v3996_v28 }
 0x3cc   : > { %v4000_v43 = vpop.eup %3999  ;;  %4003 = vpow2.f32 %v1495_v33  ;;  %v1895_v44 = vadd.f32 1.0, %v3998_v32  ;;  %v1898_v41 = vmul.f32 -0.5, %v3998_v32  ;;  %v1901_v51 = vand.u32 2147483647, %v3998_v32 }
 0x3cd   : > { %v4002_v45 = vpop.eup %4001  ;;  %4005 = vpow2.f32 %v1816_v36  ;;  %v1429_v46 = vpop.f32.mrf.mxu2  ;;  %v1888_v48 = vmul.f32 0.6931472, %v4000_v43  ;;  %v1578_v52 = vadd.f32 1.0, %v1577_v37  ;;  %vm4842_vm3 = vcmp.lt.f32.partialorder %v1580_v53, 0.0004427343 }
 0x3ce   : > { %v1750_v47 = vpop.f32.mrf.mxu3  ;;  %v4819_v56 = vadd.f32 %v1429_v46, %v1297_v27  ;;  %v1567_v58 = vmul.f32 0.6931472, %v4002_v45  ;;  %4007 = vlog2.f32 %v1895_v44  ;;  %v1899_v60 = vadd.f32 1.0, %v1898_v41 }
 0x3cf   : > { %v4821_v55 = vadd.f32 %v1750_v47, %v1297_v27  ;;  %v1894_v59 = vsel %vm4815_vm15, %v1891_v38, %v1888_v48  ;;  %4009 = vlog2.f32 %v1574_v30  ;;  %vm4846_vm4 = vcmp.lt.f32.partialorder %v1901_v51, 0.0004427343 }
 0x3d0   : > { %v1472_v54 = vmin.f32 %v4819_v56, 20.0  ;;  %v4830_v63 = vsel %vm1774_vm12, %v4728_v1, %v1894_v59  ;;  %v1573_v3 = vsel %vm4811_vm14, %v1570_v50, %v1567_v58  ;;  %v1900_v10 = vmul.f32 %v3998_v32, %v1899_v60 }
 0x3d1   : > { %v1793_v61 = vmin.f32 %v4821_v55, 20.0  ;;  %5622 = vst [vmem:[#allocation17_spill] sm:$0xff] %v4830_v63  ;;  %3784 = vmatmul.msk.f32.gmra.mxu0 %vm1063_vm1, %v4830_v63  ;;  %v1661_v5 = vsel %vm1453_vm13, %v4726_v57, %v1573_v3  ;;  %v1579_v18 = vmul.f32 %v3996_v28, %v1578_v52  ;;  %vm1777_vm9 = vcmp.gt.f32.partialorder %v4821_v55, 20.0 }
 0x3d2   : > { %v4004_v35 = vpop.eup %4003  ;;  %v1497_v2 = vmul.f32 1.442695, %v1472_v54  ;;  %3800 = vmatmul.msk.f32.gmra.mxu1 %vm1063_vm1, %v1661_v5  ;;  %vm1456_vm10 = vcmp.gt.f32.partialorder %v4819_v56, 20.0 }
 0x3d3   : > { %v1818_v7 = vmul.f32 1.442695, %v1793_v61  ;;  %v4006_v9 = vpop.eup %4005  ;;  %v1583_v57 = vadd.f32 1.0, %v4004_v35  ;;  %v1586_v12 = vmul.f32 -0.5, %v4004_v35  ;;  %v1589_v36 = vand.u32 2147483647, %v4004_v35 }
 0x3d4   : > { %v4008_v20 = vpop.eup %4007  ;;  %4011 = vpow2.f32 %v1497_v2  ;;  %v1904_v21 = vadd.f32 1.0, %v4006_v9  ;;  %v1907_v14 = vmul.f32 -0.5, %v4006_v9  ;;  %v1910_v33 = vand.u32 2147483647, %v4006_v9 }
 0x3d5   : > { %v4010_v22 = vpop.eup %4009  ;;  %4013 = vpow2.f32 %v1818_v7  ;;  %v1432_v19 = vpop.f32.mrf.mxu2  ;;  %v1897_v25 = vmul.f32 0.6931472, %v4008_v20  ;;  %v1587_v39 = vadd.f32 1.0, %v1586_v12  ;;  %vm4875_vm7 = vcmp.lt.f32.partialorder %v1589_v36, 0.0004427343 }
 0x3d6   : > { %v1753_v24 = vpop.f32.mrf.mxu3  ;;  %v4851_v31 = vadd.f32 %v1432_v19, %v4562_v62  ;;  %v1576_v27 = vmul.f32 0.6931472, %v4010_v22  ;;  %4015 = vlog2.f32 %v1904_v21  ;;  %v1908_v38 = vadd.f32 1.0, %v1907_v14 }
 0x3d7   : > { %v4854_v32 = vadd.f32 %v1753_v24, %v4562_v62  ;;  %v1903_v28 = vsel %vm4846_vm4, %v1900_v10, %v1897_v25  ;;  %4017 = vlog2.f32 %v1583_v57  ;;  %vm4879_vm8 = vcmp.lt.f32.partialorder %v1910_v33, 0.0004427343 }
 0x3d8   : > { %v1473_v30 = vmin.f32 %v4851_v31, 20.0  ;;  %v4863_v43 = vsel %vm1775_vm0, %v4759_v42, %v1903_v28  ;;  %v1582_v62 = vsel %vm4842_vm3, %v1579_v18, %v1576_v27  ;;  %v1909_v47 = vmul.f32 %v4006_v9, %v1908_v38 }
 0x3d9   : > { %v1794_v37 = vmin.f32 %v4854_v32, 20.0  ;;  %5627 = vst [vmem:[#allocation18_spill] sm:$0xff] %v4863_v43  ;;  %3785 = vmatmul.msk.f32.gmra.mxu0 %vm1063_vm1, %v4863_v43  ;;  %v1662_v50 = vsel %vm1454_vm2, %v4757_v26, %v1582_v62  ;;  %v1588_v58 = vmul.f32 %v4004_v35, %v1587_v39  ;;  %vm1778_vm13 = vcmp.gt.f32.partialorder %v4854_v32, 20.0 }
 0x3da   : > { %v4012_v44 = vpop.eup %4011  ;;  %v1499_v41 = vmul.f32 1.442695, %v1473_v30  ;;  %3801 = vmatmul.msk.f32.gmra.mxu1 %vm1063_vm1, %v1662_v50  ;;  %vm1457_vm15 = vcmp.gt.f32.partialorder %v4851_v31, 20.0 }
 0x3db   : > { %v1820_v45 = vmul.f32 1.442695, %v1794_v37  ;;  %v4014_v46 = vpop.eup %4013  ;;  %v1592_v26 = vadd.f32 1.0, %v4012_v44  ;;  %v1595_v51 = vmul.f32 -0.5, %v4012_v44  ;;  %v1598_v2 = vand.u32 2147483647, %v4012_v44 }
 0x3dc   : > { %v4016_v53 = vpop.eup %4015  ;;  %4019 = vpow2.f32 %v1499_v41  ;;  %v1913_v59 = vadd.f32 1.0, %v4014_v46  ;;  %v1916_v60 = vmul.f32 -0.5, %v4014_v46  ;;  %v1919_v5 = vand.u32 2147483647, %v4014_v46 }
 0x3dd   : > { %v4018_v52 = vpop.eup %4017  ;;  %4021 = vpow2.f32 %v1820_v45  ;;  %v1434_v54 = vpop.f32.mrf.mxu2  ;;  %v1906_v3 = vmul.f32 0.6931472, %v4016_v53  ;;  %v1596_v11 = vadd.f32 1.0, %v1595_v51  ;;  %vm4908_vm11 = vcmp.lt.f32.partialorder %v1598_v2, 0.0004427343 }
 0x3de   : > { %v1755_v61 = vpop.f32.mrf.mxu3  ;;  %v4884_v7 = vadd.f32 %v1434_v54, %v4573_v4  ;;  %v1585_v9 = vmul.f32 0.6931472, %v4018_v52  ;;  %4023 = vlog2.f32 %v1913_v59  ;;  %v1917_v10 = vadd.f32 1.0, %v1916_v60 }
 0x3df   : > { %v4887_v1 = vadd.f32 %v1755_v61, %v4573_v4  ;;  %v1912_v35 = vsel %vm4879_vm8, %v1909_v47, %v1906_v3  ;;  %4025 = vlog2.f32 %v1592_v26  ;;  %vm4912_vm12 = vcmp.lt.f32.partialorder %v1919_v5, 0.0004427343 }
 0x3e0   : > { %v1474_v57 = vmin.f32 %v4884_v7, 20.0  ;;  %v4896_v20 = vsel %vm1776_vm5, %v4790_v16, %v1912_v35  ;;  %v1591_v4 = vsel %vm4875_vm7, %v1588_v58, %v1585_v9  ;;  %v1918_v24 = vmul.f32 %v4014_v46, %v1917_v10 }
 0x3e1   : > { %v1795_v12 = vmin.f32 %v4887_v1, 20.0  ;;  %5632 = vst [vmem:[#allocation19_spill] sm:$0xff] %v4896_v20  ;;  %3786 = vmatmul.msk.f32.gmra.mxu0 %vm1063_vm1, %v4896_v20  ;;  %v1663_v18 = vsel %vm1455_vm6, %v4788_v15, %v1591_v4  ;;  %v1597_v27 = vmul.f32 %v4012_v44, %v1596_v11  ;;  %vm1779_vm2 = vcmp.gt.f32.partialorder %v4887_v1, 20.0 }
 0x3e2   : > { %v4020_v21 = vpop.eup %4019  ;;  %v1501_v14 = vmul.f32 1.442695, %v1474_v57  ;;  %3802 = vmatmul.msk.f32.gmra.mxu1 %vm1063_vm1, %v1663_v18  ;;  %vm1458_vm5 = vcmp.gt.f32.partialorder %v4884_v7, 20.0 }
 0x3e3   : > { %v1822_v22 = vmul.f32 1.442695, %v1795_v12  ;;  %v4022_v19 = vpop.eup %4021  ;;  %v1601_v15 = vadd.f32 1.0, %v4020_v21  ;;  %v1604_v33 = vmul.f32 -0.5, %v4020_v21  ;;  %v1607_v41 = vand.u32 2147483647, %v4020_v21 }
 0x3e4   : > { %v4024_v36 = vpop.eup %4023  ;;  %4027 = vpow2.f32 %v1501_v14  ;;  %v1922_v28 = vadd.f32 1.0, %v4022_v19  ;;  %v1925_v38 = vmul.f32 -0.5, %v4022_v19  ;;  %v1928_v50 = vand.u32 2147483647, %v4022_v19 }
 0x3e5   : > { %v4026_v39 = vpop.eup %4025  ;;  %4029 = vpow2.f32 %v1822_v22  ;;  %v1437_v30 = vpop.f32.mrf.mxu2  ;;  %v1915_v62 = vmul.f32 0.6931472, %v4024_v36  ;;  %v1605_v48 = vadd.f32 1.0, %v1604_v33  ;;  %vm4945_vm0 = vcmp.lt.f32.partialorder %v1607_v41, 0.0004427343 }
 0x3e6   : > { %v1758_v37 = vpop.f32.mrf.mxu3  ;;  %v4917_v45 = vadd.f32 %v1437_v30, %v4576_v6  ;;  %v1594_v46 = vmul.f32 0.6931472, %v4026_v39  ;;  %4031 = vlog2.f32 %v1922_v28  ;;  %v1926_v47 = vadd.f32 1.0, %v1925_v38 }
 0x3e7   : > { %v4920_v42 = vadd.f32 %v1758_v37, %v4576_v6  ;;  %v1921_v44 = vsel %vm4912_vm12, %v1918_v24, %v1915_v62  ;;  %4033 = vlog2.f32 %v1601_v15  ;;  %vm4940_vm14 = vcmp.lt.f32.partialorder %v1928_v50, 0.0004427343 }
 0x3e8   : > { %v1475_v26 = vmin.f32 %v4917_v45, 20.0  ;;  %v4929_v53 = vsel %vm1777_vm9, %v4821_v55, %v1921_v44  ;;  %v1600_v6 = vsel %vm4908_vm11, %v1597_v27, %v1594_v46  ;;  %v1927_v5 = vmul.f32 %v4022_v19, %v1926_v47 }
 0x3e9   : > { %v1796_v51 = vmin.f32 %v4920_v42, 20.0  ;;  %5637 = vst [vmem:[#allocation20_spill] sm:$0xff] %v4929_v53  ;;  %3787 = vmatmul.msk.f32.gmra.mxu0 %vm1063_vm1, %v4929_v53  ;;  %v1664_v58 = vsel %vm1456_vm10, %v4819_v56, %v1600_v6  ;;  %v1606_v2 = vmul.f32 %v4020_v21, %v1605_v48  ;;  %vm1780_vm6 = vcmp.gt.f32.partialorder %v4920_v42, 20.0 }
 0x3ea   : > { %v4028_v59 = vpop.eup %4027  ;;  %v1503_v60 = vmul.f32 1.442695, %v1475_v26  ;;  %3803 = vmatmul.msk.f32.gmra.mxu1 %vm1063_vm1, %v1664_v58  ;;  %vm1459_vm9 = vcmp.gt.f32.partialorder %v4917_v45, 20.0 }
 0x3eb   : > { %v1824_v52 = vmul.f32 1.442695, %v1796_v51  ;;  %v4030_v54 = vpop.eup %4029  ;;  %v1610_v3 = vadd.f32 1.0, %v4028_v59  ;;  %v1613_v4 = vmul.f32 -0.5, %v4028_v59  ;;  %v1616_v19 = vand.u32 2147483647, %v4028_v59 }
 0x3ec   : > { %v4032_v56 = vpop.eup %4031  ;;  %4035 = vpow2.f32 %v1503_v60  ;;  %v1931_v9 = vadd.f32 1.0, %v4030_v54  ;;  %v1934_v12 = vmul.f32 -0.5, %v4030_v54  ;;  %v1937_v21 = vand.u32 2147483647, %v4030_v54 }
 0x3ed   : > { %v4034_v35 = vpop.eup %4033  ;;  %4037 = vpow2.f32 %v1824_v52  ;;  %v1439_v10 = vpop.f32.mrf.mxu2  ;;  %v1924_v57 = vmul.f32 0.6931472, %v4032_v56  ;;  %v1614_v27 = vadd.f32 1.0, %v1613_v4  ;;  %vm4975_vm3 = vcmp.lt.f32.partialorder %v1616_v19, 0.0004427343 }
 0x3ee   : > { %v1760_v11 = vpop.f32.mrf.mxu3  ;;  %v4950_v18 = vadd.f32 %v1439_v10, %v4583_v8  ;;  %v1603_v22 = vmul.f32 0.6931472, %v4034_v35  ;;  %4039 = vlog2.f32 %v1931_v9  ;;  %v1935_v36 = vadd.f32 1.0, %v1934_v12 }
 0x3ef   : > { %v4953_v14 = vadd.f32 %v1760_v11, %v4583_v8  ;;  %v1930_v16 = vsel %vm4940_vm14, %v1927_v5, %v1924_v57  ;;  %4041 = vlog2.f32 %v1610_v3  ;;  %vm4980_vm4 = vcmp.lt.f32.partialorder %v1937_v21, 0.0004427343 }
 0x3f0   : > { %v1476_v24 = vmin.f32 %v4950_v18, 20.0  ;;  %v4962_v15 = vsel %vm1778_vm13, %v4854_v32, %v1930_v16  ;;  %v1609_v8 = vsel %vm4945_vm0, %v1606_v2, %v1603_v22  ;;  %v1936_v26 = vmul.f32 %v4030_v54, %v1935_v36 }
 0x3f1   : > { %v1797_v25 = vmin.f32 %v4953_v14, 20.0  ;;  %5642 = vst [vmem:[#allocation21_spill] sm:$0xff] %v4962_v15  ;;  %3788 = vmatmul.msk.f32.gmra.mxu0 %vm1063_vm1, %v4962_v15  ;;  %v1665_v33 = vsel %vm1457_vm15, %v4851_v31, %v1609_v8  ;;  %v1615_v51 = vmul.f32 %v4028_v59, %v1614_v27  ;;  %vm1781_vm11 = vcmp.gt.f32.partialorder %v4953_v14, 20.0 }
 0x3f2   : > { %v4971_v28 = vpop.eup %4035  ;;  %v1505_v38 = vmul.f32 1.442695, %v1476_v24  ;;  %3804 = vmatmul.msk.f32.gmra.mxu1 %vm1063_vm1, %v1665_v33  ;;  %vm1460_vm13 = vcmp.gt.f32.partialorder %v4950_v18, 20.0 }
 0x3f3   : > { %v1826_v39 = vmul.f32 1.442695, %v1797_v25  ;;  %v4038_v32 = vpop.eup %4037  ;;  %v1619_v37 = vadd.f32 1.0, %v4971_v28  ;;  %v1622_v61 = vmul.f32 -0.5, %v4971_v28  ;;  %v1625_v11 = vand.u32 2147483647, %v4971_v28 }
 0x3f4   : > { %v4040_v62 = vpop.eup %4039  ;;  %4043 = vpow2.f32 %v1505_v38  ;;  %v1940_v50 = vadd.f32 1.0, %v4038_v32  ;;  %v1943_v41 = vmul.f32 -0.5, %v4038_v32  ;;  %v1946_v55 = vand.u32 2147483647, %v4038_v32 }
 0x3f5   : > { %v4042_v46 = vpop.eup %4041  ;;  %4045 = vpow2.f32 %v1826_v39  ;;  %v1442_v44 = vpop.f32.mrf.mxu2  ;;  %v1933_v48 = vmul.f32 0.6931472, %v4040_v62  ;;  %vm1626_vm8 = vcmp.lt.f32.partialorder %v1625_v11, 0.0004427343 }
 0x3f6   : > { %v1763_v47 = vpop.f32.mrf.mxu3  ;;  %v4985_v6 = vadd.f32 %v1442_v44, %v4590_v13  ;;  %v1612_v60 = vmul.f32 0.6931472, %v4042_v46  ;;  %4047 = vlog2.f32 %v1940_v50  ;;  %vm5012_vm7 = vcmp.lt.f32.partialorder %v1946_v55, 0.0004427343 }
 0x3f7   : > { %v4988_v58 = vadd.f32 %v1763_v47, %v4590_v13  ;;  %v1939_v52 = vsel %vm4980_vm4, %v1936_v26, %v1933_v48  ;;  %4049 = vlog2.f32 %v1619_v37  ;;  %v1944_v13 = vadd.f32 1.0, %v1943_v41 }
 0x3f8   : > { %v1477_v3 = vmin.f32 %v4985_v6, 20.0  ;;  %v4998_v59 = vsel %vm1779_vm2, %v4887_v1, %v1939_v52  ;;  %v1618_v56 = vsel %vm4975_vm3, %v1615_v51, %v1612_v60  ;;  %v1623_v1 = vadd.f32 1.0, %v1622_v61 }
 0x3f9   : > { %v1798_v54 = vmin.f32 %v4988_v58, 20.0  ;;  %5647 = vst [vmem:[#allocation22_spill] sm:$0xff] %v4998_v59  ;;  %3789 = vmatmul.msk.f32.gmra.mxu0 %vm1063_vm1, %v4998_v59  ;;  %v1666_v35 = vsel %vm1458_vm5, %v4884_v7, %v1618_v56  ;;  %v1945_v4 = vmul.f32 %v4038_v32, %v1944_v13  ;;  %vm1782_vm15 = vcmp.gt.f32.partialorder %v4988_v58, 20.0 }
 0x3fa   : > { %v5005_v5 = vpop.eup %4043  ;;  %v1507_v2 = vmul.f32 1.442695, %v1477_v3  ;;  %3805 = vmatmul.msk.f32.gmra.mxu1 %vm1063_vm1, %v1666_v35  ;;  %v1624_v39 = vmul.f32 %v4971_v28, %v1623_v1  ;;  %vm1461_vm2 = vcmp.gt.f32.partialorder %v4985_v6, 20.0 }
 0x3fb   : > { %v1828_v9 = vmul.f32 1.442695, %v1798_v54  ;;  %v4046_v10 = vpop.eup %4045  ;;  %v1628_v57 = vadd.f32 1.0, %v5005_v5  ;;  %v1631_v8 = vmul.f32 -0.5, %v5005_v5 }
 0x3fc   : > { %v4048_v12 = vpop.eup %4047  ;;  %4051 = vpow2.f32 %v1507_v2  ;;  %v1949_v16 = vadd.f32 1.0, %v4046_v10  ;;  %v1952_v25 = vmul.f32 -0.5, %v4046_v10 }
 0x3fd   : > { %v4050_v21 = vpop.eup %4049  ;;  %4053 = vpow2.f32 %v1828_v9  ;;  %v1444_v7 = vpop.f32.mrf.mxu2  ;;  %v1942_v24 = vmul.f32 0.6931472, %v4048_v12  ;;  %v1632_v44 = vadd.f32 1.0, %v1631_v8 }
 0x3fe   : > { %v1765_v19 = vpop.f32.mrf.mxu3  ;;  %v5018_v33 = vadd.f32 %v1444_v7, %v4594_v17  ;;  %v1621_v27 = vmul.f32 0.6931472, %v4050_v21  ;;  %4055 = vlog2.f32 %v1949_v16  ;;  %v1953_v31 = vadd.f32 1.0, %v1952_v25 }
 0x3ff   : > { %v5021_v36 = vadd.f32 %v1765_v19, %v4594_v17  ;;  %v1948_v38 = vsel %vm5012_vm7, %v1945_v4, %v1942_v24  ;;  %4057 = vlog2.f32 %v1628_v57  ;;  %v1955_v17 = vand.u32 2147483647, %v4046_v10 }
 0x400   : > { %v1478_v32 = vmin.f32 %v5018_v33, 20.0  ;;  %v5031_v37 = vsel %vm1780_vm6, %v4920_v42, %v1948_v38  ;;  %v1627_v62 = vsel %vm1626_vm8, %v1624_v39, %v1621_v27  ;;  %v1634_v42 = vand.u32 2147483647, %v5005_v5 }
 0x401   : > { %v1799_v30 = vmin.f32 %v5021_v36, 20.0  ;;  %5650 = vst [vmem:[#allocation23_spill] sm:$0xff] %v5031_v37  ;;  %3790 = vmatmul.msk.f32.gmra.mxu0 %vm1063_vm1, %v5031_v37  ;;  %v1667_v46 = vsel %vm1459_vm9, %v4917_v45, %v1627_v62  ;;  %vm5039_vm10 = vcmp.lt.f32.partialorder %v1955_v17, 0.0004427343  ;;  %v1954_v61 = vmul.f32 %v4046_v10, %v1953_v31 }
 0x402   : > { %v4052_v28 = vpop.eup %4051  ;;  %v1509_v50 = vmul.f32 1.442695, %v1478_v32  ;;  %3806 = vmatmul.msk.f32.gmra.mxu1 %vm1063_vm1, %v1667_v46  ;;  %v1633_v54 = vmul.f32 %v5005_v5, %v1632_v44  ;;  %vm1635_vm12 = vcmp.lt.f32.partialorder %v1634_v42, 0.0004427343  ;;  %vm1462_vm5 = vcmp.gt.f32.partialorder %v5018_v33, 20.0 }
 0x403   : > { %v1830_v41 = vmul.f32 1.442695, %v1799_v30  ;;  %v4054_v47 = vpop.eup %4053  ;;  %v1637_v48 = vadd.f32 1.0, %v4052_v28  ;;  %v1640_v13 = vmul.f32 -0.5, %v4052_v28  ;;  %v1643_v12 = vand.u32 2147483647, %v4052_v28 }
 0x404   : > { %v4056_v26 = vpop.eup %4055  ;;  %4059 = vpow2.f32 %v1509_v50  ;;  %v1958_v60 = vadd.f32 1.0, %v4054_v47  ;;  %v1961_v3 = vmul.f32 -0.5, %v4054_v47  ;;  %v1964_v1 = vand.u32 2147483647, %v4054_v47 }
 0x405   : > { %v4058_v52 = vpop.eup %4057  ;;  %4061 = vpow2.f32 %v1830_v41  ;;  %v1951_v55 = vmul.f32 0.6931472, %v4056_v26  ;;  %v1641_v11 = vadd.f32 1.0, %v1640_v13  ;;  %vm1644_vm0 = vcmp.lt.f32.partialorder %v1643_v12, 0.0004427343 }
 0x406   : > { %v1630_v45 = vmul.f32 0.6931472, %v4058_v52  ;;  %4063 = vlog2.f32 %v1958_v60  ;;  %v1962_v35 = vadd.f32 1.0, %v1961_v3  ;;  %vm1965_vm14 = vcmp.lt.f32.partialorder %v1964_v1, 0.0004427343 }
 0x407   : > { %v1957_v56 = vsel %vm5039_vm10, %v1954_v61, %v1951_v55  ;;  %4065 = vlog2.f32 %v1637_v48  ;;  %vm1783_vm6 = vcmp.gt.f32.partialorder %v5021_v36, 20.0  ;;  %v4219_v48 = vmov 0  }
 0x408   : > { %v5048_v2 = vsel %vm1781_vm11, %v4953_v14, %v1957_v56  ;;  %v1636_v9 = vsel %vm1635_vm12, %v1633_v54, %v1630_v45  ;;  %v1963_v19 = vmul.f32 %v4054_v47, %v1962_v35  ;;  %3939 = vset.pattern.permute.xlu1 %v4219_v48  ;;  %3940 = vset.pattern.permute.xlu2 %v4219_v48 }
 0x409   : > { %5653 = vst [vmem:[#allocation24_spill] sm:$0xff] %v5048_v2  ;;  %3791 = vmatmul.msk.f32.gmra.mxu0 %vm1063_vm1, %v5048_v2  ;;  %v1668_v5 = vsel %vm1460_vm13, %v4950_v18, %v1636_v9  ;;  %v1642_v18 = vmul.f32 %v4052_v28, %v1641_v11  ;;  %3941 = vset.pattern.permute.xlu0 %v4219_v48 }
 0x40a   : > { %v4060_v10 = vpop.eup %4059  ;;  %3807 = vmatmul.msk.f32.gmra.mxu1 %vm1063_vm1, %v1668_v5 }
 0x40b   : > { %v4062_v57 = vpop.eup %4061  ;;  %v1646_v4 = vadd.f32 1.0, %v4060_v10  ;;  %v1649_v16 = vmul.f32 -0.5, %v4060_v10  ;;  %v1652_v17 = vand.u32 2147483647, %v4060_v10 }
 0x40c   : > { %v4064_v22 = vpop.eup %4063  ;;  %v1967_v14 = vadd.f32 1.0, %v4062_v57  ;;  %v1970_v24 = vmul.f32 -0.5, %v4062_v57  ;;  %v1973_v62 = vand.u32 2147483647, %v4062_v57 }
 0x40d   : > { %v4066_v21 = vpop.eup %4065  ;;  %v1960_v7 = vmul.f32 0.6931472, %v4064_v22  ;;  %4067 = vlog2.f32 %v1646_v4  ;;  %v1650_v39 = vadd.f32 1.0, %v1649_v16  ;;  %vm1653_vm3 = vcmp.lt.f32.partialorder %v1652_v17, 0.0004427343 }
 0x40e   : > { %v1639_v25 = vmul.f32 0.6931472, %v4066_v21  ;;  %4069 = vlog2.f32 %v1967_v14  ;;  %v1971_v30 = vadd.f32 1.0, %v1970_v24  ;;  %vm1974_vm4 = vcmp.lt.f32.partialorder %v1973_v62, 0.0004427343 }
 0x40f   : > { %v1966_v8 = vsel %vm1965_vm14, %v1963_v19, %v1960_v7  ;;  %v1651_v41 = vmul.f32 %v4060_v10, %v1650_v39 }
 0x410   : > { %v5058_v27 = vsel %vm1782_vm15, %v4988_v58, %v1966_v8  ;;  %v1645_v38 = vsel %vm1644_vm0, %v1642_v18, %v1639_v25  ;;  %v1972_v44 = vmul.f32 %v4062_v57, %v1971_v30 }
 0x411   : > { %3792 = vmatmul.msk.f32.gmra.mxu0 %vm1063_vm1, %v5058_v27  ;;  %v1669_v32 = vsel %vm1461_vm2, %v4985_v6, %v1645_v38 }
 0x412   : > { %3808 = vmatmul.msk.f32.gmra.mxu1 %vm1063_vm1, %v1669_v32 }
 0x413   : > { %v4068_v31 = vpop.eup %4067 }
 0x414   : > { %v4070_v28 = vpop.eup %4069  ;;  %v1648_v50 = vmul.f32 0.6931472, %v4068_v31 }
 0x415   : > { %v1969_v46 = vmul.f32 0.6931472, %v4070_v28 }
 0x416   : > { %v1654_v58 = vsel %vm1653_vm3, %v1651_v41, %v1648_v50 }
 0x417   : > { %v1975_v47 = vsel %vm1974_vm4, %v1972_v44, %v1969_v46  ;;  %v1670_v42 = vsel %vm1462_vm5, %v5018_v33, %v1654_v58 }
 0x418   : > { %v5067_v6 = vsel %vm1783_vm6, %v5021_v36, %v1975_v47 }
 0x419   : > { %3793 = vmatmul.msk.f32.gmra.mxu0 %vm1063_vm1, %v5067_v6 }
 0x41a   : > { %3809 = vmatmul.msk.f32.gmra.mxu1 %vm1063_vm1, %v1670_v42 }
 0x41e   : > { %v2074_v26 = vpop.f32.mrf.mxu0 }
 0x41f   : > { %v2187_v51 = vpop.f32.mrf.mxu1 }
 0x420   : > { %v2188_v60 = vadd.f32 %v2187_v51, %v2074_v26 }
 0x422   : > { %v2251_v52 = vmin.f32 %v2188_v60, 20.0  ;;  %vm2235_vm8 = vcmp.gt.f32.partialorder %v2188_v60, 20.0 }
 0x424   : > { %v2267_v55 = vmul.f32 1.442695, %v2251_v52 }
 0x426   : > { %4071 = vpow2.f32 %v2267_v55  ;;  %v2077_v61 = vpop.f32.mrf.mxu0 }
 0x427   : > { %v2190_v36 = vpop.f32.mrf.mxu1 }
 0x428   : > { %v2191_v3 = vadd.f32 %v2190_v36, %v2077_v61 }
 0x42a   : > { %v2252_v45 = vmin.f32 %v2191_v3, 20.0  ;;  %vm2236_vm10 = vcmp.gt.f32.partialorder %v2191_v3, 20.0 }
 0x42c   : > { %v4072_v33 = vpop.eup %4071  ;;  %v2269_v54 = vmul.f32 1.442695, %v2252_v45 }
 0x42d   : > { %v2299_v13 = vadd.f32 1.0, %v4072_v33  ;;  %v2302_v9 = vmul.f32 -0.5, %v4072_v33  ;;  %v2305_v11 = vand.u32 2147483647, %v4072_v33 }
 0x42e   : > { %4073 = vpow2.f32 %v2269_v54  ;;  %v2080_v56 = vpop.f32.mrf.mxu0 }
 0x42f   : > { %v2193_v5 = vpop.f32.mrf.mxu1  ;;  %4075 = vlog2.f32 %v2299_v13  ;;  %v2303_v1 = vadd.f32 1.0, %v2302_v9  ;;  %vm2306_vm7 = vcmp.lt.f32.partialorder %v2305_v11, 0.0004427343 }
 0x430   : > { %v2194_v35 = vadd.f32 %v2193_v5, %v2080_v56 }
 0x431   : > { %v2304_v21 = vmul.f32 %v4072_v33, %v2303_v1 }
 0x432   : > { %v2253_v10 = vmin.f32 %v2194_v35, 20.0  ;;  %vm2237_vm12 = vcmp.gt.f32.partialorder %v2194_v35, 20.0 }
 0x434   : > { %v4074_v57 = vpop.eup %4073  ;;  %v2271_v12 = vmul.f32 1.442695, %v2253_v10 }
 0x435   : > { %v4076_v4 = vpop.eup %4075  ;;  %v2308_v22 = vadd.f32 1.0, %v4074_v57  ;;  %v2311_v7 = vmul.f32 -0.5, %v4074_v57  ;;  %v2314_v39 = vand.u32 2147483647, %v4074_v57 }
 0x436   : > { %4077 = vpow2.f32 %v2271_v12  ;;  %v2083_v14 = vpop.f32.mrf.mxu0  ;;  %v2301_v16 = vmul.f32 0.6931472, %v4076_v4 }
 0x437   : > { %v2196_v19 = vpop.f32.mrf.mxu1  ;;  %4079 = vlog2.f32 %v2308_v22  ;;  %v2312_v38 = vadd.f32 1.0, %v2311_v7  ;;  %vm2315_vm9 = vcmp.lt.f32.partialorder %v2314_v39, 0.0004427343 }
 0x438   : > { %v5073_v24 = vadd.f32 %v2196_v19, %v2083_v14  ;;  %v2307_v25 = vsel %vm2306_vm7, %v2304_v21, %v2301_v16 }
 0x439   : > { %v5075_v18 = vsel %vm2235_vm8, %v2188_v60, %v2307_v25  ;;  %v2313_v50 = vmul.f32 %v4074_v57, %v2312_v38 }
 0x43a   : > { %v2254_v8 = vmin.f32 %v5073_v24, 20.0  ;;  %2477 = vperm.xlu1 %3939, %v5075_v18   ;;  %vm2238_vm14 = vcmp.gt.f32.partialorder %v5073_v24, 20.0 }
 0x43c   : > { %v4078_v32 = vpop.eup %4077  ;;  %v2273_v30 = vmul.f32 1.442695, %v2254_v8 }
 0x43d   : > { %v4080_v17 = vpop.eup %4079  ;;  %v2317_v62 = vadd.f32 1.0, %v4078_v32  ;;  %v2320_v41 = vmul.f32 -0.5, %v4078_v32  ;;  %v2323_v26 = vand.u32 2147483647, %v4078_v32 }
 0x43e   : > { %4081 = vpow2.f32 %v2273_v30  ;;  %v2086_v31 = vpop.f32.mrf.mxu0  ;;  %v2310_v28 = vmul.f32 0.6931472, %v4080_v17 }
 0x43f   : > { %v2199_v46 = vpop.f32.mrf.mxu1  ;;  %4083 = vlog2.f32 %v2317_v62  ;;  %v2321_v48 = vadd.f32 1.0, %v2320_v41  ;;  %vm2324_vm11 = vcmp.lt.f32.partialorder %v2323_v26, 0.0004427343 }
 0x440   : > { %v5079_v44 = vadd.f32 %v2199_v46, %v2086_v31  ;;  %v2316_v58 = vsel %vm2315_vm9, %v2313_v50, %v2310_v28 }
 0x441   : > { %v5081_v47 = vsel %vm2236_vm10, %v2191_v3, %v2316_v58  ;;  %v2322_v45 = vmul.f32 %v4078_v32, %v2321_v48 }
 0x442   : > { %v2255_v42 = vmin.f32 %v5079_v44, 20.0  ;;  %2482 = vperm.xlu1 %3939, %v5081_v47   ;;  %vm2239_vm0 = vcmp.gt.f32.partialorder %v5079_v44, 20.0 }
 0x444   : > { %v4082_v51 = vpop.eup %4081  ;;  %v2275_v60 = vmul.f32 1.442695, %v2255_v42 }
 0x445   : > { %v4084_v52 = vpop.eup %4083  ;;  %v2326_v55 = vadd.f32 1.0, %v4082_v51  ;;  %v2329_v33 = vmul.f32 -0.5, %v4082_v51  ;;  %v2332_v10 = vand.u32 2147483647, %v4082_v51 }
 0x446   : > { %4085 = vpow2.f32 %v2275_v60  ;;  %v2089_v61 = vpop.f32.mrf.mxu0  ;;  %v2319_v36 = vmul.f32 0.6931472, %v4084_v52 }
 0x447   : > { %v2202_v54 = vpop.f32.mrf.mxu1  ;;  %4087 = vlog2.f32 %v2326_v55  ;;  %v2330_v5 = vadd.f32 1.0, %v2329_v33  ;;  %vm2333_vm13 = vcmp.lt.f32.partialorder %v2332_v10, 0.0004427343 }
 0x448   : > { %v5085_v3 = vadd.f32 %v2202_v54, %v2089_v61  ;;  %v2325_v13 = vsel %vm2324_vm11, %v2322_v45, %v2319_v36 }
 0x449   : > { %v5087_v56 = vsel %vm2237_vm12, %v2194_v35, %v2325_v13  ;;  %v2331_v14 = vmul.f32 %v4082_v51, %v2330_v5 }
 0x44a   : > { %v2256_v9 = vmin.f32 %v5085_v3, 20.0  ;;  %2487 = vperm.xlu2 %3940, %v5087_v56   ;;  %vm2240_vm3 = vcmp.gt.f32.partialorder %v5085_v3, 20.0 }
 0x44c   : > { %v4086_v1 = vpop.eup %4085  ;;  %v2277_v11 = vmul.f32 1.442695, %v2256_v9 }
 0x44d   : > { %v4088_v57 = vpop.eup %4087  ;;  %v2335_v12 = vadd.f32 1.0, %v4086_v1  ;;  %v2338_v16 = vmul.f32 -0.5, %v4086_v1  ;;  %v2341_v38 = vand.u32 2147483647, %v4086_v1 }
 0x44e   : > { %4089 = vpow2.f32 %v2277_v11  ;;  %v2092_v4 = vpop.f32.mrf.mxu0  ;;  %v2328_v22 = vmul.f32 0.6931472, %v4088_v57 }
 0x44f   : > { %v2205_v21 = vpop.f32.mrf.mxu1  ;;  %4091 = vlog2.f32 %v2335_v12  ;;  %v2339_v8 = vadd.f32 1.0, %v2338_v16  ;;  %vm2342_vm15 = vcmp.lt.f32.partialorder %v2341_v38, 0.0004427343 }
 0x450   : > { %v5091_v35 = vadd.f32 %v2205_v21, %v2092_v4  ;;  %v2334_v7 = vsel %vm2333_vm13, %v2331_v14, %v2328_v22 }
 0x451   : > { %v5095_v19 = vsel %vm2238_vm14, %v5073_v24, %v2334_v7  ;;  %v2340_v28 = vmul.f32 %v4086_v1, %v2339_v8 }
 0x452   : > { %v2257_v25 = vmin.f32 %v5091_v35, 20.0  ;;  %2492 = vperm.xlu2 %3940, %v5095_v19   ;;  %vm2241_vm5 = vcmp.gt.f32.partialorder %v5091_v35, 20.0 }
 0x454   : > { %v4090_v39 = vpop.eup %4089  ;;  %v2279_v32 = vmul.f32 1.442695, %v2257_v25 }
 0x455   : > { %v4092_v30 = vpop.eup %4091  ;;  %v2344_v17 = vadd.f32 1.0, %v4090_v39  ;;  %v2347_v50 = vmul.f32 -0.5, %v4090_v39  ;;  %v2350_v26 = vand.u32 2147483647, %v4090_v39 }
 0x456   : > { %4093 = vpow2.f32 %v2279_v32  ;;  %v2095_v62 = vpop.f32.mrf.mxu0  ;;  %v2337_v31 = vmul.f32 0.6931472, %v4092_v30 }
 0x457   : > { %v2208_v41 = vpop.f32.mrf.mxu1  ;;  %4095 = vlog2.f32 %v2344_v17  ;;  %v2348_v48 = vadd.f32 1.0, %v2347_v50  ;;  %vm2351_vm2 = vcmp.lt.f32.partialorder %v2350_v26, 0.0004427343 }
 0x458   : > { %v5099_v24 = vadd.f32 %v2208_v41, %v2095_v62  ;;  %v2343_v46 = vsel %vm2342_vm15, %v2340_v28, %v2337_v31 }
 0x459   : > { %v5103_v58 = vsel %vm2239_vm0, %v5079_v44, %v2343_v46  ;;  %v2349_v45 = vmul.f32 %v4090_v39, %v2348_v48 }
 0x45a   : > { %v2258_v42 = vmin.f32 %v5099_v24, 20.0  ;;  %2497 = vperm.xlu1 %3939, %v5103_v58   ;;  %vm2242_vm7 = vcmp.gt.f32.partialorder %v5099_v24, 20.0 }
 0x45c   : > { %v4094_v51 = vpop.eup %4093  ;;  %v2281_v60 = vmul.f32 1.442695, %v2258_v42 }
 0x45d   : > { %v4096_v52 = vpop.eup %4095  ;;  %v2353_v55 = vadd.f32 1.0, %v4094_v51  ;;  %v2356_v33 = vmul.f32 -0.5, %v4094_v51  ;;  %v2359_v1 = vand.u32 2147483647, %v4094_v51 }
 0x45e   : > { %4097 = vpow2.f32 %v2281_v60  ;;  %v2098_v61 = vpop.f32.mrf.mxu0  ;;  %v2346_v36 = vmul.f32 0.6931472, %v4096_v52 }
 0x45f   : > { %v2211_v54 = vpop.f32.mrf.mxu1  ;;  %4099 = vlog2.f32 %v2353_v55  ;;  %v2357_v10 = vadd.f32 1.0, %v2356_v33  ;;  %vm2360_vm4 = vcmp.lt.f32.partialorder %v2359_v1, 0.0004427343 }
 0x460   : > { %v5107_v44 = vadd.f32 %v2211_v54, %v2098_v61  ;;  %v2352_v13 = vsel %vm2351_vm2, %v2349_v45, %v2346_v36 }
 0x461   : > { %v5111_v9 = vsel %vm2240_vm3, %v5085_v3, %v2352_v13  ;;  %v2358_v16 = vmul.f32 %v4094_v51, %v2357_v10 }
 0x462   : > { %v2259_v5 = vmin.f32 %v5107_v44, 20.0  ;;  %2502 = vperm.xlu2 %3940, %v5111_v9   ;;  %vm2243_vm9 = vcmp.gt.f32.partialorder %v5107_v44, 20.0 }
 0x464   : > { %v4098_v11 = vpop.eup %4097  ;;  %v2283_v57 = vmul.f32 1.442695, %v2259_v5 }
 0x465   : > { %v4100_v12 = vpop.eup %4099  ;;  %v2362_v4 = vadd.f32 1.0, %v4098_v11  ;;  %v2365_v21 = vmul.f32 -0.5, %v4098_v11  ;;  %v2368_v32 = vand.u32 2147483647, %v4098_v11 }
 0x466   : > { %4101 = vpow2.f32 %v2283_v57  ;;  %v2101_v22 = vpop.f32.mrf.mxu0  ;;  %v2355_v14 = vmul.f32 0.6931472, %v4100_v12 }
 0x467   : > { %v2214_v7 = vpop.f32.mrf.mxu1  ;;  %4103 = vlog2.f32 %v2362_v4  ;;  %v2366_v39 = vadd.f32 1.0, %v2365_v21  ;;  %vm2369_vm6 = vcmp.lt.f32.partialorder %v2368_v32, 0.0004427343 }
 0x468   : > { %v5115_v3 = vadd.f32 %v2214_v7, %v2101_v22  ;;  %v2361_v25 = vsel %vm2360_vm4, %v2358_v16, %v2355_v14 }
 0x469   : > { %v5119_v8 = vsel %vm2241_vm5, %v5091_v35, %v2361_v25  ;;  %v2367_v41 = vmul.f32 %v4098_v11, %v2366_v39 }
 0x46a   : > { %v2260_v38 = vmin.f32 %v5115_v3, 20.0  ;;  %2507 = vperm.xlu1 %3939, %v5119_v8   ;;  %vm2244_vm11 = vcmp.gt.f32.partialorder %v5115_v3, 20.0 }
 0x46c   : > { %v4102_v30 = vpop.eup %4101  ;;  %v2285_v17 = vmul.f32 1.442695, %v2260_v38 }
 0x46d   : > { %v4104_v62 = vpop.eup %4103  ;;  %v2371_v31 = vadd.f32 1.0, %v4102_v30  ;;  %v2374_v46 = vmul.f32 -0.5, %v4102_v30  ;;  %v2377_v52 = vand.u32 2147483647, %v4102_v30 }
 0x46e   : > { %4105 = vpow2.f32 %v2285_v17  ;;  %v2104_v28 = vpop.f32.mrf.mxu0  ;;  %v2364_v50 = vmul.f32 0.6931472, %v4104_v62 }
 0x46f   : > { %v2217_v42 = vpop.f32.mrf.mxu1  ;;  %4107 = vlog2.f32 %v2371_v31  ;;  %v2375_v60 = vadd.f32 1.0, %v2374_v46  ;;  %vm2378_vm8 = vcmp.lt.f32.partialorder %v2377_v52, 0.0004427343 }
 0x470   : > { %v5123_v35 = vadd.f32 %v2217_v42, %v2104_v28  ;;  %v2370_v48 = vsel %vm2369_vm6, %v2367_v41, %v2364_v50 }
 0x471   : > { %v5127_v26 = vsel %vm2242_vm7, %v5099_v24, %v2370_v48  ;;  %v2376_v13 = vmul.f32 %v4102_v30, %v2375_v60 }
 0x472   : > { %v2261_v51 = vmin.f32 %v5123_v35, 20.0  ;;  %2512 = vperm.xlu2 %3940, %v5127_v26   ;;  %vm2245_vm13 = vcmp.gt.f32.partialorder %v5123_v35, 20.0 }
 0x474   : > { %v4106_v55 = vpop.eup %4105  ;;  %v2287_v61 = vmul.f32 1.442695, %v2261_v51 }
 0x475   : > { %v4108_v36 = vpop.eup %4107  ;;  %v2380_v45 = vadd.f32 1.0, %v4106_v55  ;;  %v2383_v5 = vmul.f32 -0.5, %v4106_v55  ;;  %v2386_v4 = vand.u32 2147483647, %v4106_v55 }
 0x476   : > { %4109 = vpow2.f32 %v2287_v61  ;;  %v2107_v33 = vpop.f32.mrf.mxu0  ;;  %v2373_v54 = vmul.f32 0.6931472, %v4108_v36 }
 0x477   : > { %4111 = vlog2.f32 %v2380_v45  ;;  %v2220_v10 = vpop.f32.mrf.mxu1  ;;  %v2384_v57 = vadd.f32 1.0, %v2383_v5  ;;  %vm2387_vm10 = vcmp.lt.f32.partialorder %v2386_v4, 0.0004427343 }
 0x478   : > { %v2379_v24 = vsel %vm2378_vm8, %v2376_v13, %v2373_v54  ;;  %v2221_v1 = vadd.f32 %v2220_v10, %v2107_v33 }
 0x479   : > { %v5133_v11 = vsel %vm2243_vm9, %v5107_v44, %v2379_v24  ;;  %v2385_v38 = vmul.f32 %v4106_v55, %v2384_v57 }
 0x47a   : > { %2517 = vperm.xlu1 %3939, %v5133_v11   ;;  %v2262_v12 = vmin.f32 %v2221_v1, 20.0  ;;  %vm2246_vm15 = vcmp.gt.f32.partialorder %v2221_v1, 20.0 }
 0x47c   : > { %v4110_v22 = vpop.eup %4109  ;;  %v2289_v16 = vmul.f32 1.442695, %v2262_v12 }
 0x47d   : > { %v4112_v14 = vpop.eup %4111  ;;  %v2389_v21 = vadd.f32 1.0, %v4110_v22  ;;  %v2392_v39 = vmul.f32 -0.5, %v4110_v22  ;;  %v2395_v28 = vand.u32 2147483647, %v4110_v22 }
 0x47e   : > { %v2110_v7 = vpop.f32.mrf.mxu0  ;;  %v2382_v25 = vmul.f32 0.6931472, %v4112_v14  ;;  %4113 = vpow2.f32 %v2289_v16 }
 0x47f   : > { %v2223_v32 = vpop.f32.mrf.mxu1  ;;  %4115 = vlog2.f32 %v2389_v21  ;;  %v2393_v31 = vadd.f32 1.0, %v2392_v39  ;;  %vm2396_vm12 = vcmp.lt.f32.partialorder %v2395_v28, 0.0004427343 }
 0x480   : > { %v2388_v44 = vsel %vm2387_vm10, %v2385_v38, %v2382_v25  ;;  %v2224_v30 = vadd.f32 %v2223_v32, %v2110_v7 }
 0x481   : > { %v5138_v17 = vsel %vm2244_vm11, %v5115_v3, %v2388_v44  ;;  %v2394_v60 = vmul.f32 %v4110_v22, %v2393_v31 }
 0x482   : > { %2522 = vperm.xlu2 %3940, %v5138_v17   ;;  %v2263_v62 = vmin.f32 %v2224_v30, 20.0  ;;  %vm2247_vm2 = vcmp.gt.f32.partialorder %v2224_v30, 20.0 }
 0x484   : > { %v4114_v50 = vpop.eup %4113  ;;  %v2291_v41 = vmul.f32 1.442695, %v2263_v62 }
 0x485   : > { %v4116_v46 = vpop.eup %4115  ;;  %v2398_v48 = vadd.f32 1.0, %v4114_v50  ;;  %v2401_v52 = vmul.f32 -0.5, %v4114_v50  ;;  %v2404_v54 = vand.u32 2147483647, %v4114_v50 }
 0x486   : > { %v2113_v42 = vpop.f32.mrf.mxu0  ;;  %4117 = vpow2.f32 %v2291_v41  ;;  %v2391_v51 = vmul.f32 0.6931472, %v4116_v46 }
 0x487   : > { %v2226_v55 = vpop.f32.mrf.mxu1  ;;  %4119 = vlog2.f32 %v2398_v48  ;;  %v2402_v33 = vadd.f32 1.0, %v2401_v52  ;;  %vm2405_vm14 = vcmp.lt.f32.partialorder %v2404_v54, 0.0004427343 }
 0x488   : > { %v2227_v61 = vadd.f32 %v2226_v55, %v2113_v42  ;;  %v2397_v3 = vsel %vm2396_vm12, %v2394_v60, %v2391_v51 }
 0x489   : > { %v5143_v36 = vsel %vm2245_vm13, %v5123_v35, %v2397_v3  ;;  %v2403_v4 = vmul.f32 %v4114_v50, %v2402_v33 }
 0x48a   : > { %v2264_v45 = vmin.f32 %v2227_v61, 20.0  ;;  %2527 = vperm.xlu1 %3939, %v5143_v36   ;;  %vm2248_vm4 = vcmp.gt.f32.partialorder %v2227_v61, 20.0 }
 0x48c   : > { %v4118_v13 = vpop.eup %4117  ;;  %v2293_v5 = vmul.f32 1.442695, %v2264_v45 }
 0x48d   : > { %v4120_v10 = vpop.eup %4119  ;;  %v2407_v57 = vadd.f32 1.0, %v4118_v13  ;;  %v2410_v22 = vmul.f32 -0.5, %v4118_v13  ;;  %v2413_v38 = vand.u32 2147483647, %v4118_v13 }
 0x48e   : > { %v2116_v24 = vpop.f32.mrf.mxu0  ;;  %4121 = vpow2.f32 %v2293_v5  ;;  %v2400_v12 = vmul.f32 0.6931472, %v4120_v10 }
 0x48f   : > { %v2229_v14 = vpop.f32.mrf.mxu1  ;;  %4123 = vlog2.f32 %v2407_v57  ;;  %v2411_v25 = vadd.f32 1.0, %v2410_v22  ;;  %vm2414_vm0 = vcmp.lt.f32.partialorder %v2413_v38, 0.0004427343 }
 0x490   : > { %v2230_v16 = vadd.f32 %v2229_v14, %v2116_v24  ;;  %v2406_v35 = vsel %vm2405_vm14, %v2403_v4, %v2400_v12 }
 0x491   : > { %v5146_v21 = vsel %vm2246_vm15, %v2221_v1, %v2406_v35  ;;  %v2412_v50 = vmul.f32 %v4118_v13, %v2411_v25 }
 0x492   : > { %v2265_v7 = vmin.f32 %v2230_v16, 20.0  ;;  %2532 = vperm.xlu2 %3940, %v5146_v21   ;;  %vm2249_vm6 = vcmp.gt.f32.partialorder %v2230_v16, 20.0 }
 0x494   : > { %v4122_v39 = vpop.eup %4121  ;;  %v2295_v32 = vmul.f32 1.442695, %v2265_v7 }
 0x495   : > { %v4124_v44 = vpop.eup %4123  ;;  %v2416_v31 = vadd.f32 1.0, %v4122_v39  ;;  %v2419_v41 = vmul.f32 -0.5, %v4122_v39  ;;  %v2422_v52 = vand.u32 2147483647, %v4122_v39 }
 0x496   : > { %v2119_v62 = vpop.f32.mrf.mxu0  ;;  %4125 = vpow2.f32 %v2295_v32  ;;  %v2409_v28 = vmul.f32 0.6931472, %v4124_v44 }
 0x497   : > { %v2232_v46 = vpop.f32.mrf.mxu1  ;;  %4127 = vlog2.f32 %v2416_v31  ;;  %v2420_v60 = vadd.f32 1.0, %v2419_v41  ;;  %vm2423_vm3 = vcmp.lt.f32.partialorder %v2422_v52, 0.0004427343 }
 0x498   : > { %v2233_v42 = vadd.f32 %v2232_v46, %v2119_v62  ;;  %v2415_v1 = vsel %vm2414_vm0, %v2412_v50, %v2409_v28 }
 0x499   : > { %v5149_v48 = vsel %vm2247_vm2, %v2224_v30, %v2415_v1  ;;  %v2421_v13 = vmul.f32 %v4122_v39, %v2420_v60 }
 0x49a   : > { %v2266_v51 = vmin.f32 %v2233_v42, 20.0  ;;  %2537 = vperm.xlu1 %3939, %v5149_v48   ;;  %vm2250_vm8 = vcmp.gt.f32.partialorder %v2233_v42, 20.0 }
 0x49c   : > { %v4126_v55 = vpop.eup %4125  ;;  %v2297_v3 = vmul.f32 1.442695, %v2266_v51  ;;  %v4220_v51 = vmov 0.0  }
 0x49d   : > { %v4128_v45 = vpop.eup %4127  ;;  %v2425_v33 = vadd.f32 1.0, %v4126_v55  ;;  %v2428_v5 = vmul.f32 -0.5, %v4126_v55  ;;  %v2431_v57 = vand.u32 2147483647, %v4126_v55  ;;  %1145 = vst [vmem:[#allocation4] sm:$0x1] %v4220_v51 }
 0x49e   : > { %4129 = vpow2.f32 %v2297_v3  ;;  %v2418_v54 = vmul.f32 0.6931472, %v4128_v45  ;;  %1146 = vst [vmem:[#allocation5] sm:$0x1] %v4220_v51  ;;  %v5211_v51 = vld [vmem:[%s5586_s5 + $0x34] sm:$0xff]  }
 0x49f   : > { %4131 = vlog2.f32 %v2425_v33  ;;  %v2429_v30 = vadd.f32 1.0, %v2428_v5  ;;  %vm2432_vm5 = vcmp.lt.f32.partialorder %v2431_v57, 0.0004427343  ;;  %v5174_v5 = vld [vmem:[%s5586_s5] sm:$0xff]   ;;  %v2472_v49 = vunpack.c.l.bf16 %v5211_v51 }
 0x4a0   : > { %v2424_v10 = vsel %vm2423_vm3, %v2421_v13, %v2418_v54  ;;  %v5169_v13 = vld [vmem:[%s5586_s5 + $0x8] sm:$0xff]  }
 0x4a1   : > { %v5152_v24 = vsel %vm2248_vm4, %v2227_v61, %v2424_v10  ;;  %v2430_v35 = vmul.f32 %v4126_v55, %v2429_v30  ;;  %v5179_v10 = vld [vmem:[%s5586_s5 + $0x14] sm:$0xff]   ;;  %v5184_v30 = vld [vmem:[%s5586_s5 + $0x1c] sm:$0xff]  }
 0x4a2   : > { %2542 = vperm.xlu2 %3940, %v5152_v24   ;;  %v5654_v0 = vunpack.c.l.bf16 %v5184_v30  ;;  %v5655_v34 = vunpack.c.h.bf16 %v5179_v10 }
 0x4a4   : > { %v4130_v12 = vpop.eup %4129  ;;  %v2488_v50 = vpop.permute.xlu2 %2487 }
 0x4a5   : > { %v4132_v4 = vpop.eup %4131  ;;  %v2434_v22 = vadd.f32 1.0, %v4130_v12  ;;  %v2437_v7 = vmul.f32 -0.5, %v4130_v12  ;;  %v2440_v39 = vand.u32 2147483647, %v4130_v12 }
 0x4a6   : > { %v2427_v14 = vmul.f32 0.6931472, %v4132_v4  ;;  %v5190_v4 = vld [vmem:[%s5586_s5 + $0x24] sm:$0xff]  }
 0x4a7   : > { %4133 = vlog2.f32 %v2434_v22  ;;  %v2438_v61 = vadd.f32 1.0, %v2437_v7  ;;  %vm2441_vm7 = vcmp.lt.f32.partialorder %v2440_v39, 0.0004427343  ;;  %v5560_v22 = vunpack.c.l.bf16 %v5169_v13 }
 0x4a8   : > { %v2433_v25 = vsel %vm2432_vm5, %v2430_v35, %v2427_v14  ;;  %v5561_v14 = vunpack.c.l.bf16 %v5174_v5  ;;  %v5563_v35 = vunpack.c.l.bf16 %v5179_v10  ;;  %v5656_v39 = vunpack.c.h.bf16 %v5184_v30 }
 0x4a9   : > { %v5155_v38 = vsel %vm2249_vm6, %v2230_v16, %v2433_v25  ;;  %v2439_v62 = vmul.f32 %v4130_v12, %v2438_v61  ;;  %v5199_v25 = vld [vmem:[%s5586_s5 + $0x2c] sm:$0xff]   ;;  %v1170_v61 = vld [vmem:[%s5586_s5 + $0x3c] sm:$0xf] }
 0x4aa   : > { %2547 = vperm.xlu1 %3939, %v5155_v38   ;;  %v2474_v43 = vunpack.c.l.bf16 %v1170_v61 }
 0x4ac   : > { %v2478_v41 = vpop.permute.xlu1 %2477  ;;  %v2493_v46 = vpop.permute.xlu2 %2492 }
 0x4ad   : > { %v4134_v32 = vpop.eup %4133 }
 0x4ae   : > { %v2436_v44 = vmul.f32 0.6931472, %v4134_v32  ;;  %v2469_v32 = vunpack.c.h.bf16 %v5190_v4 }
 0x4b0   : > { %v2442_v31 = vsel %vm2441_vm7, %v2439_v62, %v2436_v44  ;;  %v2471_v44 = vunpack.c.h.bf16 %v5199_v25 }
 0x4b1   : > { %v5158_v28 = vsel %vm2250_vm8, %v2233_v42, %v2442_v31  ;;  %v5164_v42 = vld [vmem:[%s5586_s5 + $0x10] sm:$0xf] }
 0x4b2   : > { %2552 = vperm.xlu2 %3940, %v5158_v28   ;;  %v5552_v57 = vunpack.c.l.bf16 %v5164_v42 }
 0x4b4   : > { %v2483_v1 = vpop.permute.xlu1 %2482 }
 0x4bc   : > { %v2503_v16 = vpop.permute.xlu2 %2502 }
 0x4bd   : > { %v2560_v31 = vmul.f32 %v2503_v16, %v5563_v35  ;;  %v5659_v16 = vunpack.c.l.bf16 %v5190_v4 }
 0x4cc   : > { %v2498_v60 = vpop.permute.xlu1 %2497  ;;  %v2513_v52 = vpop.permute.xlu2 %2512 }
 0x4cd   : > { %v2559_v62 = vmul.f32 %v2498_v60, %v5552_v57  ;;  %v2557_v60 = vmul.f32 %v2488_v50, %v5560_v22  ;;  %v2555_v57 = vmul.f32 %v2478_v41, %v5561_v14  ;;  %v2562_v29 = vmul.f32 %v2513_v52, %v5654_v0 }
 0x4ce   : > { %v5657_v50 = vunpack.c.h.bf16 %v5169_v13  ;;  %v5658_v41 = vunpack.c.h.bf16 %v5174_v5  ;;  %v5660_v52 = vunpack.c.l.bf16 %v5199_v25 }
 0x4cf   : > { %v2571_v63 = vmax.f32 %v2555_v57, %v2559_v62 }
 0x4d0   : > { %v2558_v22 = vmul.f32 %v2493_v46, %v5657_v50  ;;  %v2556_v14 = vmul.f32 %v2483_v1, %v5658_v41 }
 0x4d2   : > { %v2574_v61 = vmax.f32 %v2558_v22, %v2562_v29 }
 0x4dc   : > { %v2508_v55 = vpop.permute.xlu1 %2507  ;;  %v2523_v3 = vpop.permute.xlu2 %2522 }
 0x4dd   : > { %v2561_v40 = vmul.f32 %v2508_v55, %v5655_v34  ;;  %v2564_v35 = vmul.f32 %v2523_v3, %v5659_v16 }
 0x4df   : > { %v2573_v20 = vmax.f32 %v2557_v60, %v2561_v40 }
 0x4ec   : > { %v2518_v45 = vpop.permute.xlu1 %2517  ;;  %v2533_v33 = vpop.permute.xlu2 %2532 }
 0x4ed   : > { %v2563_v23 = vmul.f32 %v2518_v45, %v5656_v39  ;;  %v2566_v34 = vmul.f32 %v2533_v33, %v5660_v52  ;;  %v2473_v45 = vunpack.c.h.bf16 %v5211_v51  ;;  %v2572_v39 = vmax.f32 %v2556_v14, %v2560_v31 }
 0x4ef   : > { %v2575_v59 = vmax.f32 %v2571_v63, %v2563_v23  ;;  %v2576_v15 = vmax.f32 %v2572_v39, %v2564_v35  ;;  %v2578_v57 = vmax.f32 %v2574_v61, %v2566_v34  ;;  %v2592_v23 = vld [vmem:[#allocation4] sm:$0x1]  ;;  %v5661_v34 = vunpack.c.h.bf16 %v5184_v30 }
 0x4f0   : > { %v5665_v61 = vunpack.c.l.bf16 %v5164_v42 }
 0x4fc   : > { %v2528_v54 = vpop.permute.xlu1 %2527  ;;  %v2543_v12 = vpop.permute.xlu2 %2542 }
 0x4fd   : > { %v2565_v55 = vmul.f32 %v2528_v54, %v2469_v32  ;;  %v2568_v46 = vmul.f32 %v2543_v12, %v2472_v49 }
 0x4ff   : > { %v2577_v62 = vmax.f32 %v2573_v20, %v2565_v55  ;;  %v2580_v16 = vmax.f32 %v2576_v15, %v2568_v46 }
 0x50c   : > { %v2538_v7 = vpop.permute.xlu1 %2537  ;;  %v2553_v0 = vpop.permute.xlu2 %2552 }
 0x50d   : > { %v2567_v53 = vmul.f32 %v2538_v7, %v2471_v44  ;;  %v2570_v50 = vmul.f32 %v2553_v0, %v2474_v43 }
 0x50f   : > { %v2579_v41 = vmax.f32 %v2575_v59, %v2567_v53  ;;  %v2582_v2 = vmax.f32 %v2578_v57, %v2570_v50  ;;  %v5666_v50 = vunpack.c.l.bf16 %v5184_v30  ;;  %v5671_v30 = vunpack.c.h.bf16 %v5174_v5 }
 0x511   : > { %v2583_v33 = vmax.f32 %v2579_v41, %v2580_v16  ;;  %v5670_v16 = vunpack.c.h.bf16 %v5169_v13 }
 0x51c   : > { %v2548_v1 = vpop.permute.xlu1 %2547 }
 0x51d   : > { %v2569_v3 = vmul.f32 %v2548_v1, %v2473_v45 }
 0x51f   : > { %v2581_v37 = vmax.f32 %v2577_v62, %v2569_v3  ;;  %v5668_v62 = vunpack.c.l.bf16 %v5179_v10 }
 0x521   : > { %v2584_v54 = vmax.f32 %v2581_v37, %v2582_v2  ;;  %v2597_v2 = vld [vmem:[#allocation5] sm:$0x1] }
 0x523   : > { %v2585_v7 = vmax.f32 %v2583_v33, %v2584_v54 }
 0x525   : > { %v2586_v52 = vrot.slane %v2585_v7, 4 }
 0x527   : > { %v2587_v51 = vmax.f32 %v2585_v7, %v2586_v52 }
 0x529   : > { %v2588_v14 = vrot.slane %v2587_v51, 2 }
 0x52b   : > { %v2589_v29 = vmax.f32 %v2587_v51, %v2588_v14 }
 0x52d   : > { %v2590_v40 = vrot.slane %v2589_v29, 1 }
 0x52f   : > { %v2591_v63 = vmax.f32 %v2589_v29, %v2590_v40 }
 0x531   : > { %v2593_v12 = vmax.f32 %v2592_v23, %v2591_v63 }
 0x533   : > { %v2594_v22 = vsub.f32 %v2592_v23, %v2593_v12  ;;  %2627 = vst [vmem:[#allocation4] sm:$0x1] %v2593_v12  ;;  %v2629_v35 = vperm.slane %v2593_v12, 0 }
 0x535   : > { %v2646_v20 = vmul.f32 %v2629_v35, %v2474_v43  ;;  %v2645_v53 = vmul.f32 %v2629_v35, %v2473_v45  ;;  %v2643_v59 = vmul.f32 %v2629_v35, %v2471_v44  ;;  %v2595_v15 = vmul.f32 1.442695, %v2594_v22 }
 0x536   : > { %v2641_v37 = vmul.f32 %v2629_v35, %v2469_v32  ;;  %v2644_v31 = vmul.f32 %v2629_v35, %v2472_v49  ;;  %v2639_v43 = vmul.f32 %v2629_v35, %v5661_v34  ;;  %v5662_v44 = vunpack.c.l.bf16 %v5199_v25 }
 0x537   : > { %2677 = vadd.xlane.f32.xlu1 %v2646_v20  ;;  %2675 = vadd.xlane.f32.xlu0 %v2645_v53  ;;  %4135 = vpow2.f32 %v2595_v15  ;;  %v5663_v45 = vunpack.c.h.bf16 %v5179_v10  ;;  %v5664_v49 = vunpack.c.l.bf16 %v5190_v4  ;;  %v2635_v46 = vmul.f32 %v2629_v35, %v5665_v61 }
 0x538   : > { %2671 = vadd.xlane.f32.xlu2 %v2643_v59  ;;  %v2642_v55 = vmul.f32 %v2629_v35, %v5662_v44  ;;  %v2638_v1 = vmul.f32 %v2629_v35, %v5666_v50  ;;  %v5667_v25 = vunpack.c.l.bf16 %v5169_v13  ;;  %v2636_v41 = vmul.f32 %v2629_v35, %v5668_v62 }
 0x539   : > { %v2637_v32 = vmul.f32 %v2629_v35, %v5663_v45  ;;  %v2640_v39 = vmul.f32 %v2629_v35, %v5664_v49  ;;  %v5669_v4 = vunpack.c.l.bf16 %v5174_v5  ;;  %v2634_v42 = vmul.f32 %v2629_v35, %v5670_v16 }
 0x53a   : > { %v2633_v57 = vmul.f32 %v2629_v35, %v5667_v25  ;;  %v2632_v33 = vmul.f32 %v2629_v35, %v5671_v30 }
 0x53b   : > { %v2631_v3 = vmul.f32 %v2629_v35, %v5669_v4 }
 0x53d   : > { %v5241_v60 = vpop.eup %4135 }
 0x53e   : > { %v2598_v0 = vmul.f32 %v5241_v60, %v2597_v2 }
 0x53f   : > { %2667 = vadd.xlane.f32.xlu1 %v2641_v37 }
 0x540   : > { %2673 = vadd.xlane.f32.xlu2 %v2644_v31  ;;  %2599 = vst [vmem:[#allocation5] sm:$0x1] %v2598_v0 }
 0x547   : > { %2663 = vadd.xlane.f32.xlu1 %v2639_v43 }
 0x548   : > { %2669 = vadd.xlane.f32.xlu2 %v2642_v55 }
 0x54f   : > { %2659 = vadd.xlane.f32.xlu1 %v2637_v32 }
 0x550   : > { %2665 = vadd.xlane.f32.xlu2 %v2640_v39 }
 0x557   : > { %2655 = vadd.xlane.f32.xlu1 %v2635_v46 }
 0x558   : > { %2661 = vadd.xlane.f32.xlu2 %v2638_v1 }
 0x55f   : > { %2651 = vadd.xlane.f32.xlu1 %v2633_v57 }
 0x560   : > { %2657 = vadd.xlane.f32.xlu2 %v2636_v41 }
 0x567   : > { %2647 = vadd.xlane.f32.xlu1 %v2631_v3 }
 0x568   : > { %2653 = vadd.xlane.f32.xlu2 %v2634_v42 }
 0x570   : > { %2649 = vadd.xlane.f32.xlu2 %v2632_v33 }
 0x5aa   : > { %v2678_v54 = vpop.xlane.xlu1 %2677  ;;  %v2676_v7 = vpop.xlane.xlu0 %2675 }
 0x5ab   : > { %v2694_v52 = vsub.f32 %v5158_v28, %v2678_v54  ;;  %v2693_v10 = vsub.f32 %v5155_v38, %v2676_v7  ;;  %v2672_v51 = vpop.xlane.xlu2 %2671 }
 0x5ac   : > { %v2691_v14 = vsub.f32 %v5149_v48, %v2672_v51 }
 0x5ad   : > { %v2725_v29 = vmul.f32 1.442695, %v2694_v52  ;;  %v2723_v40 = vmul.f32 1.442695, %v2693_v10 }
 0x5ae   : > { %v2719_v23 = vmul.f32 1.442695, %v2691_v14 }
 0x5af   : > { %4137 = vpow2.f32 %v2725_v29 }
 0x5b0   : > { %4139 = vpow2.f32 %v2723_v40 }
 0x5b1   : > { %4141 = vpow2.f32 %v2719_v23 }
 0x5b2   : > { %v2668_v13 = vpop.xlane.xlu1 %2667 }
 0x5b3   : > { %v2674_v63 = vpop.xlane.xlu2 %2673  ;;  %v2689_v5 = vsub.f32 %v5143_v36, %v2668_v13 }
 0x5b4   : > { %v2692_v12 = vsub.f32 %v5152_v24, %v2674_v63  ;;  %v3007_v63 = vld [vmem:[%s4383_s4] sm:$0xff] }
 0x5b5   : > { %v4138_v22 = vpop.eup %4137  ;;  %v2715_v35 = vmul.f32 1.442695, %v2689_v5  ;;  %v3008_v5 = vld [vmem:[%s4383_s4 + $0x8] sm:$0xff] }
 0x5b6   : > { %v4140_v28 = vpop.eup %4139  ;;  %v2721_v20 = vmul.f32 1.442695, %v2692_v12  ;;  %2844 = vperm.xlu2 %3940, %v4138_v22  }
 0x5b7   : > { %v4142_v38 = vpop.eup %4141  ;;  %4143 = vpow2.f32 %v2715_v35  ;;  %2839 = vperm.xlu1 %3939, %v4140_v28   ;;  %v2735_v48 = vpack.c.bf16 %v4138_v22, %v4140_v28  ;;  %v3010_v22 = vld [vmem:[%s4383_s4 + $0x18] sm:$0xff]  ;;  %v3009_v35 = vld [vmem:[%s4383_s4 + $0x10] sm:$0xff]  ;;  %v3011_v28 = vld [vmem:[%s4383_s4 + $0x20] sm:$0xff] }
 0x5b8   : > { %4145 = vpow2.f32 %v2721_v20  ;;  %2829 = vperm.xlu0 %3941, %v4142_v38   ;;  %v3013_v20 = vld [vmem:[%s4383_s4 + $0x30] sm:$0xff] }
 0x5b9   : > { %3876 = vmatpush.lsf.bf16.msrb.mxu2 %v2735_v48  ;;  %v3014_v48 = vld [vmem:[%s4383_s4 + $0x38] sm:$0xff] }
 0x5ba   : > { %v2664_v53 = vpop.xlane.xlu1 %2663 }
 0x5bb   : > { %v2670_v59 = vpop.xlane.xlu2 %2669  ;;  %v2687_v15 = vsub.f32 %v5133_v11, %v2664_v53  ;;  %v3245_v53 = vld [vmem:[%s4388_s0 + $0x10] sm:$0xff] }
 0x5bc   : > { %v2690_v36 = vsub.f32 %v5146_v21, %v2670_v59  ;;  %v3243_v59 = vld [vmem:[%s4388_s0] sm:$0xff] }
 0x5bd   : > { %v4144_v37 = vpop.eup %4143  ;;  %v2711_v24 = vmul.f32 1.442695, %v2687_v15  ;;  %v3244_v15 = vld [vmem:[%s4388_s0 + $0x8] sm:$0xff] }
 0x5be   : > { %v4146_v2 = vpop.eup %4145  ;;  %v2717_v31 = vmul.f32 1.442695, %v2690_v36  ;;  %2819 = vperm.xlu2 %3940, %v4144_v37   ;;  %v3249_v36 = vld [vmem:[%s4388_s0 + $0x30] sm:$0xff] }
 0x5bf   : > { %4147 = vpow2.f32 %v2711_v24  ;;  %2834 = vperm.xlu1 %3939, %v4146_v2   ;;  %v2734_v0 = vpack.c.bf16 %v4146_v2, %v4142_v38  ;;  %v3012_v38 = vld [vmem:[%s4383_s4 + $0x28] sm:$0xff]  ;;  %v3247_v24 = vld [vmem:[%s4388_s0 + $0x20] sm:$0xff] }
 0x5c0   : > { %4149 = vpow2.f32 %v2717_v31  ;;  %v3300_v2 = vld [vmem:[%s4393_s24 + $0x8] sm:$0xff] }
 0x5c1   : > { %3877 = vmatpush.lsf.bf16.msrb.mxu2 %v2734_v0  ;;  %v3248_v31 = vld [vmem:[%s4388_s0 + $0x28] sm:$0xff]  ;;  %v3250_v0 = vld [vmem:[%s4388_s0 + $0x38] sm:$0xff] }
 0x5c2   : > { %v2660_v34 = vpop.xlane.xlu1 %2659 }
 0x5c3   : > { %v2666_v43 = vpop.xlane.xlu2 %2665  ;;  %v2685_v44 = vsub.f32 %v5119_v8, %v2660_v34  ;;  %v3299_v34 = vld [vmem:[%s4393_s24] sm:$0xff] }
 0x5c4   : > { %v2688_v55 = vsub.f32 %v5138_v17, %v2666_v43 }
 0x5c5   : > { %v4148_v45 = vpop.eup %4147  ;;  %v2707_v11 = vmul.f32 1.442695, %v2685_v44 }
 0x5c6   : > { %v4150_v32 = vpop.eup %4149  ;;  %v2713_v21 = vmul.f32 1.442695, %v2688_v55  ;;  %2809 = vperm.xlu2 %3940, %v4148_v45  }
 0x5c7   : > { %4151 = vpow2.f32 %v2707_v11  ;;  %2824 = vperm.xlu1 %3939, %v4150_v32   ;;  %v2733_v49 = vpack.c.bf16 %v4150_v32, %v4144_v37  ;;  %v3246_v37 = vld [vmem:[%s4388_s0 + $0x18] sm:$0xff]  ;;  %s5688_s0 = sld [smem:[#allocation33_spill]] (%p3363_p6) }
 0x5c8   : > { %4153 = vpow2.f32 %v2713_v21 }
 0x5c9   : > { %3878 = vmatpush.lsf.bf16.msrb.mxu2 %v2733_v49 }
 0x5ca   : > { %v2656_v39 = vpop.xlane.xlu1 %2655 }
 0x5cb   : > { %v2662_v61 = vpop.xlane.xlu2 %2661  ;;  %v2683_v46 = vsub.f32 %v5103_v58, %v2656_v39  ;;  %v5672_v39 = vld [vmem:[#allocation23_spill] sm:$0xff] }
 0x5cc   : > { %v2686_v50 = vsub.f32 %v5127_v26, %v2662_v61 }
 0x5cd   : > { %v4152_v1 = vpop.eup %4151  ;;  %v2703_v8 = vmul.f32 1.442695, %v2683_v46  ;;  %v5673_v46 = vld [vmem:[#allocation24_spill] sm:$0xff] }
 0x5ce   : > { %v4154_v25 = vpop.eup %4153  ;;  %v2709_v17 = vmul.f32 1.442695, %v2686_v50  ;;  %2799 = vperm.xlu2 %3940, %v4152_v1  }
 0x5cf   : > { %4155 = vpow2.f32 %v2703_v8  ;;  %2814 = vperm.xlu1 %3939, %v4154_v25   ;;  %v2732_v57 = vpack.c.bf16 %v4154_v25, %v4148_v45 }
 0x5d0   : > { %4157 = vpow2.f32 %v2709_v17  ;;  %v5674_v17 = vld [vmem:[#allocation21_spill] sm:$0xff] }
 0x5d1   : > { %3879 = vmatpush.lsf.bf16.msrb.mxu2 %v2732_v57 }
 0x5d2   : > { %v2652_v62 = vpop.xlane.xlu1 %2651 }
 0x5d3   : > { %v2658_v41 = vpop.xlane.xlu2 %2657  ;;  %v2681_v4 = vsub.f32 %v5087_v56, %v2652_v62  ;;  %v5675_v62 = vld [vmem:[#allocation22_spill] sm:$0xff] }
 0x5d4   : > { %v2684_v3 = vsub.f32 %v5111_v9, %v2658_v41 }
 0x5d5   : > { %v4156_v16 = vpop.eup %4155  ;;  %v2699_v58 = vmul.f32 1.442695, %v2681_v4 }
 0x5d6   : > { %v4158_v42 = vpop.eup %4157  ;;  %v2705_v26 = vmul.f32 1.442695, %v2684_v3  ;;  %2789 = vperm.xlu2 %3940, %v4156_v16   ;;  %v5676_v3 = vld [vmem:[#allocation19_spill] sm:$0xff] }
 0x5d7   : > { %4159 = vpow2.f32 %v2699_v58  ;;  %2804 = vperm.xlu1 %3939, %v4158_v42   ;;  %v2731_v30 = vpack.c.bf16 %v4158_v42, %v4152_v1  ;;  %v5677_v58 = vld [vmem:[#allocation20_spill] sm:$0xff] }
 0x5d8   : > { %4161 = vpow2.f32 %v2705_v26 }
 0x5d9   : > { %3880 = vmatpush.lsf.bf16.msrb.mxu2 %v2731_v30 }
 0x5da   : > { %v2648_v33 = vpop.xlane.xlu1 %2647 }
 0x5db   : > { %v2654_v54 = vpop.xlane.xlu2 %2653  ;;  %v2679_v7 = vsub.f32 %v5075_v18, %v2648_v33  ;;  %v5678_v33 = vld [vmem:[#allocation17_spill] sm:$0xff] }
 0x5dc   : > { %v2682_v52 = vsub.f32 %v5095_v19, %v2654_v54 }
 0x5dd   : > { %v4160_v10 = vpop.eup %4159  ;;  %v2695_v56 = vmul.f32 1.442695, %v2679_v7  ;;  %v5679_v7 = vld [vmem:[#allocation18_spill] sm:$0xff] }
 0x5de   : > { %v4162_v51 = vpop.eup %4161  ;;  %v2701_v9 = vmul.f32 1.442695, %v2682_v52  ;;  %2779 = vperm.xlu0 %3941, %v4160_v10  }
 0x5df   : > { %4163 = vpow2.f32 %v2695_v56  ;;  %2794 = vperm.xlu1 %3939, %v4162_v51   ;;  %v2730_v14 = vpack.c.bf16 %v4162_v51, %v4156_v16 }
 0x5e0   : > { %4165 = vpow2.f32 %v2701_v9 }
 0x5e1   : > { %3881 = vmatpush.lsf.bf16.msrb.mxu2 %v2730_v14  ;;  %v5680_v14 = vld [vmem:[#allocation15_spill] sm:$0xff] }
 0x5e3   : > { %v2650_v29 = vpop.xlane.xlu2 %2649 }
 0x5e4   : > { %v2680_v40 = vsub.f32 %v5081_v47, %v2650_v29 }
 0x5e5   : > { %v4164_v23 = vpop.eup %4163 }
 0x5e6   : > { %v4166_v13 = vpop.eup %4165  ;;  %v2697_v18 = vmul.f32 1.442695, %v2680_v40  ;;  %v5681_v40 = vld [vmem:[#allocation16_spill] sm:$0xff] }
 0x5e7   : > { %2784 = vperm.xlu2 %3940, %v4166_v13   ;;  %2769 = vperm.xlu1 %3939, %v4164_v23   ;;  %v2729_v19 = vpack.c.bf16 %v4166_v13, %v4160_v10 }
 0x5e8   : > { %4167 = vpow2.f32 %v2697_v18  ;;  %v5682_v18 = vld [vmem:[#allocation13_spill] sm:$0xff] }
 0x5e9   : > { %3882 = vmatpush.lsf.bf16.msrb.mxu2 %v2729_v19 }
 0x5ee   : > { %v4168_v12 = vpop.eup %4167 }
 0x5ef   : > { %3017 = vperm.xlu2 %3940, %v3007_v63   ;;  %2774 = vperm.xlu0 %3941, %v4168_v12   ;;  %v2728_v47 = vpack.c.bf16 %v4168_v12, %v4164_v23 }
 0x5f0   : > { %3022 = vperm.xlu1 %3939, %v3008_v5   ;;  %v5683_v5 = vld [vmem:[#allocation14_spill] sm:$0xff] }
 0x5f1   : > { %3883 = vmatpush.lsf.bf16.msrb.mxu2 %v2728_v47 }
 0x5f3   : > { %3884 = vllmr.2.mxu2 }
 0x5f7   : > { %3032 = vperm.xlu2 %3940, %v3010_v22   ;;  %3027 = vperm.xlu0 %3941, %v3009_v35  }
 0x5f8   : > { %3037 = vperm.xlu1 %3939, %v3011_v28   ;;  %v5684_v28 = vld [vmem:[#allocation11_spill] sm:$0xff] }
 0x5ff   : > { %3047 = vperm.xlu2 %3940, %v3013_v20   ;;  %3042 = vperm.xlu0 %3941, %v3012_v38   ;;  %v5685_v38 = vld [vmem:[#allocation12_spill] sm:$0xff] }
 0x600   : > { %3052 = vperm.xlu1 %3939, %v3014_v48  }
 0x607   : > { %3263 = vperm.xlu2 %3940, %v3245_v53   ;;  %3253 = vperm.xlu0 %3941, %v3243_v59   ;;  %v2727_v59 = vld [vmem:[#allocation5] sm:$0x1] }
 0x608   : > { %3258 = vperm.xlu1 %3939, %v3244_v15  }
 0x60f   : > { %3283 = vperm.xlu2 %3940, %v3249_v36   ;;  %3268 = vperm.xlu0 %3941, %v3246_v37  }
 0x610   : > { %3273 = vperm.xlu1 %3939, %v3247_v24   ;;  %v2845_v43 = vpop.permute.xlu2 %2844 }
 0x611   : > { %v2862_v55 = vmul.f32 %v2845_v43, %v5067_v6 }
 0x614   : > { %3885 = vmatmul.lmr.bf16.vlgmr.msra.gmra.2.mxu2 }
 0x617   : > { %3314 = vperm.xlu2 %3940, %v3300_v2   ;;  %3278 = vperm.xlu0 %3941, %v3248_v31   ;;  %v2960_v2 = vld [vmem:[%s5686_s1] sm:$0x1] }
 0x618   : > { %3288 = vperm.xlu1 %3939, %v3250_v0   ;;  %v2820_v32 = vpop.permute.xlu2 %2819  ;;  %v2961_v0 = vmax.f32 %v2960_v2, 1.0 }
 0x619   : > { %v2857_v57 = vmul.f32 %v2820_v32, %v5674_v17 }
 0x61a   : > { %vm2967_vm9 = vweird.f32 %v2961_v0 }
 0x61c   : > { %3886 = vmatmul.lmr.bf16.gmra.2.mxu2 }
 0x61f   : > { %3309 = vperm.xlu0 %3941, %v3299_v34  }
 0x620   : > { %v2810_v8 = vpop.permute.xlu2 %2809 }
 0x621   : > { %v2855_v16 = vmul.f32 %v2810_v8, %v5676_v3 }
 0x629   : > { %v2840_v44 = vpop.permute.xlu1 %2839 }
 0x62a   : > { %v2861_v45 = vmul.f32 %v2840_v44, %v5058_v27  ;;  %v2830_v21 = vpop.permute.xlu0 %2829  ;;  %v2800_v27 = vpop.permute.xlu2 %2799 }
 0x62b   : > { %v2859_v61 = vmul.f32 %v2830_v21, %v5672_v39  ;;  %v2853_v54 = vmul.f32 %v2800_v27, %v5678_v33 }
 0x62c   : > { %v2878_v11 = vpack.c.bf16 %v2862_v55, %v2861_v45 }
 0x62e   : > { %3890 = vmatpush.lsf.bf16.msrb.mxu3 %v2878_v11 }
 0x631   : > { %v2835_v49 = vpop.permute.xlu1 %2834 }
 0x632   : > { %v2860_v50 = vmul.f32 %v2835_v49, %v5673_v46  ;;  %v2790_v10 = vpop.permute.xlu2 %2789  ;;  %v2973_v49 = vand.u32 2147483648, %v2961_v0  ;;  %v2971_v46 = vand.u32 2147483647, %v2961_v0 }
 0x633   : > { %v2851_v29 = vmul.f32 %v2790_v10, %v5680_v14 }
 0x634   : > { %v2877_v1 = vpack.c.bf16 %v2860_v50, %v2859_v61  ;;  %v2974_v8 = vor.u32 1.1754944e-38, %v2973_v49  ;;  %vm2972_vm15 = vcmp.eq.f32.partialorder %v2971_v46, 8.507059e+37 }
 0x636   : > { %3891 = vmatpush.lsf.bf16.msrb.mxu3 %v2877_v1 }
 0x639   : > { %v2825_v25 = vpop.permute.xlu1 %2824 }
 0x63a   : > { %v2858_v41 = vmul.f32 %v2825_v25, %v5675_v62  ;;  %v2609_v25 = vperm.slane %v5241_v60, 0 }
 0x63c   : > { %v2876_v6 = vpack.c.bf16 %v2858_v41, %v2857_v57  ;;  %v2611_v27 = vmul.f32 0.0, %v2609_v25 }
 0x63e   : > { %3892 = vmatpush.lsf.bf16.msrb.mxu3 %v2876_v6 }
 0x641   : > { %v2815_v4 = vpop.permute.xlu1 %2814  ;;  %v2785_v13 = vpop.permute.xlu2 %2784 }
 0x642   : > { %v2856_v42 = vmul.f32 %v2815_v4, %v5677_v58  ;;  %v2850_v12 = vmul.f32 %v2785_v13, %v5683_v5 }
 0x644   : > { %v2875_v26 = vpack.c.bf16 %v2856_v42, %v2855_v16 }
 0x646   : > { %3893 = vmatpush.lsf.bf16.msrb.mxu3 %v2875_v26 }
 0x649   : > { %v2805_v30 = vpop.permute.xlu1 %2804  ;;  %v3018_v60 = vpop.permute.xlu2 %3017 }
 0x64a   : > { %v2854_v52 = vmul.f32 %v2805_v30, %v5679_v7  ;;  %v5323_v30 = vld [vmem:[%s5540_s16] ss:$0 sm:$0xff] }
 0x64c   : > { %v2874_v56 = vpack.c.bf16 %v2854_v52, %v2853_v54 }
 0x64e   : > { %3894 = vmatpush.lsf.bf16.msrb.mxu3 %v2874_v56 }
 0x650   : > { %v2780_v51 = vpop.permute.xlu0 %2779 }
 0x651   : > { %v2795_v9 = vpop.permute.xlu1 %2794  ;;  %v2849_v19 = vmul.f32 %v2780_v51, %v5682_v18 }
 0x652   : > { %v2852_v23 = vmul.f32 %v2795_v9, %v5681_v40 }
 0x653   : > { %v2872_v47 = vpack.c.bf16 %v2850_v12, %v2849_v19 }
 0x654   : > { %v2873_v63 = vpack.c.bf16 %v2852_v23, %v2851_v29 }
 0x656   : > { %3895 = vmatpush.lsf.bf16.msrb.mxu3 %v2873_v63 }
 0x659   : > { %v2770_v22 = vpop.permute.xlu1 %2769 }
 0x65a   : > { %3896 = vmatpush.lsf.bf16.msrb.mxu3 %v2872_v47  ;;  %v2847_v20 = vmul.f32 %v2770_v22, %v5684_v28 }
 0x661   : > { %v2775_v35 = vpop.permute.xlu0 %2774 }
 0x662   : > { %v2848_v48 = vmul.f32 %v2775_v35, %v5685_v38  ;;  %v3023_v51 = vpop.permute.xlu1 %3022  ;;  %v3033_v35 = vpop.permute.xlu2 %3032 }
 0x664   : > { %v2871_v53 = vpack.c.bf16 %v2848_v48, %v2847_v20 }
 0x666   : > { %3897 = vmatpush.lsf.bf16.msrb.mxu3 %v2871_v53 }
 0x668   : > { %3898 = vllmr.8.mxu3 }
 0x669   : > { %v3028_v18 = vpop.permute.xlu0 %3027 }
 0x689   : > { %3899 = vmatmul.lmr.bf16.vlgmr.msra.gmra.8.mxu3 }
 0x691   : > { %3900 = vmatmul.lmr.bf16.gmra.8.mxu3 }
 0x697   : > { %v2761_v15 = vpop.f32.mrf.mxu2 }
 0x698   : > { %v2765_v36 = vadd.f32 %v2761_v15, %v2727_v59  ;;  %v3038_v15 = vpop.permute.xlu1 %3037 }
 0x699   : > { %3901 = vmatmul.lmr.bf16.gmra.8.mxu3 }
 0x69a   : > { %2766 = vst [vmem:[#allocation5] sm:$0x1] %v2765_v36 }
 0x69f   : > { %v2763_v37 = vpop.f32.mrf.mxu2 }
 0x6a1   : > { %3902 = vmatmul.lmr.bf16.gmra.8.mxu3  ;;  %v2943_v24 = vld [vmem:[#allocation5] sm:$0x1] }
 0x6a2   : > { %v2944_v31 = vadd.f32 1e-16, %v2943_v24 }
 0x6a4   : > { %4169 = vrcp.f32 %v2944_v31  ;;  %v2956_v50 = vand.u32 2147483648, %v2944_v31  ;;  %vm2950_vm13 = vweird.f32 %v2944_v31  ;;  %v2954_v1 = vand.u32 2147483647, %v2944_v31 }
 0x6a5   : > { %4171 = vrcp.f32 %v2961_v0 }
 0x6a6   : > { %v2957_v62 = vor.u32 1.1754944e-38, %v2956_v50  ;;  %vm2955_vm0 = vcmp.eq.f32.partialorder %v2954_v1, 8.507059e+37 }
 0x6a9   : > { %3903 = vmatmul.lmr.bf16.gmra.8.mxu3 }
 0x6aa   : > { %v4170_v34 = vpop.eup %4169 }
 0x6ab   : > { %v4172_v43 = vpop.eup %4171  ;;  %v2946_v44 = vmul.f32 %v4170_v34, %v2944_v31  ;;  %vm2951_vm11 = vweird.f32 %v4170_v34 }
 0x6ac   : > { %v2963_v55 = vmul.f32 %v4172_v43, %v2961_v0  ;;  %vm2968_vm10 = vweird.f32 %v4172_v43  ;;  %vm2952_vm14 = vmor %vm2950_vm13, %vm2951_vm11 }
 0x6ad   : > { %v2947_v45 = vsub.f32 1.0, %v2946_v44  ;;  %vm2969_vm12 = vmor %vm2967_vm9, %vm2968_vm10 }
 0x6ae   : > { %v2964_v11 = vsub.f32 1.0, %v2963_v55 }
 0x6af   : > { %v2948_v32 = vmul.f32 %v4170_v34, %v2947_v45 }
 0x6b0   : > { %v2965_v21 = vmul.f32 %v4172_v43, %v2964_v11 }
 0x6b1   : > { %3904 = vmatmul.lmr.bf16.gmra.8.mxu3  ;;  %v2949_v39 = vadd.f32 %v4170_v34, %v2948_v32 }
 0x6b2   : > { %v2966_v61 = vadd.f32 %v4172_v43, %v2965_v21  ;;  %v3048_v21 = vpop.permute.xlu2 %3047 }
 0x6b3   : > { %v2953_v17 = vsel %vm2952_vm14, %v4170_v34, %v2949_v39  ;;  %v3043_v34 = vpop.permute.xlu0 %3042 }
 0x6b4   : > { %v2970_v57 = vsel %vm2969_vm12, %v4172_v43, %v2966_v61  ;;  %v2958_v41 = vsel %vm2955_vm0, %v2957_v62, %v2953_v17  ;;  %v3303_v62 = vld [vmem:[%s4393_s24 + $0x20] sm:$0xff] }
 0x6b5   : > { %v2975_v6 = vsel %vm2972_vm15, %v2974_v8, %v2970_v57  ;;  %v2986_v16 = vperm.slane %v2958_v41, 0  ;;  %v3053_v8 = vpop.permute.xlu1 %3052  ;;  %v3301_v57 = vld [vmem:[%s4393_s24 + $0x10] sm:$0xff]  ;;  %v3302_v41 = vld [vmem:[%s4393_s24 + $0x18] sm:$0xff] }
 0x6b6   : > { %v2997_v58 = vperm.slane %v2975_v6, 0 }
 0x6b9   : > { %3905 = vmatmul.lmr.bf16.gmra.8.mxu3 }
 0x6bb   : > { %v5360_v6 = vpop.permute.xlu0 %3253 }
 0x6c1   : > { %3906 = vmatmul.lmr.bf16.gmra.8.mxu3 }
 0x70c   : > { %v2904_v4 = vpop.f32.mrf.mxu3 }
 0x70d   : > { %v2924_v3 = vadd.f32 %v2904_v4, %v2611_v27  ;;  %v5364_v4 = vpop.permute.xlu2 %3263 }
 0x70f   : > { %v2988_v42 = vmul.f32 %v2986_v16, %v2924_v3 }
 0x711   : > { %v2999_v26 = vmul.f32 %v2997_v58, %v2988_v42 }
 0x713   : > { %v5325_v33 = vadd.f32 %v3018_v60, %v2999_v26 }
 0x714   : > { %v2906_v54 = vpop.f32.mrf.mxu3 }
 0x715   : > { %v2925_v7 = vadd.f32 %v2906_v54, %v2611_v27  ;;  %v3067_v52 = vmul.f32 %v5323_v30, %v5325_v33 }
 0x717   : > { %v2989_v10 = vmul.f32 %v2986_v16, %v2925_v7  ;;  %3075 = vadd.xlane.f32.xlu0 %v3067_v52 }
 0x719   : > { %v3000_v56 = vmul.f32 %v2997_v58, %v2989_v10 }
 0x71b   : > { %v5329_v9 = vadd.f32 %v3023_v51, %v3000_v56 }
 0x71c   : > { %v2909_v14 = vpop.f32.mrf.mxu3 }
 0x71d   : > { %v2926_v29 = vadd.f32 %v2909_v14, %v2611_v27  ;;  %v3068_v40 = vmul.f32 %v5323_v30, %v5329_v9 }
 0x71f   : > { %v2990_v23 = vmul.f32 %v2986_v16, %v2926_v29  ;;  %3077 = vadd.xlane.f32.xlu2 %v3068_v40 }
 0x721   : > { %v3001_v13 = vmul.f32 %v2997_v58, %v2990_v23 }
 0x723   : > { %v5333_v19 = vadd.f32 %v3028_v18, %v3001_v13 }
 0x724   : > { %v2911_v63 = vpop.f32.mrf.mxu3 }
 0x725   : > { %v2927_v5 = vadd.f32 %v2911_v63, %v2611_v27  ;;  %v3069_v12 = vmul.f32 %v5323_v30, %v5333_v19 }
 0x727   : > { %v2991_v47 = vmul.f32 %v2986_v16, %v2927_v5  ;;  %3079 = vadd.xlane.f32.xlu1 %v3069_v12 }
 0x729   : > { %v3002_v22 = vmul.f32 %v2997_v58, %v2991_v47 }
 0x72b   : > { %v5337_v28 = vadd.f32 %v3033_v35, %v3002_v22 }
 0x72c   : > { %v2914_v20 = vpop.f32.mrf.mxu3 }
 0x72d   : > { %v2928_v38 = vadd.f32 %v2914_v20, %v2611_v27  ;;  %v3070_v48 = vmul.f32 %v5323_v30, %v5337_v28 }
 0x72f   : > { %v2992_v53 = vmul.f32 %v2986_v16, %v2928_v38  ;;  %3081 = vadd.xlane.f32.xlu2 %v3070_v48 }
 0x731   : > { %v3003_v59 = vmul.f32 %v2997_v58, %v2992_v53 }
 0x733   : > { %v5341_v36 = vadd.f32 %v3038_v15, %v3003_v59 }
 0x734   : > { %v2916_v37 = vpop.f32.mrf.mxu3 }
 0x735   : > { %v2929_v24 = vadd.f32 %v2916_v37, %v2611_v27  ;;  %v3071_v2 = vmul.f32 %v5323_v30, %v5341_v36 }
 0x737   : > { %v2993_v31 = vmul.f32 %v2986_v16, %v2929_v24  ;;  %3083 = vadd.xlane.f32.xlu0 %v3071_v2 }
 0x739   : > { %v3004_v0 = vmul.f32 %v2997_v58, %v2993_v31 }
 0x73b   : > { %v5345_v43 = vadd.f32 %v3043_v34, %v3004_v0 }
 0x73c   : > { %v2919_v44 = vpop.f32.mrf.mxu3 }
 0x73d   : > { %v2930_v55 = vadd.f32 %v2919_v44, %v2611_v27  ;;  %v3072_v45 = vmul.f32 %v5323_v30, %v5345_v43 }
 0x73f   : > { %v2994_v11 = vmul.f32 %v2986_v16, %v2930_v55  ;;  %3085 = vadd.xlane.f32.xlu1 %v3072_v45 }
 0x741   : > { %v3005_v32 = vmul.f32 %v2997_v58, %v2994_v11 }
 0x743   : > { %v5349_v49 = vadd.f32 %v3048_v21, %v3005_v32  ;;  %v3305_v21 = vld [vmem:[%s4393_s24 + $0x30] sm:$0xff] }
 0x744   : > { %v2921_v39 = vpop.f32.mrf.mxu3 }
 0x745   : > { %v2931_v61 = vadd.f32 %v2921_v39, %v2611_v27  ;;  %v3073_v46 = vmul.f32 %v5323_v30, %v5349_v49  ;;  %v5362_v27 = vpop.permute.xlu0 %3268  ;;  %v3304_v39 = vld [vmem:[%s4393_s24 + $0x28] sm:$0xff] }
 0x747   : > { %v2995_v50 = vmul.f32 %v2986_v16, %v2931_v61  ;;  %3087 = vadd.xlane.f32.xlu2 %v3073_v46  ;;  %v5368_v16 = vpop.permute.xlu1 %3258 }
 0x749   : > { %v3006_v1 = vmul.f32 %v2997_v58, %v2995_v50  ;;  %v5370_v58 = vpop.permute.xlu2 %3283 }
 0x74b   : > { %v5353_v25 = vadd.f32 %v3053_v8, %v3006_v1 }
 0x74d   : > { %v3074_v17 = vmul.f32 %v5323_v30, %v5353_v25  ;;  %v5366_v3 = vpop.permute.xlu0 %3278 }
 0x74f   : > { %3089 = vadd.xlane.f32.xlu0 %v3074_v17  ;;  %v5374_v26 = vpop.permute.xlu1 %3273 }
 0x751   : > { %v5376_v60 = vpop.permute.xlu2 %3314 }
 0x755   : > { %v5372_v42 = vpop.permute.xlu0 %3309 }
 0x757   : > { %v5383_v51 = vpop.permute.xlu1 %3288 }
 0x758   : > { %3319 = vperm.xlu1 %3939, %v3301_v57  }
 0x75f   : > { %3329 = vperm.xlu2 %3940, %v3303_v62  }
 0x763   : > { %3324 = vperm.xlu0 %3941, %v3302_v41  }
 0x78a   : > { %v3076_v54 = vpop.xlane.xlu0 %3075 }
 0x78b   : > { %v3091_v7 = vmul.f32 0.083333336, %v3076_v54 }
 0x78d   : > { %v5379_v52 = vsub.f32 %v5325_v33, %v3091_v7 }
 0x78f   : > { %v3107_v10 = vmul.f32 %v5323_v30, %v5379_v52 }
 0x791   : > { %v3115_v56 = vmul.f32 %v3107_v10, %v3107_v10 }
 0x792   : > { %v3078_v14 = vpop.xlane.xlu2 %3077 }
 0x793   : > { %v3092_v29 = vmul.f32 0.083333336, %v3078_v14  ;;  %3123 = vadd.xlane.f32.xlu1 %v3115_v56 }
 0x795   : > { %v5386_v40 = vsub.f32 %v5329_v9, %v3092_v29 }
 0x797   : > { %v3108_v23 = vmul.f32 %v5323_v30, %v5386_v40 }
 0x799   : > { %v3116_v13 = vmul.f32 %v3108_v23, %v3108_v23 }
 0x79a   : > { %v3080_v18 = vpop.xlane.xlu1 %3079 }
 0x79b   : > { %v3093_v63 = vmul.f32 0.083333336, %v3080_v18  ;;  %3125 = vadd.xlane.f32.xlu2 %v3116_v13 }
 0x79d   : > { %v5391_v33 = vsub.f32 %v5333_v19, %v3093_v63 }
 0x79f   : > { %v3109_v5 = vmul.f32 %v5323_v30, %v5391_v33 }
 0x7a1   : > { %v3117_v12 = vmul.f32 %v3109_v5, %v3109_v5 }
 0x7a2   : > { %v3082_v47 = vpop.xlane.xlu2 %3081 }
 0x7a3   : > { %v3094_v22 = vmul.f32 0.083333336, %v3082_v47  ;;  %3127 = vadd.xlane.f32.xlu0 %v3117_v12 }
 0x7a5   : > { %v5396_v9 = vsub.f32 %v5337_v28, %v3094_v22 }
 0x7a7   : > { %v3110_v35 = vmul.f32 %v5323_v30, %v5396_v9 }
 0x7a9   : > { %v3118_v20 = vmul.f32 %v3110_v35, %v3110_v35 }
 0x7aa   : > { %v3084_v38 = vpop.xlane.xlu0 %3083 }
 0x7ab   : > { %v3095_v48 = vmul.f32 0.083333336, %v3084_v38  ;;  %3129 = vadd.xlane.f32.xlu1 %v3118_v20 }
 0x7ad   : > { %v5401_v19 = vsub.f32 %v5341_v36, %v3095_v48 }
 0x7af   : > { %v3111_v53 = vmul.f32 %v5323_v30, %v5401_v19 }
 0x7b1   : > { %v3119_v59 = vmul.f32 %v3111_v53, %v3111_v53 }
 0x7b2   : > { %v3086_v15 = vpop.xlane.xlu1 %3085 }
 0x7b3   : > { %v3096_v37 = vmul.f32 0.083333336, %v3086_v15  ;;  %3131 = vadd.xlane.f32.xlu2 %v3119_v59 }
 0x7b5   : > { %v5406_v28 = vsub.f32 %v5345_v43, %v3096_v37 }
 0x7b7   : > { %v3112_v24 = vmul.f32 %v5323_v30, %v5406_v28 }
 0x7b9   : > { %v3120_v2 = vmul.f32 %v3112_v24, %v3112_v24 }
 0x7ba   : > { %v3088_v31 = vpop.xlane.xlu2 %3087 }
 0x7bb   : > { %v3097_v36 = vmul.f32 0.083333336, %v3088_v31  ;;  %3133 = vadd.xlane.f32.xlu0 %v3120_v2 }
 0x7bd   : > { %v5411_v0 = vsub.f32 %v5349_v49, %v3097_v36  ;;  %v3306_v49 = vld [vmem:[%s4393_s24 + $0x38] sm:$0xff] }
 0x7bf   : > { %v3113_v34 = vmul.f32 %v5323_v30, %v5411_v0 }
 0x7c1   : > { %v3121_v44 = vmul.f32 %v3113_v34, %v3113_v34 }
 0x7c2   : > { %v3090_v43 = vpop.xlane.xlu0 %3089  ;;  %v5426_v46 = vpop.permute.xlu2 %3329 }
 0x7c3   : > { %v3098_v55 = vmul.f32 0.083333336, %v3090_v43  ;;  %3135 = vadd.xlane.f32.xlu1 %v3121_v44 }
 0x7c5   : > { %v5416_v45 = vsub.f32 %v5353_v25, %v3098_v55 }
 0x7c7   : > { %v3114_v11 = vmul.f32 %v5323_v30, %v5416_v45 }
 0x7c9   : > { %v3122_v32 = vmul.f32 %v3114_v11, %v3114_v11 }
 0x7ca   : > { %v5424_v61 = vpop.permute.xlu1 %3319 }
 0x7cb   : > { %3137 = vadd.xlane.f32.xlu2 %v3122_v32 }
 0x7cf   : > { %3339 = vperm.xlu0 %3941, %v3305_v21  }
 0x7d5   : > { %v5428_v25 = vpop.permute.xlu0 %3324 }
 0x7dc   : > { %3334 = vperm.xlu1 %3939, %v3304_v39  }
 0x7e3   : > { %3344 = vperm.xlu2 %3940, %v3306_v49  }
 0x806   : > { %v3124_v50 = vpop.xlane.xlu1 %3123 }
 0x807   : > { %v3139_v1 = vmul.f32 0.083333336, %v3124_v50 }
 0x809   : > { %v3147_v8 = vadd.f32 1e-05, %v3139_v1 }
 0x80b   : > { %4173 = vrsqrt.f32 %v3147_v8  ;;  %vm3161_vm3 = vweird.f32 %v3147_v8 }
 0x80e   : > { %v3126_v30 = vpop.xlane.xlu2 %3125 }
 0x80f   : > { %v3140_v17 = vmul.f32 0.083333336, %v3126_v30 }
 0x811   : > { %v4174_v57 = vpop.eup %4173  ;;  %v3148_v62 = vadd.f32 1e-05, %v3140_v17 }
 0x812   : > { %v3156_v41 = vmul.f32 %v4174_v57, %v3147_v8  ;;  %vm3162_vm2 = vweird.f32 %v4174_v57 }
 0x813   : > { %4175 = vrsqrt.f32 %v3148_v62  ;;  %vm3163_vm4 = vmor %vm3161_vm3, %vm3162_vm2  ;;  %vm3171_vm6 = vweird.f32 %v3148_v62 }
 0x814   : > { %v3157_v54 = vmul.f32 %v4174_v57, %v3156_v41 }
 0x816   : > { %v3158_v7 = vmul.f32 0.5, %v3157_v54  ;;  %v3128_v10 = vpop.xlane.xlu0 %3127 }
 0x817   : > { %v3141_v56 = vmul.f32 0.083333336, %v3128_v10 }
 0x818   : > { %v3159_v14 = vsub.f32 1.5, %v3158_v7 }
 0x819   : > { %v4176_v29 = vpop.eup %4175  ;;  %v3149_v23 = vadd.f32 1e-05, %v3141_v56 }
 0x81a   : > { %v3160_v13 = vmul.f32 %v4174_v57, %v3159_v14  ;;  %v3166_v18 = vmul.f32 %v4176_v29, %v3148_v62  ;;  %vm3172_vm5 = vweird.f32 %v4176_v29 }
 0x81b   : > { %4177 = vrsqrt.f32 %v3149_v23  ;;  %vm3173_vm7 = vmor %vm3171_vm6, %vm3172_vm5  ;;  %vm3181_vm9 = vweird.f32 %v3149_v23 }
 0x81c   : > { %v3164_v63 = vsel %vm3163_vm4, %v4174_v57, %v3160_v13  ;;  %v3167_v5 = vmul.f32 %v4176_v29, %v3166_v18 }
 0x81d   : > { %v3235_v12 = vmul.f32 %v3164_v63, %v5379_v52 }
 0x81e   : > { %v3168_v47 = vmul.f32 0.5, %v3167_v5  ;;  %v3130_v22 = vpop.xlane.xlu1 %3129 }
 0x81f   : > { %v3291_v35 = vmul.f32 %v5360_v6, %v3235_v12  ;;  %v3142_v20 = vmul.f32 0.083333336, %v3130_v22 }
 0x820   : > { %v3169_v38 = vsub.f32 1.5, %v3168_v47 }
 0x821   : > { %v4178_v48 = vpop.eup %4177  ;;  %v3347_v53 = vadd.f32 %v5372_v42, %v3291_v35  ;;  %v3150_v59 = vadd.f32 1e-05, %v3142_v20 }
 0x822   : > { %v3170_v15 = vmul.f32 %v4176_v29, %v3169_v38  ;;  %v3176_v37 = vmul.f32 %v4178_v48, %v3149_v23  ;;  %vm3182_vm8 = vweird.f32 %v4178_v48 }
 0x823   : > { %3355 = vst [vmem:[#allocation2 + $0x30] sm:$0xff] %v3347_v53  ;;  %4179 = vrsqrt.f32 %v3150_v59  ;;  %vm3183_vm10 = vmor %vm3181_vm9, %vm3182_vm8  ;;  %vm3191_vm12 = vweird.f32 %v3150_v59 }
 0x824   : > { %v3174_v24 = vsel %vm3173_vm7, %v4176_v29, %v3170_v15  ;;  %v3177_v2 = vmul.f32 %v4178_v48, %v3176_v37 }
 0x825   : > { %v3236_v52 = vmul.f32 %v3174_v24, %v5386_v40 }
 0x826   : > { %v3178_v31 = vmul.f32 0.5, %v3177_v2  ;;  %v3132_v36 = vpop.xlane.xlu2 %3131 }
 0x827   : > { %v3292_v6 = vmul.f32 %v5368_v16, %v3236_v52  ;;  %v3143_v34 = vmul.f32 0.083333336, %v3132_v36 }
 0x828   : > { %v3179_v44 = vsub.f32 1.5, %v3178_v31 }
 0x829   : > { %v4180_v43 = vpop.eup %4179  ;;  %v3348_v42 = vadd.f32 %v5376_v60, %v3292_v6  ;;  %v3151_v55 = vadd.f32 1e-05, %v3143_v34 }
 0x82a   : > { %v3180_v11 = vmul.f32 %v4178_v48, %v3179_v44  ;;  %v3186_v32 = vmul.f32 %v4180_v43, %v3150_v59  ;;  %vm3192_vm11 = vweird.f32 %v4180_v43 }
 0x82b   : > { %3356 = vst [vmem:[#allocation2] sm:$0xff] %v3348_v42  ;;  %4181 = vrsqrt.f32 %v3151_v55  ;;  %vm3193_vm13 = vmor %vm3191_vm12, %vm3192_vm11  ;;  %vm3201_vm15 = vweird.f32 %v3151_v55 }
 0x82c   : > { %v3184_v21 = vsel %vm3183_vm10, %v4178_v48, %v3180_v11  ;;  %v3187_v39 = vmul.f32 %v4180_v43, %v3186_v32 }
 0x82d   : > { %v3237_v40 = vmul.f32 %v3184_v21, %v5391_v33 }
 0x82e   : > { %v3188_v49 = vmul.f32 0.5, %v3187_v39  ;;  %v3134_v50 = vpop.xlane.xlu0 %3133 }
 0x82f   : > { %v3293_v16 = vmul.f32 %v5364_v4, %v3237_v40  ;;  %v3144_v1 = vmul.f32 0.083333336, %v3134_v50  ;;  %v3397_v50 = vld [vmem:[%s5530_s6] sm:$0x3] (%p3363_p6) }
 0x830   : > { %v3189_v8 = vsub.f32 1.5, %v3188_v49  ;;  %v4221_v49 = vmov (%p3363_p6), 0  }
 0x831   : > { %v4182_v30 = vpop.eup %4181  ;;  %v3349_v60 = vadd.f32 %v5424_v61, %v3293_v16  ;;  %v3152_v17 = vadd.f32 1e-05, %v3144_v1  ;;  %4189 = vset.pattern.permute.xlu0 (%p3363_p6), %v4221_v49 }
 0x832   : > { %v3190_v57 = vmul.f32 %v4180_v43, %v3189_v8  ;;  %v3196_v62 = vmul.f32 %v4182_v30, %v3151_v55  ;;  %vm3202_vm14 = vweird.f32 %v4182_v30  ;;  %3400 = vperm.xlu0 (%p3363_p6), %4189, %v3397_v50  }
 0x833   : > { %3357 = vst [vmem:[#allocation2 + $0x18] sm:$0xff] %v3349_v60  ;;  %4183 = vrsqrt.f32 %v3152_v17  ;;  %vm3203_vm0 = vmor %vm3201_vm15, %vm3202_vm14  ;;  %vm3211_vm3 = vweird.f32 %v3152_v17  ;;  %v3369_v60 = vld [vmem:[#allocation2 + $0x30] sm:$0xff] (%p3363_p6)  ;;  %vm3489_vm15 = vcmask (%p3363_p6), 1024  }
 0x834   : > { %v3194_v41 = vsel %vm3193_vm13, %v4180_v43, %v3190_v57  ;;  %v3197_v54 = vmul.f32 %v4182_v30, %v3196_v62  ;;  %v3425_v57 = vld [vmem:[%s5541_s17 + $0x38] sm:$0xff] (%p3363_p6)  ;;  %v3424_v62 = vld [vmem:[%s5541_s17 + $0x30] sm:$0xff] (%p3363_p6) }
 0x835   : > { %v3238_v33 = vmul.f32 %v3194_v41, %v5396_v9  ;;  %3441 = vmatpush.msra.mxu1 (%p3363_p6), %v3425_v57  ;;  %v3423_v41 = vld [vmem:[%s5541_s17 + $0x28] sm:$0xff] (%p3363_p6) }
 0x836   : > { %v3198_v7 = vmul.f32 0.5, %v3197_v54  ;;  %v3136_v10 = vpop.xlane.xlu1 %3135  ;;  %v3422_v54 = vld [vmem:[%s5541_s17 + $0x20] sm:$0xff] (%p3363_p6) }
 0x837   : > { %v3294_v4 = vmul.f32 %v5362_v27, %v3238_v33  ;;  %v3145_v56 = vmul.f32 0.083333336, %v3136_v10  ;;  %3442 = vmatpush.msra.mxu1 (%p3363_p6), %v3424_v62  ;;  %v3421_v33 = vld [vmem:[%s5541_s17 + $0x18] sm:$0xff] (%p3363_p6)  ;;  %v3419_v10 = vld [vmem:[%s5541_s17 + $0x8] sm:$0xff] (%p3363_p6) }
 0x838   : > { %v3199_v14 = vsub.f32 1.5, %v3198_v7  ;;  %v3420_v7 = vld [vmem:[%s5541_s17 + $0x10] sm:$0xff] (%p3363_p6) }
 0x839   : > { %v4184_v29 = vpop.eup %4183  ;;  %v3350_v61 = vadd.f32 %v5428_v25, %v3294_v4  ;;  %v3153_v23 = vadd.f32 1e-05, %v3145_v56  ;;  %3443 = vmatpush.msra.mxu1 (%p3363_p6), %v3423_v41  ;;  %v3418_v56 = vld [vmem:[%s5541_s17] sm:$0xff] (%p3363_p6) }
 0x83a   : > { %v3200_v13 = vmul.f32 %v4182_v30, %v3199_v14  ;;  %v3206_v18 = vmul.f32 %v4184_v29, %v3152_v17  ;;  %vm3212_vm2 = vweird.f32 %v4184_v29  ;;  %v3371_v8 = vld [vmem:[#allocation2 + $0x18] sm:$0xff] (%p3363_p6)  ;;  %v3368_v17 = vld [vmem:[%s5687_s25] sm:$0x3] (%p3363_p6) }
 0x83b   : > { %3358 = vst [vmem:[#allocation2 + $0x10] sm:$0xff] %v3350_v61  ;;  %4185 = vrsqrt.f32 %v3153_v23  ;;  %vm3213_vm4 = vmor %vm3211_vm3, %vm3212_vm2  ;;  %vm3221_vm6 = vweird.f32 %v3153_v23  ;;  %3444 = vmatpush.msra.mxu1 (%p3363_p6), %v3422_v54  ;;  %v3461_v14 = vld [vmem:[%s5543_s19 + $0x38] sm:$0xff] (%p3363_p6)  ;;  %v3459_v61 = vld [vmem:[%s5543_s19 + $0x28] sm:$0xff] (%p3363_p6) }
 0x83c   : > { %v3204_v63 = vsel %vm3203_vm0, %v4182_v30, %v3200_v13  ;;  %v3207_v5 = vmul.f32 %v4184_v29, %v3206_v18  ;;  %v3370_v30 = vld [vmem:[#allocation2] sm:$0xff] (%p3363_p6)  ;;  %3477 = vmatpush.msra.mxu2 (%p3363_p6), %v3461_v14  ;;  %v3457_v13 = vld [vmem:[%s5543_s19 + $0x18] sm:$0xff] (%p3363_p6) }
 0x83d   : > { %v3239_v9 = vmul.f32 %v3204_v63, %v5401_v19  ;;  %3445 = vmatpush.msra.mxu1 (%p3363_p6), %v3421_v33 }
 0x83e   : > { %v3208_v12 = vmul.f32 0.5, %v3207_v5  ;;  %v3138_v47 = vpop.xlane.xlu2 %3137 }
 0x83f   : > { %v3295_v27 = vmul.f32 %v5374_v26, %v3239_v9  ;;  %v3146_v22 = vmul.f32 0.083333336, %v3138_v47  ;;  %3446 = vmatpush.msra.mxu1 (%p3363_p6), %v3420_v7 }
 0x840   : > { %v3209_v35 = vsub.f32 1.5, %v3208_v12 }
 0x841   : > { %v4186_v20 = vpop.eup %4185  ;;  %v3351_v25 = vadd.f32 %v5426_v46, %v3295_v27  ;;  %v3154_v38 = vadd.f32 1e-05, %v3146_v22  ;;  %v3340_v11 = vpop.permute.xlu0 %3339  ;;  %3447 = vmatpush.msra.mxu1 (%p3363_p6), %v3419_v10 }
 0x842   : > { %v3216_v48 = vmul.f32 %v4186_v20, %v3153_v23  ;;  %v3210_v53 = vmul.f32 %v4184_v29, %v3209_v35  ;;  %vm3222_vm5 = vweird.f32 %v4186_v20  ;;  %v3372_v1 = vld [vmem:[#allocation2 + $0x10] sm:$0xff] (%p3363_p6)  ;;  %v3458_v23 = vld [vmem:[%s5543_s19 + $0x20] sm:$0xff] (%p3363_p6) }
 0x843   : > { %3359 = vst [vmem:[#allocation2 + $0x8] sm:$0xff] %v3351_v25  ;;  %4187 = vrsqrt.f32 %v3154_v38  ;;  %vm3223_vm7 = vmor %vm3221_vm6, %vm3222_vm5  ;;  %vm3231_vm9 = vweird.f32 %v3154_v38  ;;  %3448 = vmatpush.msra.mxu1 (%p3363_p6), %v3418_v56 }
 0x844   : > { %v3217_v59 = vmul.f32 %v4186_v20, %v3216_v48  ;;  %v3214_v19 = vsel %vm3213_vm4, %v4184_v29, %v3210_v53  ;;  %v3460_v29 = vld [vmem:[%s5543_s19 + $0x30] sm:$0xff] (%p3363_p6)  ;;  %v3455_v53 = vld [vmem:[%s5543_s19 + $0x8] sm:$0xff] (%p3363_p6) }
 0x845   : > { %v3240_v26 = vmul.f32 %v3214_v19, %v5406_v28  ;;  %3478 = vmatpush.msra.mxu2 (%p3363_p6), %v3460_v29  ;;  %v3456_v48 = vld [vmem:[%s5543_s19 + $0x10] sm:$0xff] (%p3363_p6) }
 0x846   : > { %v3218_v15 = vmul.f32 0.5, %v3217_v59  ;;  %v3454_v59 = vld [vmem:[%s5543_s19] sm:$0xff] (%p3363_p6) }
 0x847   : > { %v3296_v6 = vmul.f32 %v5366_v3, %v3240_v26  ;;  %v3345_v3 = vpop.permute.xlu2 %3344  ;;  %3479 = vmatpush.msra.mxu2 (%p3363_p6), %v3459_v61  ;;  %v4191_v26 = vld [vmem:[#allocation7] ss:$0 sm:$0xff] (%p3363_p6) }
 0x848   : > { %v3219_v37 = vsub.f32 1.5, %v3218_v15  ;;  %v4190_v15 = vld [vmem:[%s5542_s18] ss:$0 sm:$0xff] (%p3363_p6) }
 0x849   : > { %v4188_v24 = vpop.eup %4187  ;;  %3480 = vmatpush.msra.mxu2 (%p3363_p6), %v3458_v23 }
 0x84a   : > { %v3226_v2 = vmul.f32 %v4188_v24, %v3154_v38  ;;  %v3220_v52 = vmul.f32 %v4186_v20, %v3219_v37  ;;  %vm3232_vm8 = vweird.f32 %v4188_v24 }
 0x84b   : > { %vm3233_vm10 = vmor %vm3231_vm9, %vm3232_vm8  ;;  %3481 = vmatpush.msra.mxu2 (%p3363_p6), %v3457_v13 }
 0x84c   : > { %v3227_v46 = vmul.f32 %v4188_v24, %v3226_v2  ;;  %v3224_v31 = vsel %vm3223_vm7, %v4186_v20, %v3220_v52 }
 0x84d   : > { %v3241_v36 = vmul.f32 %v3224_v31, %v5411_v0  ;;  %3482 = vmatpush.msra.mxu2 (%p3363_p6), %v3456_v48 }
 0x84e   : > { %v3228_v34 = vmul.f32 0.5, %v3227_v46  ;;  %v3335_v44 = vpop.permute.xlu1 %3334 }
 0x84f   : > { %v3297_v43 = vmul.f32 %v5370_v58, %v3241_v36  ;;  %v3352_v42 = vadd.f32 %v3335_v44, %v3296_v6  ;;  %3483 = vmatpush.msra.mxu2 (%p3363_p6), %v3455_v53 }
 0x850   : > { %v3229_v55 = vsub.f32 1.5, %v3228_v34 }
 0x851   : > { %v3353_v32 = vadd.f32 %v3340_v11, %v3297_v43  ;;  %3360 = vst [vmem:[#allocation2 + $0x20] sm:$0xff] %v3352_v42  ;;  %3484 = vmatpush.msra.mxu2 (%p3363_p6), %v3454_v59 }
 0x852   : > { %v3230_v28 = vmul.f32 %v4188_v24, %v3229_v55 }
 0x853   : > { %3361 = vst [vmem:[#allocation2 + $0x28] sm:$0xff] %v3353_v32 }
 0x854   : > { %v3234_v21 = vsel %vm3233_vm10, %v4188_v24, %v3230_v28 }
 0x855   : > { %v3242_v39 = vmul.f32 %v3234_v21, %v5416_v45 }
 0x857   : > { %v3298_v0 = vmul.f32 %v5383_v51, %v3242_v39  ;;  %3367 = sbr.rel (!%p3363_p6) target bundleno = 2571 (0xa0b), region = 120  ;;  %v3373_v51 = vld [vmem:[#allocation2 + $0x8] sm:$0xff] (%p3363_p6) }
 0x858   : > { %v3374_v45 = vld [vmem:[#allocation2 + $0x20] sm:$0xff] (%p3363_p6) }
 0x859   : > { %v3354_v40 = vadd.f32 %v3345_v3, %v3298_v0 }
 0x85a   : > { %v3375_v16 = vld [vmem:[#allocation2 + $0x28] sm:$0xff] (%p3363_p6) }
 0x85b   : > { %3362 = vst [vmem:[#allocation2 + $0x38] sm:$0xff] %v3354_v40 }
 0x862   : > { %v3376_v58 = vld [vmem:[#allocation2 + $0x38] sm:$0xff] }
 0x863   : > { %3385 = vmatpush.xpose.msra.mxu0 %v3376_v58 }
 0x867   : > { %3386 = vmatpush.xpose.msra.mxu0 %v3375_v16 }
 0x86b   : > { %3387 = vmatpush.xpose.msra.mxu0 %v3374_v45 }
 0x86f   : > { %3388 = vmatpush.xpose.msra.mxu0 %v3373_v51 }
 0x873   : > { %3389 = vmatpush.xpose.msra.mxu0 %v3372_v1 }
 0x877   : > { %3390 = vmatpush.xpose.msra.mxu0 %v3371_v8 }
 0x87b   : > { %3391 = vmatpush.xpose.msra.mxu0 %v3370_v30 }
 0x87f   : > { %3392 = vmatpush.xpose.msra.mxu0 %v3369_v60 }
 0x882   : > { %3393 = vmatmul.f32.vlgmr.msra.gmra.mxu0 %v3368_v17 }
 0x8a4   : > { %v3401_v4 = vpop.permute.xlu0 %3400 }
 0x8a5   : > { %4192 = vrcp.f32 %v3401_v4  ;;  %vm3408_vm11 = vweird.f32 %v3401_v4  ;;  %v3414_v12 = vand.u32 2147483648, %v3401_v4  ;;  %v3412_v27 = vand.u32 2147483647, %v3401_v4 }
 0x8a7   : > { %v3415_v22 = vor.u32 1.1754944e-38, %v3414_v12  ;;  %vm3413_vm14 = vcmp.eq.f32.partialorder %v3412_v27, 8.507059e+37 }
 0x8ab   : > { %v4193_v18 = vpop.eup %4192 }
 0x8ac   : > { %v3404_v63 = vmul.f32 %v4193_v18, %v3401_v4  ;;  %vm3409_vm12 = vweird.f32 %v4193_v18 }
 0x8ad   : > { %vm3410_vm13 = vmor %vm3408_vm11, %vm3409_vm12 }
 0x8ae   : > { %v3405_v5 = vsub.f32 1.0, %v3404_v63 }
 0x8b0   : > { %v3406_v9 = vmul.f32 %v4193_v18, %v3405_v5 }
 0x8b2   : > { %v3407_v47 = vadd.f32 %v4193_v18, %v3406_v9 }
 0x8b4   : > { %v3411_v35 = vsel %vm3410_vm13, %v4193_v18, %v3407_v47 }
 0x8b5   : > { %v3416_v25 = vsel %vm3413_vm14, %v3415_v22, %v3411_v35 }
 0x8ff   : > { %v3394_v20 = vpop.f32.mrf.mxu0 }
 0x900   : > { %v3417_v38 = vmul.f32 %v3416_v25, %v3394_v20 }
 0x902   : > { %3811 = vmatmul.msk.f32.vlgmr.msra.gmra.mxu1 %vm1063_vm1, %v3417_v38 }
 0x97f   : > { %v3450_v19 = vpop.f32.mrf.mxu1 }
 0x980   : > { %v3451_v37 = vadd.f32 %v4190_v15, %v3450_v19 }
 0x982   : > { %v3453_v24 = vmax.f32 %v3451_v37, 0.0 }
 0x984   : > { %3812 = vmatmul.msk.f32.vlgmr.msra.gmra.mxu2 %vm1063_vm1, %v3453_v24 }
 0xa07   : > { %v3486_v2 = vpop.f32.mrf.mxu2 }
 0xa08   : > { %v3487_v52 = vadd.f32 %v4191_v26, %v3486_v2 }
 0xa0a   : > { %3490 = vst.msk [vmem:[%s5688_s0] sm:$0x3] %vm3489_vm15, %v3487_v52 }
 0xa0b PF: > { %s5689_s1 = sld [smem:[#allocation9_spill]] }
 0xa0c   : > { %s5690_s26 = sld [smem:[#allocation8_spill]] }
 0xa0d   : > { %s5691_s27 = sld [smem:[#allocation10_spill]] }
 0xa11   : > { %s33_s3 = sadd.s32 1, %s5689_s1  }
 0xa12   : > { %p30_p7 = scmp.ge.s32.totalorder %s33_s3, 5  }
 0xa14   :  { %32 = sbr.rel (!%p30_p7) target bundleno = 10 (0xa), region = 173 }

</bundles_post_ra>
